<compile_context>
chip_gen: v7x
topology: tpu7x:2x2x1
jax: 0.10.0
libtpu: 0.0.40
codegen_flags: <defaults>
</compile_context>

<pallas_src>
import functools

import numpy as np
import jax
import jax.numpy as jnp
from jax import lax
from jax.experimental import pallas as pl
from jax.experimental.pallas import tpu as pltpu

_EPS = 1e-5
_PAD = 128   # lane-aligned scratch padding used for the shifted conv-tap reads


# ----------------------------------------------------------------------------
# Fused Pallas kernel
# ----------------------------------------------------------------------------
def convgen_kernel(x_ref, w1_ref, b1_ref, g1_ref, be1_ref,
                   w2_ref, b2_ref, g2_ref, be2_ref,
                   ut1_ref, wb1_ref, bb1_ref, m1_ref,
                   ut2_ref, wb2_ref, bb2_ref, m2_ref,
                   ut3_ref, wb3_ref, bb3_ref, m3_ref,
                   o_ref,
                   rs_scr, up1_scr, up2_scr, up3_scr,
                   *, batch, cin0, widths, ksizes, use_sigmoid):
    f32 = jnp.float32

    # ---------------- fc1 -> bn1 -> relu -> fc2 -> bn2 (training-mode BN) ----
    x = x_ref[...]                                                   # (B, Din)
    h = jnp.dot(x, w1_ref[...], preferred_element_type=f32) + b1_ref[...]
    mu = jnp.mean(h, axis=0, keepdims=True)
    var = jnp.mean((h - mu) ** 2, axis=0, keepdims=True)             # biased var
    h = (h - mu) * lax.rsqrt(var + _EPS) * g1_ref[...] + be1_ref[...]
    h = jnp.maximum(h, 0.0)

    y = jnp.dot(h, w2_ref[...], preferred_element_type=f32) + b2_ref[...]
    mu2 = jnp.mean(y, axis=0, keepdims=True)
    var2 = jnp.mean((y - mu2) ** 2, axis=0, keepdims=True)
    y = (y - mu2) * lax.rsqrt(var2 + _EPS) * g2_ref[...] + be2_ref[...]

    # --- torch reshape (B, C0*hw*hw) -> channels-first (B*C0, hw*hw) ---------
    # done through a tiny VMEM scratch with static slices (no in-kernel reshape)
    si0 = y.shape[1] // cin0
    for b in range(batch):
        for c in range(cin0):
            r = b * cin0 + c
            rs_scr[r:r + 1, :] = lax.slice(y, (b, c * si0), (b + 1, (c + 1) * si0))
    X = rs_scr[...]                                                  # (B*C0, hw*hw)

    # --------- fused bilinear upsample(2x, align_corners) + same-pad conv ----
    def up_conv(X, ut_ref, wb_ref, bb_ref, m_ref, up_scr, wout, kk, act):
        so = ut_ref.shape[1]                                         # Ho*Wo
        p = (kk - 1) // 2
        # upsample the whole batch with one MXU matmul: (B*Cin, Si)@(Si, So)
        up = jnp.dot(X, ut_ref[...], preferred_element_type=f32)     # (B*Cin, So)
        # park it in a lane-padded scratch so conv taps become shifted slices
        up_scr[...] = jnp.zeros(up_scr.shape, f32)
        up_scr[:, _PAD:_PAD + so] = up
        taps = []
        for t in range(kk * kk):                                     # static k*k
            dy, dx = t // kk, t % kk
            d = (dy - p) * wout + (dx - p)
            taps.append(up_scr[:, _PAD + d:_PAD + d + so] * m_ref[t:t + 1, :])
        ystack = jnp.concatenate(taps, axis=0)                       # (k*k*B*Cin, So)
        # single MXU contraction over (tap, channel); block-diagonal over batch
        out = jnp.dot(wb_ref[...], ystack, preferred_element_type=f32) + bb_ref[...]
        if act == "relu":
            out = jnp.maximum(out, 0.0)
        elif act == "sigmoid":
            out = jax.nn.sigmoid(out)
        return out                                                   # (B*Cout, So)

    X = up_conv(X, ut1_ref, wb1_ref, bb1_ref, m1_ref, up1_scr,
                widths[0], ksizes[0], "relu")
    X = up_conv(X, ut2_ref, wb2_ref, bb2_ref, m2_ref, up2_scr,
                widths[1], ksizes[1], "relu")
    X = up_conv(X, ut3_ref, wb3_ref, bb3_ref, m3_ref, up3_scr,
                widths[2], ksizes[2], "sigmoid" if use_sigmoid else "none")

    o_ref[...] = X.astype(o_ref.dtype)                               # (B*3, 32*32)


# ----------------------------------------------------------------------------
# Host-side parameter preparation
# ----------------------------------------------------------------------------
def upsample_matrix(n_in, n_out):
    """PyTorch UpsamplingBilinear2d (align_corners=True) as a (n_out, n_in) matrix."""
    U = np.zeros((n_out, n_in), np.float32)
    if n_out == 1 or n_in == 1:
        U[:, 0] = 1.0
        return U
    scale = (n_in - 1) / (n_out - 1)
    for i in range(n_out):
        s = i * scale
        h0 = min(int(np.floor(s)), n_in - 1)
        h1 = min(h0 + 1, n_in - 1)
        frac = s - h0
        U[i, h0] += 1.0 - frac
        U[i, h1] += frac
    return U


def build_shift_masks(h_out, w_out, k):
    """0/1 masks (k*k, Ho*Wo): valid positions for each conv tap on the upsampled image."""
    p = (k - 1) // 2
    so = h_out * w_out
    ys, xs = np.divmod(np.arange(so), w_out)
    m = np.zeros((k * k, so), np.float32)
    for dy in range(k):
        for dx in range(k):
            oy, ox = dy - p, dx - p
            ok = (ys + oy >= 0) & (ys + oy < h_out) & (xs + ox >= 0) & (xs + ox < w_out)
            m[dy * k + dx] = ok.astype(np.float32)
    return jnp.asarray(m)


def build_blockdiag_weight(w, batch):
    """(Cout, Cin, k, k) torch conv weight -> (B*Cout, k*k*B*Cin) block-diag matrix."""
    w = np.asarray(w)
    cout, cin, k, _ = w.shape
    nk = k * k
    wbd = np.zeros((batch * cout, nk * batch * cin), np.float32)
    for t in range(nk):
        dy, dx = t // k, t % k
        for b in range(batch):
            r0 = b * cout
            c0 = t * batch * cin + b * cin
            wbd[r0:r0 + cout, c0:c0 + cin] = w[:, :, dy, dx]
    return jnp.asarray(wbd)


def init_raw_params(key, d_code, n_labels, fc1_dim, nc, ks, hw=4):
    """Deterministic synthetic parameters, PyTorch-shaped."""
    keys = jax.random.split(key, 12)
    d_in = d_code + n_labels
    reshape_size = nc[0] * hw * hw

    def lin_w(k, fin, fout):
        return jax.random.normal(k, (fout, fin), jnp.float32) / jnp.sqrt(fin)

    def conv_w(k, cin, cout, ksz):
        return jax.random.normal(k, (cout, cin, ksz, ksz), jnp.float32) / jnp.sqrt(cin * ksz * ksz)

    return {
        "w1": lin_w(keys[0], d_in, fc1_dim),
        "b1": 0.1 * jax.random.normal(keys[1], (fc1_dim,), jnp.float32),
        "w2": lin_w(keys[2], fc1_dim, reshape_size),
        "b2": 0.1 * jax.random.normal(keys[3], (reshape_size,), jnp.float32),
        # fresh BatchNorm1d affine params (PyTorch default init)
        "g1": jnp.ones((fc1_dim,), jnp.float32),
        "be1": jnp.zeros((fc1_dim,), jnp.float32),
        "g2": jnp.ones((reshape_size,), jnp.float32),
        "be2": jnp.zeros((reshape_size,), jnp.float32),
        "cw1": conv_w(keys[4], nc[0], nc[1], ks[0]),
        "cb1": 0.1 * jax.random.normal(keys[5], (nc[1],), jnp.float32),
        "cw2": conv_w(keys[6], nc[1], nc[2], ks[1]),
        "cb2": 0.1 * jax.random.normal(keys[7], (nc[2],), jnp.float32),
        "cw3": conv_w(keys[8], nc[2], nc[3], ks[2]),
        "cb3": 0.1 * jax.random.normal(keys[9], (nc[3],), jnp.float32),
    }


def make_kernel_params(raw, nc, ks, batch, hw=4):
    params = {
        "w1": raw["w1"].T, "b1": raw["b1"][None],
        "g1": raw["g1"][None], "be1": raw["be1"][None],
        "w2": raw["w2"].T, "b2": raw["b2"][None],
        "g2": raw["g2"][None], "be2": raw["be2"][None],
        "nc": tuple(nc), "ks": tuple(ks), "hw": hw, "batch": batch,
    }
    convs = [("1", raw["cw1"], raw["cb1"]),
             ("2", raw["cw2"], raw["cb2"]),
             ("3", raw["cw3"], raw["cb3"])]
    h_in = hw
    for i, (tag, cw, cb) in enumerate(convs):
        h_out = 2 * h_in
        Uh = upsample_matrix(h_in, h_out)
        U = np.kron(Uh, Uh)                       # (h_out^2, h_in^2); square images
        params["UT" + tag] = jnp.asarray(np.ascontiguousarray(U.T))
        params["WB" + tag] = build_blockdiag_weight(cw, batch)
        params["BB" + tag] = jnp.asarray(np.tile(np.asarray(cb).reshape(-1, 1), (batch, 1)))
        params["M" + tag] = build_shift_masks(h_out, h_out, ks[i])
        h_in = h_out
    return params


# ----------------------------------------------------------------------------
# Forward wrapper (one pallas_call)
# ----------------------------------------------------------------------------
def conv_cond_gen_svhn_forward(x, params, use_sigmoid=False):
    B = x.shape[0]
    nc, hw, ks = params["nc"], params["hw"], params["ks"]
    # Training-mode BatchNorm statistics are taken over the whole batch, so the
    # entire batch must be resident in this single invocation (grid=()).
    assert B == params["batch"], "params (block-diag conv weights) were built for this batch size"

    so3 = (8 * hw) ** 2
    kernel = functools.partial(
        convgen_kernel, batch=B, cin0=nc[0],
        widths=(2 * hw, 4 * hw, 8 * hw), ksizes=ks, use_sigmoid=use_sigmoid)

    operands = (x,
                params["w1"], params["b1"], params["g1"], params["be1"],
                params["w2"], params["b2"], params["g2"], params["be2"],
                params["UT1"], params["WB1"], params["BB1"], params["M1"],
                params["UT2"], params["WB2"], params["BB2"], params["M2"],
                params["UT3"], params["WB3"], params["BB3"], params["M3"])

    scratch_shapes = [
        pltpu.VMEM((B * nc[0], hw * hw), jnp.float32),                   # fc->image reshape
        pltpu.VMEM((B * nc[0], 2 * _PAD + (2 * hw) ** 2), jnp.float32),  # layer-1 upsample buf
        pltpu.VMEM((B * nc[1], 2 * _PAD + (4 * hw) ** 2), jnp.float32),  # layer-2 upsample buf
        pltpu.VMEM((B * nc[2], 2 * _PAD + (8 * hw) ** 2), jnp.float32),  # layer-3 upsample buf
    ]

    out = pl.pallas_call(
        kernel,
        out_shape=jax.ShapeDtypeStruct((B * nc[3], so3), jnp.float32),
        scratch_shapes=scratch_shapes,
    )(*operands)
    # (B*3, 32*32) row-major == torch (B, 3, 32, 32).reshape(B, -1)
    return out.reshape(B, -1)


# ----------------------------------------------------------------------------
# Pure-JAX reference (numerical sanity check only)
# ----------------------------------------------------------------------------
def reference_forward(x, raw, nc, ks, hw=4, use_sigmoid=False):
    def bn(h, g, b):
        mu = h.mean(0)
        var = ((h - mu) ** 2).mean(0)
        return (h - mu) / jnp.sqrt(var + _EPS) * g + b

    B = x.shape[0]
    h = x @ raw["w1"].T + raw["b1"]
    h = bn(h, raw["g1"], raw["be1"])
    h = jnp.maximum(h, 0.0)
    h = h @ raw["w2"].T + raw["b2"]
    h = bn(h, raw["g2"], raw["be2"])
    h = h.reshape(B, nc[0], hw, hw)

    def up2(z):
        _, _, H, W = z.shape
        Uh = jnp.asarray(upsample_matrix(H, 2 * H))
        Uw = jnp.asarray(upsample_matrix(W, 2 * W))
        z = jnp.einsum("ih,bchw->bciw", Uh, z, precision=lax.Precision.HIGHEST)
        z = jnp.einsum("jw,bciw->bcij", Uw, z, precision=lax.Precision.HIGHEST)
        return z

    def conv(z, w, b, k):
        p = (k - 1) // 2
        o = lax.conv_general_dilated(z, w, (1, 1), [(p, p), (p, p)],
                                     dimension_numbers=("NCHW", "OIHW", "NCHW"),
                                     precision=lax.Precision.HIGHEST)
        return o + b[None, :, None, None]

    h = jnp.maximum(conv(up2(h), raw["cw1"], raw["cb1"], ks[0]), 0.0)
    h = jnp.maximum(conv(up2(h), raw["cw2"], raw["cb2"], ks[1]), 0.0)
    h = conv(up2(h), raw["cw3"], raw["cb3"], ks[2])
    h = h.reshape(B, -1)
    if use_sigmoid:
        h = jax.nn.sigmoid(h)
    return h


# ----------------------------------------------------------------------------
if __name__ == "__main__":
    # module config: ConvCondGenSVHN(d_code=8, fc_spec='32', n_labels=10,
    #                                nc_str='8,8,4', ks_str='3,3,3')
    B, d_code, n_labels = 2, 8, 10
    fc1_dim = 32
    nc = [8, 8, 4, 3]
    ks = [3, 3, 3]
    use_sigmoid = False

    key = jax.random.PRNGKey(0)
    kp, kx = jax.random.split(key)
    raw = init_raw_params(kp, d_code, n_labels, fc1_dim, nc, ks)
    params = make_kernel_params(raw, nc, ks, batch=B)

    x = jax.random.normal(kx, (B, d_code + n_labels), jnp.float32)

    out = conv_cond_gen_svhn_forward(x, params, use_sigmoid=use_sigmoid)
    out = jax.block_until_ready(out)
    assert out.shape == (B, 3 * 32 * 32), out.shape

    ref = jax.block_until_ready(reference_forward(x, raw, nc, ks, use_sigmoid=use_sigmoid))
    max_err = float(jnp.max(jnp.abs(out - ref)))
    assert max_err < 2e-2, f"max abs err {max_err}"

    print("KERNEL_OK")
</pallas_src>

<mosaic_0001>
module attributes {stable_mosaic.version = 11 : i64} {
  func.func @convgen_kernel(%arg0: memref<2x18xf32, #tpu.memory_space<vmem>>, %arg1: memref<18x32xf32, #tpu.memory_space<vmem>>, %arg2: memref<1x32xf32, #tpu.memory_space<vmem>>, %arg3: memref<1x32xf32, #tpu.memory_space<vmem>>, %arg4: memref<1x32xf32, #tpu.memory_space<vmem>>, %arg5: memref<32x128xf32, #tpu.memory_space<vmem>>, %arg6: memref<1x128xf32, #tpu.memory_space<vmem>>, %arg7: memref<1x128xf32, #tpu.memory_space<vmem>>, %arg8: memref<1x128xf32, #tpu.memory_space<vmem>>, %arg9: memref<16x64xf32, #tpu.memory_space<vmem>>, %arg10: memref<16x144xf32, #tpu.memory_space<vmem>>, %arg11: memref<16x1xf32, #tpu.memory_space<vmem>>, %arg12: memref<9x64xf32, #tpu.memory_space<vmem>>, %arg13: memref<64x256xf32, #tpu.memory_space<vmem>>, %arg14: memref<8x144xf32, #tpu.memory_space<vmem>>, %arg15: memref<8x1xf32, #tpu.memory_space<vmem>>, %arg16: memref<9x256xf32, #tpu.memory_space<vmem>>, %arg17: memref<256x1024xf32, #tpu.memory_space<vmem>>, %arg18: memref<6x72xf32, #tpu.memory_space<vmem>>, %arg19: memref<6x1xf32, #tpu.memory_space<vmem>>, %arg20: memref<9x1024xf32, #tpu.memory_space<vmem>>, %arg21: memref<6x1024xf32, #tpu.memory_space<vmem>>, %arg22: memref<16x16xf32, #tpu.memory_space<vmem>>, %arg23: memref<16x320xf32, #tpu.memory_space<vmem>>, %arg24: memref<16x512xf32, #tpu.memory_space<vmem>>, %arg25: memref<8x1280xf32, #tpu.memory_space<vmem>>) attributes {dimension_semantics = [], scalar_prefetch = 0 : i64, scratch_operands = 4 : i64, tpu.core_type = #tpu.core_type<tc>} {
    %c0 = arith.constant 0 : index
    %c0_0 = arith.constant 0 : index
    %0 = vector.load %arg0[%c0, %c0_0] : memref<2x18xf32, #tpu.memory_space<vmem>>, vector<2x18xf32>
    %c0_1 = arith.constant 0 : index
    %c0_2 = arith.constant 0 : index
    %1 = vector.load %arg1[%c0_1, %c0_2] : memref<18x32xf32, #tpu.memory_space<vmem>>, vector<18x32xf32>
    %cst = arith.constant dense<0.000000e+00> : vector<2x32xf32>
    %2 = tpu.matmul %0, %1, %cst {dimension_numbers = #tpu.dot_dimension_numbers<[1], [0], [0], [1], [0, 0, 1, 1], [], []>} : vector<2x18xf32>, vector<18x32xf32>, vector<2x32xf32> -> vector<2x32xf32>
    %c0_3 = arith.constant 0 : index
    %c0_4 = arith.constant 0 : index
    %3 = vector.load %arg2[%c0_3, %c0_4] : memref<1x32xf32, #tpu.memory_space<vmem>>, vector<1x32xf32>
    %4 = vector.broadcast %3 : vector<1x32xf32> to vector<2x32xf32>
    %5 = arith.addf %2, %4 : vector<2x32xf32>
    %cst_5 = arith.constant dense<0.000000e+00> : vector<32xf32>
    %6 = vector.multi_reduction <add>, %5, %cst_5 [0] : vector<2x32xf32> to vector<32xf32>
    %7 = vector.shape_cast %6 : vector<32xf32> to vector<1x32xf32>
    %cst_6 = arith.constant 2.000000e+00 : f32
    %8 = vector.broadcast %cst_6 : f32 to vector<1x32xf32>
    %9 = arith.divf %7, %8 : vector<1x32xf32>
    %10 = vector.broadcast %9 : vector<1x32xf32> to vector<2x32xf32>
    %11 = arith.subf %5, %10 : vector<2x32xf32>
    %12 = arith.mulf %11, %11 : vector<2x32xf32>
    %cst_7 = arith.constant dense<0.000000e+00> : vector<32xf32>
    %13 = vector.multi_reduction <add>, %12, %cst_7 [0] : vector<2x32xf32> to vector<32xf32>
    %14 = vector.shape_cast %13 : vector<32xf32> to vector<1x32xf32>
    %cst_8 = arith.constant 2.000000e+00 : f32
    %15 = vector.broadcast %cst_8 : f32 to vector<1x32xf32>
    %16 = arith.divf %14, %15 : vector<1x32xf32>
    %17 = vector.broadcast %9 : vector<1x32xf32> to vector<2x32xf32>
    %18 = arith.subf %5, %17 : vector<2x32xf32>
    %cst_9 = arith.constant 9.99999974E-6 : f32
    %19 = vector.broadcast %cst_9 : f32 to vector<1x32xf32>
    %20 = arith.addf %16, %19 : vector<1x32xf32>
    %21 = math.rsqrt %20 : vector<1x32xf32>
    %22 = vector.broadcast %21 : vector<1x32xf32> to vector<2x32xf32>
    %23 = arith.mulf %18, %22 : vector<2x32xf32>
    %c0_10 = arith.constant 0 : index
    %c0_11 = arith.constant 0 : index
    %24 = vector.load %arg3[%c0_10, %c0_11] : memref<1x32xf32, #tpu.memory_space<vmem>>, vector<1x32xf32>
    %25 = vector.broadcast %24 : vector<1x32xf32> to vector<2x32xf32>
    %26 = arith.mulf %23, %25 : vector<2x32xf32>
    %c0_12 = arith.constant 0 : index
    %c0_13 = arith.constant 0 : index
    %27 = vector.load %arg4[%c0_12, %c0_13] : memref<1x32xf32, #tpu.memory_space<vmem>>, vector<1x32xf32>
    %28 = vector.broadcast %27 : vector<1x32xf32> to vector<2x32xf32>
    %29 = arith.addf %26, %28 : vector<2x32xf32>
    %cst_14 = arith.constant 0.000000e+00 : f32
    %30 = vector.broadcast %cst_14 : f32 to vector<2x32xf32>
    %31 = arith.maximumf %29, %30 : vector<2x32xf32>
    %c0_15 = arith.constant 0 : index
    %c0_16 = arith.constant 0 : index
    %32 = vector.load %arg5[%c0_15, %c0_16] : memref<32x128xf32, #tpu.memory_space<vmem>>, vector<32x128xf32>
    %cst_17 = arith.constant dense<0.000000e+00> : vector<2x128xf32>
    %33 = tpu.matmul %31, %32, %cst_17 {dimension_numbers = #tpu.dot_dimension_numbers<[1], [0], [0], [1], [0, 0, 1, 1], [], []>} : vector<2x32xf32>, vector<32x128xf32>, vector<2x128xf32> -> vector<2x128xf32>
    %c0_18 = arith.constant 0 : index
    %c0_19 = arith.constant 0 : index
    %34 = vector.load %arg6[%c0_18, %c0_19] : memref<1x128xf32, #tpu.memory_space<vmem>>, vector<1x128xf32>
    %35 = vector.broadcast %34 : vector<1x128xf32> to vector<2x128xf32>
    %36 = arith.addf %33, %35 : vector<2x128xf32>
    %cst_20 = arith.constant dense<0.000000e+00> : vector<128xf32>
    %37 = vector.multi_reduction <add>, %36, %cst_20 [0] : vector<2x128xf32> to vector<128xf32>
    %38 = vector.shape_cast %37 : vector<128xf32> to vector<1x128xf32>
    %cst_21 = arith.constant 2.000000e+00 : f32
    %39 = vector.broadcast %cst_21 : f32 to vector<1x128xf32>
    %40 = arith.divf %38, %39 : vector<1x128xf32>
    %41 = vector.broadcast %40 : vector<1x128xf32> to vector<2x128xf32>
    %42 = arith.subf %36, %41 : vector<2x128xf32>
    %43 = arith.mulf %42, %42 : vector<2x128xf32>
    %cst_22 = arith.constant dense<0.000000e+00> : vector<128xf32>
    %44 = vector.multi_reduction <add>, %43, %cst_22 [0] : vector<2x128xf32> to vector<128xf32>
    %45 = vector.shape_cast %44 : vector<128xf32> to vector<1x128xf32>
    %cst_23 = arith.constant 2.000000e+00 : f32
    %46 = vector.broadcast %cst_23 : f32 to vector<1x128xf32>
    %47 = arith.divf %45, %46 : vector<1x128xf32>
    %48 = vector.broadcast %40 : vector<1x128xf32> to vector<2x128xf32>
    %49 = arith.subf %36, %48 : vector<2x128xf32>
    %cst_24 = arith.constant 9.99999974E-6 : f32
    %50 = vector.broadcast %cst_24 : f32 to vector<1x128xf32>
    %51 = arith.addf %47, %50 : vector<1x128xf32>
    %52 = math.rsqrt %51 : vector<1x128xf32>
    %53 = vector.broadcast %52 : vector<1x128xf32> to vector<2x128xf32>
    %54 = arith.mulf %49, %53 : vector<2x128xf32>
    %c0_25 = arith.constant 0 : index
    %c0_26 = arith.constant 0 : index
    %55 = vector.load %arg7[%c0_25, %c0_26] : memref<1x128xf32, #tpu.memory_space<vmem>>, vector<1x128xf32>
    %56 = vector.broadcast %55 : vector<1x128xf32> to vector<2x128xf32>
    %57 = arith.mulf %54, %56 : vector<2x128xf32>
    %c0_27 = arith.constant 0 : index
    %c0_28 = arith.constant 0 : index
    %58 = vector.load %arg8[%c0_27, %c0_28] : memref<1x128xf32, #tpu.memory_space<vmem>>, vector<1x128xf32>
    %59 = vector.broadcast %58 : vector<1x128xf32> to vector<2x128xf32>
    %60 = arith.addf %57, %59 : vector<2x128xf32>
    %61 = vector.extract_strided_slice %60 {offsets = [0, 0], sizes = [1, 16], strides = [1, 1]} : vector<2x128xf32> to vector<1x16xf32>
    %c0_29 = arith.constant 0 : index
    %c0_30 = arith.constant 0 : index
    %62 = vector.load %arg22[%c0_29, %c0_30] : memref<16x16xf32, #tpu.memory_space<vmem>>, vector<1x16xf32>
    tpu.vector_store %arg22[%c0_29, %c0_30], %61 {strides = array<i32>} : memref<16x16xf32, #tpu.memory_space<vmem>>, vector<1x16xf32>,
    %63 = vector.extract_strided_slice %60 {offsets = [0, 16], sizes = [1, 16], strides = [1, 1]} : vector<2x128xf32> to vector<1x16xf32>
    %c1 = arith.constant 1 : index
    %c0_31 = arith.constant 0 : index
    %64 = vector.load %arg22[%c1, %c0_31] : memref<16x16xf32, #tpu.memory_space<vmem>>, vector<1x16xf32>
    tpu.vector_store %arg22[%c1, %c0_31], %63 {strides = array<i32>} : memref<16x16xf32, #tpu.memory_space<vmem>>, vector<1x16xf32>,
    %65 = vector.extract_strided_slice %60 {offsets = [0, 32], sizes = [1, 16], strides = [1, 1]} : vector<2x128xf32> to vector<1x16xf32>
    %c2 = arith.constant 2 : index
    %c0_32 = arith.constant 0 : index
    %66 = vector.load %arg22[%c2, %c0_32] : memref<16x16xf32, #tpu.memory_space<vmem>>, vector<1x16xf32>
    tpu.vector_store %arg22[%c2, %c0_32], %65 {strides = array<i32>} : memref<16x16xf32, #tpu.memory_space<vmem>>, vector<1x16xf32>,
    %67 = vector.extract_strided_slice %60 {offsets = [0, 48], sizes = [1, 16], strides = [1, 1]} : vector<2x128xf32> to vector<1x16xf32>
    %c3 = arith.constant 3 : index
    %c0_33 = arith.constant 0 : index
    %68 = vector.load %arg22[%c3, %c0_33] : memref<16x16xf32, #tpu.memory_space<vmem>>, vector<1x16xf32>
    tpu.vector_store %arg22[%c3, %c0_33], %67 {strides = array<i32>} : memref<16x16xf32, #tpu.memory_space<vmem>>, vector<1x16xf32>,
    %69 = vector.extract_strided_slice %60 {offsets = [0, 64], sizes = [1, 16], strides = [1, 1]} : vector<2x128xf32> to vector<1x16xf32>
    %c4 = arith.constant 4 : index
    %c0_34 = arith.constant 0 : index
    %70 = vector.load %arg22[%c4, %c0_34] : memref<16x16xf32, #tpu.memory_space<vmem>>, vector<1x16xf32>
    tpu.vector_store %arg22[%c4, %c0_34], %69 {strides = array<i32>} : memref<16x16xf32, #tpu.memory_space<vmem>>, vector<1x16xf32>,
    %71 = vector.extract_strided_slice %60 {offsets = [0, 80], sizes = [1, 16], strides = [1, 1]} : vector<2x128xf32> to vector<1x16xf32>
    %c5 = arith.constant 5 : index
    %c0_35 = arith.constant 0 : index
    %72 = vector.load %arg22[%c5, %c0_35] : memref<16x16xf32, #tpu.memory_space<vmem>>, vector<1x16xf32>
    tpu.vector_store %arg22[%c5, %c0_35], %71 {strides = array<i32>} : memref<16x16xf32, #tpu.memory_space<vmem>>, vector<1x16xf32>,
    %73 = vector.extract_strided_slice %60 {offsets = [0, 96], sizes = [1, 16], strides = [1, 1]} : vector<2x128xf32> to vector<1x16xf32>
    %c6 = arith.constant 6 : index
    %c0_36 = arith.constant 0 : index
    %74 = vector.load %arg22[%c6, %c0_36] : memref<16x16xf32, #tpu.memory_space<vmem>>, vector<1x16xf32>
    tpu.vector_store %arg22[%c6, %c0_36], %73 {strides = array<i32>} : memref<16x16xf32, #tpu.memory_space<vmem>>, vector<1x16xf32>,
    %75 = vector.extract_strided_slice %60 {offsets = [0, 112], sizes = [1, 16], strides = [1, 1]} : vector<2x128xf32> to vector<1x16xf32>
    %c7 = arith.constant 7 : index
    %c0_37 = arith.constant 0 : index
    %76 = vector.load %arg22[%c7, %c0_37] : memref<16x16xf32, #tpu.memory_space<vmem>>, vector<1x16xf32>
    tpu.vector_store %arg22[%c7, %c0_37], %75 {strides = array<i32>} : memref<16x16xf32, #tpu.memory_space<vmem>>, vector<1x16xf32>,
    %77 = vector.extract_strided_slice %60 {offsets = [1, 0], sizes = [1, 16], strides = [1, 1]} : vector<2x128xf32> to vector<1x16xf32>
    %c8 = arith.constant 8 : index
    %c0_38 = arith.constant 0 : index
    %78 = vector.load %arg22[%c8, %c0_38] : memref<16x16xf32, #tpu.memory_space<vmem>>, vector<1x16xf32>
    tpu.vector_store %arg22[%c8, %c0_38], %77 {strides = array<i32>} : memref<16x16xf32, #tpu.memory_space<vmem>>, vector<1x16xf32>,
    %79 = vector.extract_strided_slice %60 {offsets = [1, 16], sizes = [1, 16], strides = [1, 1]} : vector<2x128xf32> to vector<1x16xf32>
    %c9 = arith.constant 9 : index
    %c0_39 = arith.constant 0 : index
    %80 = vector.load %arg22[%c9, %c0_39] : memref<16x16xf32, #tpu.memory_space<vmem>>, vector<1x16xf32>
    tpu.vector_store %arg22[%c9, %c0_39], %79 {strides = array<i32>} : memref<16x16xf32, #tpu.memory_space<vmem>>, vector<1x16xf32>,
    %81 = vector.extract_strided_slice %60 {offsets = [1, 32], sizes = [1, 16], strides = [1, 1]} : vector<2x128xf32> to vector<1x16xf32>
    %c10 = arith.constant 10 : index
    %c0_40 = arith.constant 0 : index
    %82 = vector.load %arg22[%c10, %c0_40] : memref<16x16xf32, #tpu.memory_space<vmem>>, vector<1x16xf32>
    tpu.vector_store %arg22[%c10, %c0_40], %81 {strides = array<i32>} : memref<16x16xf32, #tpu.memory_space<vmem>>, vector<1x16xf32>,
    %83 = vector.extract_strided_slice %60 {offsets = [1, 48], sizes = [1, 16], strides = [1, 1]} : vector<2x128xf32> to vector<1x16xf32>
    %c11 = arith.constant 11 : index
    %c0_41 = arith.constant 0 : index
    %84 = vector.load %arg22[%c11, %c0_41] : memref<16x16xf32, #tpu.memory_space<vmem>>, vector<1x16xf32>
    tpu.vector_store %arg22[%c11, %c0_41], %83 {strides = array<i32>} : memref<16x16xf32, #tpu.memory_space<vmem>>, vector<1x16xf32>,
    %85 = vector.extract_strided_slice %60 {offsets = [1, 64], sizes = [1, 16], strides = [1, 1]} : vector<2x128xf32> to vector<1x16xf32>
    %c12 = arith.constant 12 : index
    %c0_42 = arith.constant 0 : index
    %86 = vector.load %arg22[%c12, %c0_42] : memref<16x16xf32, #tpu.memory_space<vmem>>, vector<1x16xf32>
    tpu.vector_store %arg22[%c12, %c0_42], %85 {strides = array<i32>} : memref<16x16xf32, #tpu.memory_space<vmem>>, vector<1x16xf32>,
    %87 = vector.extract_strided_slice %60 {offsets = [1, 80], sizes = [1, 16], strides = [1, 1]} : vector<2x128xf32> to vector<1x16xf32>
    %c13 = arith.constant 13 : index
    %c0_43 = arith.constant 0 : index
    %88 = vector.load %arg22[%c13, %c0_43] : memref<16x16xf32, #tpu.memory_space<vmem>>, vector<1x16xf32>
    tpu.vector_store %arg22[%c13, %c0_43], %87 {strides = array<i32>} : memref<16x16xf32, #tpu.memory_space<vmem>>, vector<1x16xf32>,
    %89 = vector.extract_strided_slice %60 {offsets = [1, 96], sizes = [1, 16], strides = [1, 1]} : vector<2x128xf32> to vector<1x16xf32>
    %c14 = arith.constant 14 : index
    %c0_44 = arith.constant 0 : index
    %90 = vector.load %arg22[%c14, %c0_44] : memref<16x16xf32, #tpu.memory_space<vmem>>, vector<1x16xf32>
    tpu.vector_store %arg22[%c14, %c0_44], %89 {strides = array<i32>} : memref<16x16xf32, #tpu.memory_space<vmem>>, vector<1x16xf32>,
    %91 = vector.extract_strided_slice %60 {offsets = [1, 112], sizes = [1, 16], strides = [1, 1]} : vector<2x128xf32> to vector<1x16xf32>
    %c15 = arith.constant 15 : index
    %c0_45 = arith.constant 0 : index
    %92 = vector.load %arg22[%c15, %c0_45] : memref<16x16xf32, #tpu.memory_space<vmem>>, vector<1x16xf32>
    tpu.vector_store %arg22[%c15, %c0_45], %91 {strides = array<i32>} : memref<16x16xf32, #tpu.memory_space<vmem>>, vector<1x16xf32>,
    %c0_46 = arith.constant 0 : index
    %c0_47 = arith.constant 0 : index
    %93 = vector.load %arg22[%c0_46, %c0_47] : memref<16x16xf32, #tpu.memory_space<vmem>>, vector<16x16xf32>
    %c0_48 = arith.constant 0 : index
    %c0_49 = arith.constant 0 : index
    %94 = vector.load %arg9[%c0_48, %c0_49] : memref<16x64xf32, #tpu.memory_space<vmem>>, vector<16x64xf32>
    %cst_50 = arith.constant dense<0.000000e+00> : vector<16x64xf32>
    %95 = tpu.matmul %93, %94, %cst_50 {dimension_numbers = #tpu.dot_dimension_numbers<[1], [0], [0], [1], [0, 0, 1, 1], [], []>} : vector<16x16xf32>, vector<16x64xf32>, vector<16x64xf32> -> vector<16x64xf32>
    %cst_51 = arith.constant 0.000000e+00 : f32
    %96 = vector.broadcast %cst_51 : f32 to vector<16x320xf32>
    %c0_52 = arith.constant 0 : index
    %c0_53 = arith.constant 0 : index
    %97 = vector.load %arg23[%c0_52, %c0_53] : memref<16x320xf32, #tpu.memory_space<vmem>>, vector<16x320xf32>
    tpu.vector_store %arg23[%c0_52, %c0_53], %96 {strides = array<i32>} : memref<16x320xf32, #tpu.memory_space<vmem>>, vector<16x320xf32>,
    %c0_54 = arith.constant 0 : index
    %c128 = arith.constant 128 : index
    %98 = vector.load %arg23[%c0_54, %c128] : memref<16x320xf32, #tpu.memory_space<vmem>>, vector<16x64xf32>
    tpu.vector_store %arg23[%c0_54, %c128], %95 {strides = array<i32>} : memref<16x320xf32, #tpu.memory_space<vmem>>, vector<16x64xf32>,
    %c0_55 = arith.constant 0 : index
    %c119 = arith.constant 119 : index
    %99 = vector.load %arg23[%c0_55, %c119] : memref<16x320xf32, #tpu.memory_space<vmem>>, vector<16x64xf32>
    %c0_56 = arith.constant 0 : index
    %c0_57 = arith.constant 0 : index
    %100 = vector.load %arg12[%c0_56, %c0_57] : memref<9x64xf32, #tpu.memory_space<vmem>>, vector<1x64xf32>
    %101 = vector.broadcast %100 : vector<1x64xf32> to vector<16x64xf32>
    %102 = arith.mulf %99, %101 : vector<16x64xf32>
    %c0_58 = arith.constant 0 : index
    %c120 = arith.constant 120 : index
    %103 = vector.load %arg23[%c0_58, %c120] : memref<16x320xf32, #tpu.memory_space<vmem>>, vector<16x64xf32>
    %c1_59 = arith.constant 1 : index
    %c0_60 = arith.constant 0 : index
    %104 = vector.load %arg12[%c1_59, %c0_60] : memref<9x64xf32, #tpu.memory_space<vmem>>, vector<1x64xf32>
    %105 = vector.broadcast %104 : vector<1x64xf32> to vector<16x64xf32>
    %106 = arith.mulf %103, %105 : vector<16x64xf32>
    %c0_61 = arith.constant 0 : index
    %c121 = arith.constant 121 : index
    %107 = vector.load %arg23[%c0_61, %c121] : memref<16x320xf32, #tpu.memory_space<vmem>>, vector<16x64xf32>
    %c2_62 = arith.constant 2 : index
    %c0_63 = arith.constant 0 : index
    %108 = vector.load %arg12[%c2_62, %c0_63] : memref<9x64xf32, #tpu.memory_space<vmem>>, vector<1x64xf32>
    %109 = vector.broadcast %108 : vector<1x64xf32> to vector<16x64xf32>
    %110 = arith.mulf %107, %109 : vector<16x64xf32>
    %c0_64 = arith.constant 0 : index
    %c127 = arith.constant 127 : index
    %111 = vector.load %arg23[%c0_64, %c127] : memref<16x320xf32, #tpu.memory_space<vmem>>, vector<16x64xf32>
    %c3_65 = arith.constant 3 : index
    %c0_66 = arith.constant 0 : index
    %112 = vector.load %arg12[%c3_65, %c0_66] : memref<9x64xf32, #tpu.memory_space<vmem>>, vector<1x64xf32>
    %113 = vector.broadcast %112 : vector<1x64xf32> to vector<16x64xf32>
    %114 = arith.mulf %111, %113 : vector<16x64xf32>
    %c0_67 = arith.constant 0 : index
    %c128_68 = arith.constant 128 : index
    %115 = vector.load %arg23[%c0_67, %c128_68] : memref<16x320xf32, #tpu.memory_space<vmem>>, vector<16x64xf32>
    %c4_69 = arith.constant 4 : index
    %c0_70 = arith.constant 0 : index
    %116 = vector.load %arg12[%c4_69, %c0_70] : memref<9x64xf32, #tpu.memory_space<vmem>>, vector<1x64xf32>
    %117 = vector.broadcast %116 : vector<1x64xf32> to vector<16x64xf32>
    %118 = arith.mulf %115, %117 : vector<16x64xf32>
    %c0_71 = arith.constant 0 : index
    %c129 = arith.constant 129 : index
    %119 = vector.load %arg23[%c0_71, %c129] : memref<16x320xf32, #tpu.memory_space<vmem>>, vector<16x64xf32>
    %c5_72 = arith.constant 5 : index
    %c0_73 = arith.constant 0 : index
    %120 = vector.load %arg12[%c5_72, %c0_73] : memref<9x64xf32, #tpu.memory_space<vmem>>, vector<1x64xf32>
    %121 = vector.broadcast %120 : vector<1x64xf32> to vector<16x64xf32>
    %122 = arith.mulf %119, %121 : vector<16x64xf32>
    %c0_74 = arith.constant 0 : index
    %c135 = arith.constant 135 : index
    %123 = vector.load %arg23[%c0_74, %c135] : memref<16x320xf32, #tpu.memory_space<vmem>>, vector<16x64xf32>
    %c6_75 = arith.constant 6 : index
    %c0_76 = arith.constant 0 : index
    %124 = vector.load %arg12[%c6_75, %c0_76] : memref<9x64xf32, #tpu.memory_space<vmem>>, vector<1x64xf32>
    %125 = vector.broadcast %124 : vector<1x64xf32> to vector<16x64xf32>
    %126 = arith.mulf %123, %125 : vector<16x64xf32>
    %c0_77 = arith.constant 0 : index
    %c136 = arith.constant 136 : index
    %127 = vector.load %arg23[%c0_77, %c136] : memref<16x320xf32, #tpu.memory_space<vmem>>, vector<16x64xf32>
    %c7_78 = arith.constant 7 : index
    %c0_79 = arith.constant 0 : index
    %128 = vector.load %arg12[%c7_78, %c0_79] : memref<9x64xf32, #tpu.memory_space<vmem>>, vector<1x64xf32>
    %129 = vector.broadcast %128 : vector<1x64xf32> to vector<16x64xf32>
    %130 = arith.mulf %127, %129 : vector<16x64xf32>
    %c0_80 = arith.constant 0 : index
    %c137 = arith.constant 137 : index
    %131 = vector.load %arg23[%c0_80, %c137] : memref<16x320xf32, #tpu.memory_space<vmem>>, vector<16x64xf32>
    %c8_81 = arith.constant 8 : index
    %c0_82 = arith.constant 0 : index
    %132 = vector.load %arg12[%c8_81, %c0_82] : memref<9x64xf32, #tpu.memory_space<vmem>>, vector<1x64xf32>
    %133 = vector.broadcast %132 : vector<1x64xf32> to vector<16x64xf32>
    %134 = arith.mulf %131, %133 : vector<16x64xf32>
    %135 = tpu.concatenate %102, %106, %110, %114, %118, %122, %126, %130, %134 in 0 : vector<16x64xf32>, vector<16x64xf32>, vector<16x64xf32>, vector<16x64xf32>, vector<16x64xf32>, vector<16x64xf32>, vector<16x64xf32>, vector<16x64xf32>, vector<16x64xf32> -> vector<144x64xf32>
    %c0_83 = arith.constant 0 : index
    %c0_84 = arith.constant 0 : index
    %136 = vector.load %arg10[%c0_83, %c0_84] : memref<16x144xf32, #tpu.memory_space<vmem>>, vector<16x144xf32>
    %cst_85 = arith.constant dense<0.000000e+00> : vector<16x64xf32>
    %137 = tpu.matmul %136, %135, %cst_85 {dimension_numbers = #tpu.dot_dimension_numbers<[1], [0], [0], [1], [0, 0, 1, 1], [], []>} : vector<16x144xf32>, vector<144x64xf32>, vector<16x64xf32> -> vector<16x64xf32>
    %c0_86 = arith.constant 0 : index
    %c0_87 = arith.constant 0 : index
    %138 = vector.load %arg11[%c0_86, %c0_87] : memref<16x1xf32, #tpu.memory_space<vmem>>, vector<16x1xf32>
    %139 = vector.broadcast %138 : vector<16x1xf32> to vector<16x64xf32>
    %140 = arith.addf %137, %139 : vector<16x64xf32>
    %cst_88 = arith.constant 0.000000e+00 : f32
    %141 = vector.broadcast %cst_88 : f32 to vector<16x64xf32>
    %142 = arith.maximumf %140, %141 : vector<16x64xf32>
    %c0_89 = arith.constant 0 : index
    %c0_90 = arith.constant 0 : index
    %143 = vector.load %arg13[%c0_89, %c0_90] : memref<64x256xf32, #tpu.memory_space<vmem>>, vector<64x256xf32>
    %cst_91 = arith.constant dense<0.000000e+00> : vector<16x256xf32>
    %144 = tpu.matmul %142, %143, %cst_91 {dimension_numbers = #tpu.dot_dimension_numbers<[1], [0], [0], [1], [0, 0, 1, 1], [], []>} : vector<16x64xf32>, vector<64x256xf32>, vector<16x256xf32> -> vector<16x256xf32>
    %cst_92 = arith.constant 0.000000e+00 : f32
    %145 = vector.broadcast %cst_92 : f32 to vector<16x512xf32>
    %c0_93 = arith.constant 0 : index
    %c0_94 = arith.constant 0 : index
    %146 = vector.load %arg24[%c0_93, %c0_94] : memref<16x512xf32, #tpu.memory_space<vmem>>, vector<16x512xf32>
    tpu.vector_store %arg24[%c0_93, %c0_94], %145 {strides = array<i32>} : memref<16x512xf32, #tpu.memory_space<vmem>>, vector<16x512xf32>,
    %c0_95 = arith.constant 0 : index
    %c128_96 = arith.constant 128 : index
    %147 = vector.load %arg24[%c0_95, %c128_96] : memref<16x512xf32, #tpu.memory_space<vmem>>, vector<16x256xf32>
    tpu.vector_store %arg24[%c0_95, %c128_96], %144 {strides = array<i32>} : memref<16x512xf32, #tpu.memory_space<vmem>>, vector<16x256xf32>,
    %c0_97 = arith.constant 0 : index
    %c111 = arith.constant 111 : index
    %148 = vector.load %arg24[%c0_97, %c111] : memref<16x512xf32, #tpu.memory_space<vmem>>, vector<16x256xf32>
    %c0_98 = arith.constant 0 : index
    %c0_99 = arith.constant 0 : index
    %149 = vector.load %arg16[%c0_98, %c0_99] : memref<9x256xf32, #tpu.memory_space<vmem>>, vector<1x256xf32>
    %150 = vector.broadcast %149 : vector<1x256xf32> to vector<16x256xf32>
    %151 = arith.mulf %148, %150 : vector<16x256xf32>
    %c0_100 = arith.constant 0 : index
    %c112 = arith.constant 112 : index
    %152 = vector.load %arg24[%c0_100, %c112] : memref<16x512xf32, #tpu.memory_space<vmem>>, vector<16x256xf32>
    %c1_101 = arith.constant 1 : index
    %c0_102 = arith.constant 0 : index
    %153 = vector.load %arg16[%c1_101, %c0_102] : memref<9x256xf32, #tpu.memory_space<vmem>>, vector<1x256xf32>
    %154 = vector.broadcast %153 : vector<1x256xf32> to vector<16x256xf32>
    %155 = arith.mulf %152, %154 : vector<16x256xf32>
    %c0_103 = arith.constant 0 : index
    %c113 = arith.constant 113 : index
    %156 = vector.load %arg24[%c0_103, %c113] : memref<16x512xf32, #tpu.memory_space<vmem>>, vector<16x256xf32>
    %c2_104 = arith.constant 2 : index
    %c0_105 = arith.constant 0 : index
    %157 = vector.load %arg16[%c2_104, %c0_105] : memref<9x256xf32, #tpu.memory_space<vmem>>, vector<1x256xf32>
    %158 = vector.broadcast %157 : vector<1x256xf32> to vector<16x256xf32>
    %159 = arith.mulf %156, %158 : vector<16x256xf32>
    %c0_106 = arith.constant 0 : index
    %c127_107 = arith.constant 127 : index
    %160 = vector.load %arg24[%c0_106, %c127_107] : memref<16x512xf32, #tpu.memory_space<vmem>>, vector<16x256xf32>
    %c3_108 = arith.constant 3 : index
    %c0_109 = arith.constant 0 : index
    %161 = vector.load %arg16[%c3_108, %c0_109] : memref<9x256xf32, #tpu.memory_space<vmem>>, vector<1x256xf32>
    %162 = vector.broadcast %161 : vector<1x256xf32> to vector<16x256xf32>
    %163 = arith.mulf %160, %162 : vector<16x256xf32>
    %c0_110 = arith.constant 0 : index
    %c128_111 = arith.constant 128 : index
    %164 = vector.load %arg24[%c0_110, %c128_111] : memref<16x512xf32, #tpu.memory_space<vmem>>, vector<16x256xf32>
    %c4_112 = arith.constant 4 : index
    %c0_113 = arith.constant 0 : index
    %165 = vector.load %arg16[%c4_112, %c0_113] : memref<9x256xf32, #tpu.memory_space<vmem>>, vector<1x256xf32>
    %166 = vector.broadcast %165 : vector<1x256xf32> to vector<16x256xf32>
    %167 = arith.mulf %164, %166 : vector<16x256xf32>
    %c0_114 = arith.constant 0 : index
    %c129_115 = arith.constant 129 : index
    %168 = vector.load %arg24[%c0_114, %c129_115] : memref<16x512xf32, #tpu.memory_space<vmem>>, vector<16x256xf32>
    %c5_116 = arith.constant 5 : index
    %c0_117 = arith.constant 0 : index
    %169 = vector.load %arg16[%c5_116, %c0_117] : memref<9x256xf32, #tpu.memory_space<vmem>>, vector<1x256xf32>
    %170 = vector.broadcast %169 : vector<1x256xf32> to vector<16x256xf32>
    %171 = arith.mulf %168, %170 : vector<16x256xf32>
    %c0_118 = arith.constant 0 : index
    %c143 = arith.constant 143 : index
    %172 = vector.load %arg24[%c0_118, %c143] : memref<16x512xf32, #tpu.memory_space<vmem>>, vector<16x256xf32>
    %c6_119 = arith.constant 6 : index
    %c0_120 = arith.constant 0 : index
    %173 = vector.load %arg16[%c6_119, %c0_120] : memref<9x256xf32, #tpu.memory_space<vmem>>, vector<1x256xf32>
    %174 = vector.broadcast %173 : vector<1x256xf32> to vector<16x256xf32>
    %175 = arith.mulf %172, %174 : vector<16x256xf32>
    %c0_121 = arith.constant 0 : index
    %c144 = arith.constant 144 : index
    %176 = vector.load %arg24[%c0_121, %c144] : memref<16x512xf32, #tpu.memory_space<vmem>>, vector<16x256xf32>
    %c7_122 = arith.constant 7 : index
    %c0_123 = arith.constant 0 : index
    %177 = vector.load %arg16[%c7_122, %c0_123] : memref<9x256xf32, #tpu.memory_space<vmem>>, vector<1x256xf32>
    %178 = vector.broadcast %177 : vector<1x256xf32> to vector<16x256xf32>
    %179 = arith.mulf %176, %178 : vector<16x256xf32>
    %c0_124 = arith.constant 0 : index
    %c145 = arith.constant 145 : index
    %180 = vector.load %arg24[%c0_124, %c145] : memref<16x512xf32, #tpu.memory_space<vmem>>, vector<16x256xf32>
    %c8_125 = arith.constant 8 : index
    %c0_126 = arith.constant 0 : index
    %181 = vector.load %arg16[%c8_125, %c0_126] : memref<9x256xf32, #tpu.memory_space<vmem>>, vector<1x256xf32>
    %182 = vector.broadcast %181 : vector<1x256xf32> to vector<16x256xf32>
    %183 = arith.mulf %180, %182 : vector<16x256xf32>
    %184 = tpu.concatenate %151, %155, %159, %163, %167, %171, %175, %179, %183 in 0 : vector<16x256xf32>, vector<16x256xf32>, vector<16x256xf32>, vector<16x256xf32>, vector<16x256xf32>, vector<16x256xf32>, vector<16x256xf32>, vector<16x256xf32>, vector<16x256xf32> -> vector<144x256xf32>
    %c0_127 = arith.constant 0 : index
    %c0_128 = arith.constant 0 : index
    %185 = vector.load %arg14[%c0_127, %c0_128] : memref<8x144xf32, #tpu.memory_space<vmem>>, vector<8x144xf32>
    %cst_129 = arith.constant dense<0.000000e+00> : vector<8x256xf32>
    %186 = tpu.matmul %185, %184, %cst_129 {dimension_numbers = #tpu.dot_dimension_numbers<[1], [0], [0], [1], [0, 0, 1, 1], [], []>} : vector<8x144xf32>, vector<144x256xf32>, vector<8x256xf32> -> vector<8x256xf32>
    %c0_130 = arith.constant 0 : index
    %c0_131 = arith.constant 0 : index
    %187 = vector.load %arg15[%c0_130, %c0_131] : memref<8x1xf32, #tpu.memory_space<vmem>>, vector<8x1xf32>
    %188 = vector.broadcast %187 : vector<8x1xf32> to vector<8x256xf32>
    %189 = arith.addf %186, %188 : vector<8x256xf32>
    %cst_132 = arith.constant 0.000000e+00 : f32
    %190 = vector.broadcast %cst_132 : f32 to vector<8x256xf32>
    %191 = arith.maximumf %189, %190 : vector<8x256xf32>
    %c0_133 = arith.constant 0 : index
    %c0_134 = arith.constant 0 : index
    %192 = vector.load %arg17[%c0_133, %c0_134] : memref<256x1024xf32, #tpu.memory_space<vmem>>, vector<256x1024xf32>
    %cst_135 = arith.constant dense<0.000000e+00> : vector<8x1024xf32>
    %193 = tpu.matmul %191, %192, %cst_135 {dimension_numbers = #tpu.dot_dimension_numbers<[1], [0], [0], [1], [0, 0, 1, 1], [], []>} : vector<8x256xf32>, vector<256x1024xf32>, vector<8x1024xf32> -> vector<8x1024xf32>
    %cst_136 = arith.constant 0.000000e+00 : f32
    %194 = vector.broadcast %cst_136 : f32 to vector<8x1280xf32>
    %c0_137 = arith.constant 0 : index
    %c0_138 = arith.constant 0 : index
    %195 = vector.load %arg25[%c0_137, %c0_138] : memref<8x1280xf32, #tpu.memory_space<vmem>>, vector<8x1280xf32>
    tpu.vector_store %arg25[%c0_137, %c0_138], %194 {strides = array<i32>} : memref<8x1280xf32, #tpu.memory_space<vmem>>, vector<8x1280xf32>,
    %c0_139 = arith.constant 0 : index
    %c128_140 = arith.constant 128 : index
    %196 = vector.load %arg25[%c0_139, %c128_140] : memref<8x1280xf32, #tpu.memory_space<vmem>>, vector<8x1024xf32>
    tpu.vector_store %arg25[%c0_139, %c128_140], %193 {strides = array<i32>} : memref<8x1280xf32, #tpu.memory_space<vmem>>, vector<8x1024xf32>,
    %c0_141 = arith.constant 0 : index
    %c95 = arith.constant 95 : index
    %197 = vector.load %arg25[%c0_141, %c95] : memref<8x1280xf32, #tpu.memory_space<vmem>>, vector<8x1024xf32>
    %c0_142 = arith.constant 0 : index
    %c0_143 = arith.constant 0 : index
    %198 = vector.load %arg20[%c0_142, %c0_143] : memref<9x1024xf32, #tpu.memory_space<vmem>>, vector<1x1024xf32>
    %199 = vector.broadcast %198 : vector<1x1024xf32> to vector<8x1024xf32>
    %200 = arith.mulf %197, %199 : vector<8x1024xf32>
    %c0_144 = arith.constant 0 : index
    %c96 = arith.constant 96 : index
    %201 = vector.load %arg25[%c0_144, %c96] : memref<8x1280xf32, #tpu.memory_space<vmem>>, vector<8x1024xf32>
    %c1_145 = arith.constant 1 : index
    %c0_146 = arith.constant 0 : index
    %202 = vector.load %arg20[%c1_145, %c0_146] : memref<9x1024xf32, #tpu.memory_space<vmem>>, vector<1x1024xf32>
    %203 = vector.broadcast %202 : vector<1x1024xf32> to vector<8x1024xf32>
    %204 = arith.mulf %201, %203 : vector<8x1024xf32>
    %c0_147 = arith.constant 0 : index
    %c97 = arith.constant 97 : index
    %205 = vector.load %arg25[%c0_147, %c97] : memref<8x1280xf32, #tpu.memory_space<vmem>>, vector<8x1024xf32>
    %c2_148 = arith.constant 2 : index
    %c0_149 = arith.constant 0 : index
    %206 = vector.load %arg20[%c2_148, %c0_149] : memref<9x1024xf32, #tpu.memory_space<vmem>>, vector<1x1024xf32>
    %207 = vector.broadcast %206 : vector<1x1024xf32> to vector<8x1024xf32>
    %208 = arith.mulf %205, %207 : vector<8x1024xf32>
    %c0_150 = arith.constant 0 : index
    %c127_151 = arith.constant 127 : index
    %209 = vector.load %arg25[%c0_150, %c127_151] : memref<8x1280xf32, #tpu.memory_space<vmem>>, vector<8x1024xf32>
    %c3_152 = arith.constant 3 : index
    %c0_153 = arith.constant 0 : index
    %210 = vector.load %arg20[%c3_152, %c0_153] : memref<9x1024xf32, #tpu.memory_space<vmem>>, vector<1x1024xf32>
    %211 = vector.broadcast %210 : vector<1x1024xf32> to vector<8x1024xf32>
    %212 = arith.mulf %209, %211 : vector<8x1024xf32>
    %c0_154 = arith.constant 0 : index
    %c128_155 = arith.constant 128 : index
    %213 = vector.load %arg25[%c0_154, %c128_155] : memref<8x1280xf32, #tpu.memory_space<vmem>>, vector<8x1024xf32>
    %c4_156 = arith.constant 4 : index
    %c0_157 = arith.constant 0 : index
    %214 = vector.load %arg20[%c4_156, %c0_157] : memref<9x1024xf32, #tpu.memory_space<vmem>>, vector<1x1024xf32>
    %215 = vector.broadcast %214 : vector<1x1024xf32> to vector<8x1024xf32>
    %216 = arith.mulf %213, %215 : vector<8x1024xf32>
    %c0_158 = arith.constant 0 : index
    %c129_159 = arith.constant 129 : index
    %217 = vector.load %arg25[%c0_158, %c129_159] : memref<8x1280xf32, #tpu.memory_space<vmem>>, vector<8x1024xf32>
    %c5_160 = arith.constant 5 : index
    %c0_161 = arith.constant 0 : index
    %218 = vector.load %arg20[%c5_160, %c0_161] : memref<9x1024xf32, #tpu.memory_space<vmem>>, vector<1x1024xf32>
    %219 = vector.broadcast %218 : vector<1x1024xf32> to vector<8x1024xf32>
    %220 = arith.mulf %217, %219 : vector<8x1024xf32>
    %c0_162 = arith.constant 0 : index
    %c159 = arith.constant 159 : index
    %221 = vector.load %arg25[%c0_162, %c159] : memref<8x1280xf32, #tpu.memory_space<vmem>>, vector<8x1024xf32>
    %c6_163 = arith.constant 6 : index
    %c0_164 = arith.constant 0 : index
    %222 = vector.load %arg20[%c6_163, %c0_164] : memref<9x1024xf32, #tpu.memory_space<vmem>>, vector<1x1024xf32>
    %223 = vector.broadcast %222 : vector<1x1024xf32> to vector<8x1024xf32>
    %224 = arith.mulf %221, %223 : vector<8x1024xf32>
    %c0_165 = arith.constant 0 : index
    %c160 = arith.constant 160 : index
    %225 = vector.load %arg25[%c0_165, %c160] : memref<8x1280xf32, #tpu.memory_space<vmem>>, vector<8x1024xf32>
    %c7_166 = arith.constant 7 : index
    %c0_167 = arith.constant 0 : index
    %226 = vector.load %arg20[%c7_166, %c0_167] : memref<9x1024xf32, #tpu.memory_space<vmem>>, vector<1x1024xf32>
    %227 = vector.broadcast %226 : vector<1x1024xf32> to vector<8x1024xf32>
    %228 = arith.mulf %225, %227 : vector<8x1024xf32>
    %c0_168 = arith.constant 0 : index
    %c161 = arith.constant 161 : index
    %229 = vector.load %arg25[%c0_168, %c161] : memref<8x1280xf32, #tpu.memory_space<vmem>>, vector<8x1024xf32>
    %c8_169 = arith.constant 8 : index
    %c0_170 = arith.constant 0 : index
    %230 = vector.load %arg20[%c8_169, %c0_170] : memref<9x1024xf32, #tpu.memory_space<vmem>>, vector<1x1024xf32>
    %231 = vector.broadcast %230 : vector<1x1024xf32> to vector<8x1024xf32>
    %232 = arith.mulf %229, %231 : vector<8x1024xf32>
    %233 = tpu.concatenate %200, %204, %208, %212, %216, %220, %224, %228, %232 in 0 : vector<8x1024xf32>, vector<8x1024xf32>, vector<8x1024xf32>, vector<8x1024xf32>, vector<8x1024xf32>, vector<8x1024xf32>, vector<8x1024xf32>, vector<8x1024xf32>, vector<8x1024xf32> -> vector<72x1024xf32>
    %c0_171 = arith.constant 0 : index
    %c0_172 = arith.constant 0 : index
    %234 = vector.load %arg18[%c0_171, %c0_172] : memref<6x72xf32, #tpu.memory_space<vmem>>, vector<6x72xf32>
    %cst_173 = arith.constant dense<0.000000e+00> : vector<6x1024xf32>
    %235 = tpu.matmul %234, %233, %cst_173 {dimension_numbers = #tpu.dot_dimension_numbers<[1], [0], [0], [1], [0, 0, 1, 1], [], []>} : vector<6x72xf32>, vector<72x1024xf32>, vector<6x1024xf32> -> vector<6x1024xf32>
    %c0_174 = arith.constant 0 : index
    %c0_175 = arith.constant 0 : index
    %236 = vector.load %arg19[%c0_174, %c0_175] : memref<6x1xf32, #tpu.memory_space<vmem>>, vector<6x1xf32>
    %237 = vector.broadcast %236 : vector<6x1xf32> to vector<6x1024xf32>
    %238 = arith.addf %235, %237 : vector<6x1024xf32>
    %c0_176 = arith.constant 0 : index
    %c0_177 = arith.constant 0 : index
    %239 = vector.load %arg21[%c0_176, %c0_177] : memref<6x1024xf32, #tpu.memory_space<vmem>>, vector<6x1024xf32>
    tpu.vector_store %arg21[%c0_176, %c0_177], %238 {strides = array<i32>} : memref<6x1024xf32, #tpu.memory_space<vmem>>, vector<6x1024xf32>,
    return
  }
}

</mosaic_0001>

<bundles_post_ra>
// kernel: tpu_custom_call.1
= control target key start
LH: loop header
LB: loop body
LE: loop exit
PB: predicated region body
PF: predicated region fallthrough
CT: control target
= control target key end

     0   :  { %s7452_s0 = inlined_call_operand.hbm [shape: f32[2,18], index: 0, kind: input, shape index: {}]   ;;  %s7453_s1 = inlined_call_operand.hbm [shape: f32[18,32], index: 1, kind: input, shape index: {}]   ;;  %s7454_s2 = inlined_call_operand.hbm [shape: f32[1,32], index: 2, kind: input, shape index: {}]   ;;  %s7455_s3 = inlined_call_operand.hbm [shape: f32[1,32], index: 3, kind: input, shape index: {}]   ;;  %s7456_s4 = inlined_call_operand.hbm [shape: f32[1,32], index: 4, kind: input, shape index: {}]   ;;  %s7457_s5 = inlined_call_operand.vmem [shape: f32[32,128], index: 5, kind: input, shape index: {}]   ;;  %s7458_s6 = inlined_call_operand.hbm [shape: f32[1,128], index: 6, kind: input, shape index: {}]   ;;  %s7459_s7 = inlined_call_operand.hbm [shape: f32[1,128], index: 7, kind: input, shape index: {}]   ;;  %s7460_s8 = inlined_call_operand.hbm [shape: f32[1,128], index: 8, kind: input, shape index: {}]   ;;  %s7461_s9 = inlined_call_operand.hbm [shape: f32[16,64], index: 9, kind: input, shape index: {}]   ;;  %s7462_s10 = inlined_call_operand.vmem [shape: f32[16,144], index: 10, kind: input, shape index: {}]   ;;  %s7463_s11 = inlined_call_operand.vmem [shape: f32[16,1], index: 11, kind: input, shape index: {}]   ;;  %s7464_s12 = inlined_call_operand.vmem [shape: f32[9,64], index: 12, kind: input, shape index: {}]   ;;  %s7465_s13 = inlined_call_operand.hbm [shape: f32[64,256], index: 13, kind: input, shape index: {}]   ;;  %s7466_s14 = inlined_call_operand.hbm [shape: f32[8,144], index: 14, kind: input, shape index: {}]   ;;  %s7467_s15 = inlined_call_operand.vmem [shape: f32[8,1], index: 15, kind: input, shape index: {}]   ;;  %s7468_s16 = inlined_call_operand.hbm [shape: f32[9,256], index: 16, kind: input, shape index: {}]   ;;  %s7469_s17 = inlined_call_operand.hbm [shape: f32[256,1024], index: 17, kind: input, shape index: {}]   ;;  %s7470_s18 = inlined_call_operand.vmem [shape: f32[6,72], index: 18, kind: input, shape index: {}]   ;;  %s7471_s19 = inlined_call_operand.vmem [shape: f32[6,1], index: 19, kind: input, shape index: {}]   ;;  %s7472_s20 = inlined_call_operand.hbm [shape: f32[9,1024], index: 20, kind: input, shape index: {}]   ;;  %s7473_s21 = inlined_call_operand.hbm [shape: f32[6,1024], index: 21, kind: output, shape index: {}]  }
   0x1   :  { %7515 = sst [smem:[#allocation72_spill]] %s7452_s0 }
   0x2   :  { %7516 = sst [smem:[#allocation73_spill]] %s7453_s1 }
   0x3   :  { %7517 = sst [smem:[#allocation74_spill]] %s7454_s2 }
   0x4   :  { %7518 = sst [smem:[#allocation75_spill]] %s7455_s3 }
   0x5   :  { %7519 = sst [smem:[#allocation76_spill]] %s7456_s4 }
   0x6   :  { %7520 = sst [smem:[#allocation77_spill]] %s7457_s5 }
   0x7   :  { %7521 = sst [smem:[#allocation78_spill]] %s7470_s18 }
   0x8   :  { %7522 = sst [smem:[#allocation79_spill]] %s7471_s19 }
   0x9   :  { %7523 = sst [smem:[#allocation80_spill]] %s7473_s21 }
   0xa   :  { %26 = vsyncpa [#allocation7], 0 }
   0xb   :  { %27 = vsyncpa [#allocation10], 0 }
   0xc   :  { %28 = vsyncpa [#allocation13], 0 }
   0xd   :  { %29 = vsyncpa [#allocation16], 0 }
   0xe   :  { %30 = vsyncpa [#allocation19], 0 }
   0xf   :  { %31 = vsyncpa [#allocation22], 0 }
  0x10   :  { %32 = vsyncpa [#allocation25], 0 }
  0x11   :  { %33 = vsyncpa [#allocation28], 0 }
  0x12   :  { %34 = vsyncpa [#allocation8], 0  ;;  %s5531_s2 = smov [#allocation9]   ;;  %s7524_s3 = sld [smem:[#allocation73_spill]] }
  0x13   :  { %s50_s25 = sshll.u32 %s5531_s2, 4  ;;  %s51_s25 = int_to_ptr.vmem [resolvable:$true] %s50_s25 }
  0x18   :  { %s5183_s28 = scalar_lea.hbm %s7524_s3, 384 }
  0x19   :  { %p5184_p0 = scmp.ne.s32.totalorder %s7524_s3, %s5183_s28  ;;  %p5187_p1 = scmp.lt.u32.totalorder %s5183_s28, %s7524_s3 }
  0x1b   :  { %p5189_p2 = pnand %p5187_p1, %p5184_p0 }
  0x1d   :  { %5192 = shalt.err (!%p5189_p2)
}
  0x1e   :  { %s5193_s5 = scalar_lea.vmem %s51_s25, 384  ;;  %p5198_p4 = scmp.lt.s32.totalorder %s51_s25, %s51_s25 }
  0x1f   :  { %p5194_p3 = scmp.ne.s32.totalorder %s51_s25, %s5193_s5  ;;  %p5199_p5 = scmp.lt.s32.totalorder %s5193_s5, %s5193_s5 }
  0x21   :  { %p5200_p6 = por %p5199_p5, %p5198_p4 }
  0x23   :  { %p5201_p7 = pnand %p5200_p6, %p5194_p3 }
  0x25   :  { %5204 = shalt.err (!%p5201_p7)
}
  0x26   :  { %s5532_s22 = smov 128   ;;  %s5533_s23 = smov 8  }
  0x27   :  { %56 = dma.hbm_to_vmem [thread:$0]  %s7524_s3, 384, %s51_s25, [#allocation10], %s5532_s22, %s5532_s22, %s5533_s23  }
  0x28   :  { %s5534_s2 = smov [#allocation12]   ;;  %s5535_s27 = smov [#allocation15]  }
  0x29   :  { %s73_s26 = sshll.u32 %s5534_s2, 4  ;;  %s95_s28 = sshll.u32 %s5535_s27, 4  ;;  %s74_s26 = int_to_ptr.vmem [resolvable:$true] %s73_s26  ;;  %s96_s28 = int_to_ptr.vmem [resolvable:$true] %s95_s28 }
  0x2a   :  { %s7525_s4 = sld [smem:[#allocation75_spill]] }
  0x30   :  { %s5205_s30 = scalar_lea.hbm %s7525_s4, 16 }
  0x31   :  { %p5206_p8 = scmp.ne.s32.totalorder %s7525_s4, %s5205_s30  ;;  %p5209_p9 = scmp.lt.u32.totalorder %s5205_s30, %s7525_s4 }
  0x33   :  { %p5211_p10 = pnand %p5209_p9, %p5206_p8 }
  0x35   :  { %5214 = shalt.err (!%p5211_p10)
}
  0x36   :  { %s5215_s25 = scalar_lea.vmem %s74_s26, 16  ;;  %s5219_s3 = scalar_lea.vmem %s74_s26, 32 }
  0x37   :  { %p5216_p11 = scmp.ne.s32.totalorder %s74_s26, %s5215_s25  ;;  %p5220_p12 = scmp.lt.s32.totalorder %s74_s26, %s74_s26 }
  0x38   :  { %p5221_p13 = scmp.lt.s32.totalorder %s5219_s3, %s5215_s25 }
  0x3a   :  { %p5222_p0 = por %p5221_p13, %p5220_p12 }
  0x3c   :  { %p5223_p1 = pnand %p5222_p0, %p5216_p11 }
  0x3e   :  { %5226 = shalt.err (!%p5223_p1)
}
  0x3f   :  { %76 = dma.hbm_to_vmem [thread:$0]  %s7525_s4, 16, %s74_s26, [#allocation13]  }
  0x40   :  { %s5227_s18 = scalar_lea.hbm %s7458_s6, 16 }
  0x41   :  { %p5228_p2 = scmp.ne.s32.totalorder %s7458_s6, %s5227_s18  ;;  %p5231_p3 = scmp.lt.u32.totalorder %s5227_s18, %s7458_s6 }
  0x43   :  { %p5233_p4 = pnand %p5231_p3, %p5228_p2 }
  0x45   :  { %5236 = shalt.err (!%p5233_p4)
}
  0x46   :  { %s5237_s30 = scalar_lea.vmem %s96_s28, 16  ;;  %s5241_s5 = scalar_lea.vmem %s96_s28, 32 }
  0x47   :  { %p5238_p5 = scmp.ne.s32.totalorder %s96_s28, %s5237_s30  ;;  %p5242_p6 = scmp.lt.s32.totalorder %s96_s28, %s96_s28 }
  0x48   :  { %p5243_p7 = scmp.lt.s32.totalorder %s5241_s5, %s5237_s30 }
  0x4a   :  { %p5244_p8 = por %p5243_p7, %p5242_p6 }
  0x4c   :  { %p5245_p9 = pnand %p5244_p8, %p5238_p5 }
  0x4e   :  { %5248 = shalt.err (!%p5245_p9)
}
  0x4f   :  { %98 = dma.hbm_to_vmem [thread:$0]  %s7458_s6, 16, %s96_s28, [#allocation16]  }
  0x50   :  { %s5536_s25 = smov [#allocation18]   ;;  %s5537_s1 = smov [#allocation21]  }
  0x51   :  { %s115_s3 = sshll.u32 %s5536_s25, 4  ;;  %s142_s24 = sshll.u32 %s5537_s1, 4  ;;  %s116_s3 = int_to_ptr.vmem [resolvable:$true] %s115_s3  ;;  %s143_s24 = int_to_ptr.vmem [resolvable:$true] %s142_s24 }
  0x52   :  { %s5249_s18 = scalar_lea.hbm %s7460_s8, 16 }
  0x53   :  { %p5250_p10 = scmp.ne.s32.totalorder %s7460_s8, %s5249_s18  ;;  %p5253_p11 = scmp.lt.u32.totalorder %s5249_s18, %s7460_s8 }
  0x55   :  { %p5255_p12 = pnand %p5253_p11, %p5250_p10 }
  0x57   :  { %5258 = shalt.err (!%p5255_p12)
}
  0x58   :  { %s5259_s6 = scalar_lea.vmem %s116_s3, 16  ;;  %s5263_s28 = scalar_lea.vmem %s116_s3, 32 }
  0x59   :  { %p5260_p13 = scmp.ne.s32.totalorder %s116_s3, %s5259_s6  ;;  %p5264_p0 = scmp.lt.s32.totalorder %s116_s3, %s116_s3 }
  0x5a   :  { %p5265_p1 = scmp.lt.s32.totalorder %s5263_s28, %s5259_s6 }
  0x5c   :  { %p5266_p2 = por %p5265_p1, %p5264_p0 }
  0x5e   :  { %p5267_p3 = pnand %p5266_p2, %p5260_p13 }
  0x60   :  { %5270 = shalt.err (!%p5267_p3)
}
  0x61   :  { %118 = dma.hbm_to_vmem [thread:$0]  %s7460_s8, 16, %s116_s3, [#allocation19]  }
  0x62   :  { %s5271_s25 = scalar_lea.hbm %s7465_s13, 2048 }
  0x63   :  { %p5272_p4 = scmp.ne.s32.totalorder %s7465_s13, %s5271_s25  ;;  %p5275_p5 = scmp.lt.u32.totalorder %s5271_s25, %s7465_s13 }
  0x65   :  { %p5277_p6 = pnand %p5275_p5, %p5272_p4 }
  0x67   :  { %5280 = shalt.err (!%p5277_p6)
}
  0x68   :  { %s5281_s19 = scalar_lea.vmem %s143_s24, 2048  ;;  %p5286_p8 = scmp.lt.s32.totalorder %s143_s24, %s143_s24 }
  0x69   :  { %p5282_p7 = scmp.ne.s32.totalorder %s143_s24, %s5281_s19  ;;  %p5287_p9 = scmp.lt.s32.totalorder %s5281_s19, %s5281_s19 }
  0x6b   :  { %p5288_p10 = por %p5287_p9, %p5286_p8 }
  0x6d   :  { %p5289_p11 = pnand %p5288_p10, %p5282_p7 }
  0x6f   :  { %5292 = shalt.err (!%p5289_p11)
}
  0x70   :  { %s5538_s8 = smov 256   ;;  %s5539_s3 = smov 16  }
  0x71   :  { %148 = dma.hbm_to_vmem [thread:$0]  %s7465_s13, 2048, %s143_s24, [#allocation22], %s5538_s8, %s5538_s8, %s5539_s3  }
  0x72   :  { %s5540_s0 = smov [#allocation24]   ;;  %s5541_s28 = smov [#allocation6]  }
  0x73   :  { %s166_s6 = sshll.u32 %s5540_s0, 4  ;;  %s41_s30 = sshll.u32 %s5541_s28, 4  ;;  %s167_s6 = int_to_ptr.vmem [resolvable:$true] %s166_s6  ;;  %s42_s30 = int_to_ptr.vmem [resolvable:$true] %s41_s30 }
  0x74   :  { %s5293_s4 = scalar_lea.hbm %s7468_s16, 512 }
  0x75   :  { %p5294_p12 = scmp.ne.s32.totalorder %s7468_s16, %s5293_s4  ;;  %p5297_p13 = scmp.lt.u32.totalorder %s5293_s4, %s7468_s16 }
  0x77   :  { %p5299_p0 = pnand %p5297_p13, %p5294_p12 }
  0x79   :  { %5302 = shalt.err (!%p5299_p0)
}
  0x7a   :  { %s5303_s13 = scalar_lea.vmem %s167_s6, 512  ;;  %p5308_p2 = scmp.lt.s32.totalorder %s167_s6, %s167_s6 }
  0x7b   :  { %p5304_p1 = scmp.ne.s32.totalorder %s167_s6, %s5303_s13  ;;  %p5309_p3 = scmp.lt.s32.totalorder %s5303_s13, %s5303_s13 }
  0x7d   :  { %p5310_p4 = por %p5309_p3, %p5308_p2 }
  0x7f   :  { %p5311_p5 = pnand %p5310_p4, %p5304_p1 }
  0x81   :  { %5314 = shalt.err (!%p5311_p5)
}
  0x82   :  { %172 = dma.hbm_to_vmem [thread:$0]  %s7468_s16, 512, %s167_s6, [#allocation25], %s5538_s8, %s5538_s8, %s5539_s3  }
  0x83   :  { %s7526_s29 = sld [smem:[#allocation72_spill]] }
  0x89   :  { %s5315_s0 = scalar_lea.hbm %s7526_s29, 32 }
  0x8a   :  { %p5316_p6 = scmp.ne.s32.totalorder %s7526_s29, %s5315_s0  ;;  %p5319_p7 = scmp.lt.u32.totalorder %s5315_s0, %s7526_s29 }
  0x8c   :  { %p5321_p8 = pnand %p5319_p7, %p5316_p6 }
  0x8e   :  { %5324 = shalt.err (!%p5321_p8)
}
  0x8f   :  { %s5325_s25 = scalar_lea.vmem %s42_s30, 32  ;;  %p5330_p10 = scmp.lt.s32.totalorder %s42_s30, %s42_s30 }
  0x90   :  { %p5326_p9 = scmp.ne.s32.totalorder %s42_s30, %s5325_s25  ;;  %p5331_p11 = scmp.lt.s32.totalorder %s5325_s25, %s5325_s25 }
  0x92   :  { %p5332_p12 = por %p5331_p11, %p5330_p10 }
  0x94   :  { %p5333_p13 = pnand %p5332_p12, %p5326_p9 }
  0x96   :  { %5336 = shalt.err (!%p5333_p13)
}
  0x97   :  { %44 = dma.hbm_to_vmem [thread:$0]  %s7526_s29, 32, %s42_s30, [#allocation7]  }
  0x98   :  { %s5542_s6 = smov [#allocation11]   ;;  %s5543_s21 = smov [#allocation14]  }
  0x99   :  { %s63_s1 = sshll.u32 %s5542_s6, 4  ;;  %s83_s2 = sshll.u32 %s5543_s21, 4  ;;  %s64_s1 = int_to_ptr.vmem [resolvable:$true] %s63_s1  ;;  %s84_s2 = int_to_ptr.vmem [resolvable:$true] %s83_s2 }
  0x9a   :  { %s7527_s18 = sld [smem:[#allocation74_spill]] }
  0xa0   :  { %s5337_s19 = scalar_lea.hbm %s7527_s18, 16 }
  0xa1   :  { %p5338_p0 = scmp.ne.s32.totalorder %s7527_s18, %s5337_s19  ;;  %p5341_p1 = scmp.lt.u32.totalorder %s5337_s19, %s7527_s18 }
  0xa3   :  { %p5343_p2 = pnand %p5341_p1, %p5338_p0 }
  0xa5   :  { %5346 = shalt.err (!%p5343_p2)
}
  0xa6   :  { %s5347_s30 = scalar_lea.vmem %s64_s1, 16  ;;  %s5351_s29 = scalar_lea.vmem %s64_s1, 32 }
  0xa7   :  { %p5348_p3 = scmp.ne.s32.totalorder %s64_s1, %s5347_s30  ;;  %p5352_p4 = scmp.lt.s32.totalorder %s64_s1, %s64_s1 }
  0xa8   :  { %p5353_p5 = scmp.lt.s32.totalorder %s5351_s29, %s5347_s30 }
  0xaa   :  { %p5354_p6 = por %p5353_p5, %p5352_p4 }
  0xac   :  { %p5355_p7 = pnand %p5354_p6, %p5348_p3 }
  0xae   :  { %5358 = shalt.err (!%p5355_p7)
}
  0xaf   :  { %66 = dma.hbm_to_vmem [thread:$0]  %s7527_s18, 16, %s64_s1, [#allocation10]  }
  0xb0   :  { %s7528_s8 = sld [smem:[#allocation76_spill]] }
  0xb6   :  { %s5359_s6 = scalar_lea.hbm %s7528_s8, 16 }
  0xb7   :  { %p5360_p8 = scmp.ne.s32.totalorder %s7528_s8, %s5359_s6  ;;  %p5363_p9 = scmp.lt.u32.totalorder %s5359_s6, %s7528_s8 }
  0xb9   :  { %p5365_p10 = pnand %p5363_p9, %p5360_p8 }
  0xbb   :  { %5368 = shalt.err (!%p5365_p10)
}
  0xbc   :  { %s5369_s27 = scalar_lea.vmem %s84_s2, 16  ;;  %s5373_s0 = scalar_lea.vmem %s84_s2, 32 }
  0xbd   :  { %p5370_p11 = scmp.ne.s32.totalorder %s84_s2, %s5369_s27  ;;  %p5374_p12 = scmp.lt.s32.totalorder %s84_s2, %s84_s2 }
  0xbe   :  { %p5375_p13 = scmp.lt.s32.totalorder %s5373_s0, %s5369_s27 }
  0xc0   :  { %p5376_p0 = por %p5375_p13, %p5374_p12 }
  0xc2   :  { %p5377_p1 = pnand %p5376_p0, %p5370_p11 }
  0xc4   :  { %5380 = shalt.err (!%p5377_p1)
}
  0xc5   :  { %86 = dma.hbm_to_vmem [thread:$0]  %s7528_s8, 16, %s84_s2, [#allocation13]  }
  0xc6   :  { %s5544_s28 = smov [#allocation17]   ;;  %s5545_s30 = smov [#allocation20]  }
  0xc7   :  { %s105_s5 = sshll.u32 %s5544_s28, 4  ;;  %s124_s29 = sshll.u32 %s5545_s30, 4  ;;  %s106_s5 = int_to_ptr.vmem [resolvable:$true] %s105_s5  ;;  %s125_s29 = int_to_ptr.vmem [resolvable:$true] %s124_s29 }
  0xc8   :  { %s5381_s25 = scalar_lea.hbm %s7459_s7, 16 }
  0xc9   :  { %p5382_p2 = scmp.ne.s32.totalorder %s7459_s7, %s5381_s25  ;;  %p5385_p3 = scmp.lt.u32.totalorder %s5381_s25, %s7459_s7 }
  0xcb   :  { %p5387_p4 = pnand %p5385_p3, %p5382_p2 }
  0xcd   :  { %5390 = shalt.err (!%p5387_p4)
}
  0xce   :  { %s5391_s2 = scalar_lea.vmem %s106_s5, 16  ;;  %s5395_s8 = scalar_lea.vmem %s106_s5, 32 }
  0xcf   :  { %p5392_p5 = scmp.ne.s32.totalorder %s106_s5, %s5391_s2  ;;  %p5396_p6 = scmp.lt.s32.totalorder %s106_s5, %s106_s5 }
  0xd0   :  { %p5397_p7 = scmp.lt.s32.totalorder %s5395_s8, %s5391_s2 }
  0xd2   :  { %p5398_p8 = por %p5397_p7, %p5396_p6 }
  0xd4   :  { %p5399_p9 = pnand %p5398_p8, %p5392_p5 }
  0xd6   :  { %5402 = shalt.err (!%p5399_p9)
}
  0xd7   :  { %108 = dma.hbm_to_vmem [thread:$0]  %s7459_s7, 16, %s106_s5, [#allocation16]  }
  0xd8   :  { %s5403_s1 = scalar_lea.hbm %s7461_s9, 256 }
  0xd9   :  { %p5404_p10 = scmp.ne.s32.totalorder %s7461_s9, %s5403_s1  ;;  %p5407_p11 = scmp.lt.u32.totalorder %s5403_s1, %s7461_s9 }
  0xdb   :  { %p5409_p12 = pnand %p5407_p11, %p5404_p10 }
  0xdd   :  { %5412 = shalt.err (!%p5409_p12)
}
  0xde   :  { %s5413_s4 = scalar_lea.vmem %s125_s29, 256  ;;  %p5418_p0 = scmp.lt.s32.totalorder %s125_s29, %s125_s29 }
  0xdf   :  { %p5414_p13 = scmp.ne.s32.totalorder %s125_s29, %s5413_s4  ;;  %p5419_p1 = scmp.lt.s32.totalorder %s5413_s4, %s5413_s4 }
  0xe1   :  { %p5420_p2 = por %p5419_p1, %p5418_p0 }
  0xe3   :  { %p5421_p3 = pnand %p5420_p2, %p5414_p13 }
  0xe5   :  { %5424 = shalt.err (!%p5421_p3)
}
  0xe6   :  { %130 = dma.hbm_to_vmem [thread:$0]  %s7461_s9, 256, %s125_s29, [#allocation19], %s5532_s22, %s5532_s22, %s5533_s23  }
  0xe7   :  { %s5546_s25 = smov [#allocation23]   ;;  %s5547_s6 = smov [#allocation26]  }
  0xe8   :  { %s155_s16 = sshll.u32 %s5546_s25, 4  ;;  %s178_s21 = sshll.u32 %s5547_s6, 4  ;;  %s156_s16 = int_to_ptr.vmem [resolvable:$true] %s155_s16  ;;  %s179_s21 = int_to_ptr.vmem [resolvable:$true] %s178_s21 }
  0xe9   :  { %s5425_s8 = scalar_lea.hbm %s7466_s14, 256 }
  0xea   :  { %p5426_p4 = scmp.ne.s32.totalorder %s7466_s14, %s5425_s8  ;;  %p5429_p5 = scmp.lt.u32.totalorder %s5425_s8, %s7466_s14 }
  0xec   :  { %p5431_p6 = pnand %p5429_p5, %p5426_p4 }
  0xee   :  { %5434 = shalt.err (!%p5431_p6)
}
  0xef   :  { %s5435_s9 = scalar_lea.vmem %s156_s16, 256  ;;  %p5440_p8 = scmp.lt.s32.totalorder %s156_s16, %s156_s16 }
  0xf0   :  { %p5436_p7 = scmp.ne.s32.totalorder %s156_s16, %s5435_s9  ;;  %p5441_p9 = scmp.lt.s32.totalorder %s5435_s9, %s5435_s9 }
  0xf2   :  { %p5442_p10 = por %p5441_p9, %p5440_p8 }
  0xf4   :  { %p5443_p11 = pnand %p5442_p10, %p5436_p7 }
  0xf6   :  { %5446 = shalt.err (!%p5443_p11)
}
  0xf7   :  { %158 = dma.hbm_to_vmem [thread:$0]  %s7466_s14, 256, %s156_s16, [#allocation22]  }
  0xf8   :  { %s5447_s28 = scalar_lea.hbm %s7469_s17, 32768 }
  0xf9   :  { %p5448_p12 = scmp.ne.s32.totalorder %s7469_s17, %s5447_s28  ;;  %p5451_p13 = scmp.lt.u32.totalorder %s5447_s28, %s7469_s17 }
  0xfb   :  { %p5453_p0 = pnand %p5451_p13, %p5448_p12 }
  0xfd   :  { %5456 = shalt.err (!%p5453_p0)
}
  0xfe   :  { %s5457_s5 = scalar_lea.vmem %s179_s21, 32768  ;;  %p5462_p2 = scmp.lt.s32.totalorder %s179_s21, %s179_s21 }
  0xff   :  { %p5458_p1 = scmp.ne.s32.totalorder %s179_s21, %s5457_s5  ;;  %p5463_p3 = scmp.lt.s32.totalorder %s5457_s5, %s5457_s5 }
 0x101   :  { %p5464_p4 = por %p5463_p3, %p5462_p2 }
 0x103   :  { %p5465_p5 = pnand %p5464_p4, %p5458_p1 }
 0x105   :  { %5468 = shalt.err (!%p5465_p5)
}
 0x106   :  { %s5548_s14 = smov 1024   ;;  %s5549_s25 = smov 64  }
 0x107   :  { %184 = dma.hbm_to_vmem [thread:$0]  %s7469_s17, 32768, %s179_s21, [#allocation25], %s5548_s14, %s5548_s14, %s5549_s25  }
 0x108   :  { %s5550_s13 = smov [#allocation27]   ;;  %s5469_s19 = scalar_lea.hbm %s7472_s20, 2048 }
 0x109   :  { %s194_s2 = sshll.u32 %s5550_s13, 4  ;;  %p5470_p6 = scmp.ne.s32.totalorder %s7472_s20, %s5469_s19  ;;  %s195_s2 = int_to_ptr.vmem [resolvable:$true] %s194_s2 }
 0x10a   :  { %p5473_p7 = scmp.lt.u32.totalorder %s5469_s19, %s7472_s20 }
 0x10c   :  { %p5475_p8 = pnand %p5473_p7, %p5470_p6 }
 0x10e   :  { %5478 = shalt.err (!%p5475_p8)
}
 0x10f   :  { %s5479_s29 = scalar_lea.vmem %s195_s2, 2048  ;;  %p5484_p10 = scmp.lt.s32.totalorder %s195_s2, %s195_s2 }
 0x110   :  { %p5480_p9 = scmp.ne.s32.totalorder %s195_s2, %s5479_s29  ;;  %p5485_p11 = scmp.lt.s32.totalorder %s5479_s29, %s5479_s29 }
 0x112   :  { %p5486_p12 = por %p5485_p11, %p5484_p10 }
 0x114   :  { %p5487_p13 = pnand %p5486_p12, %p5480_p9 }
 0x116   :  { %5490 = shalt.err (!%p5487_p13)
}
 0x117   :  { %200 = dma.hbm_to_vmem [thread:$0]  %s7472_s20, 2048, %s195_s2, [#allocation28], %s5548_s14, %s5548_s14, %s5549_s25  }
 0x118   :  { %5513 = dma.done.wait [#allocation7], 32  }
 0x119   :  { %5514 = vsyncadd [#allocation7], 4294967264 }
 0x11a   :  { %5515 = dma.done.wait [#allocation10], 400  }
 0x11b   :  { %5516 = vsyncadd [#allocation10], 4294966896 }
 0x11c   :  { %5517 = dma.done.wait [#allocation13], 32  }
 0x11d   :  { %5518 = vsyncadd [#allocation13], 4294967264 }
 0x11e   :  { %5519 = dma.done.wait [#allocation16], 32  }
 0x11f   :  { %5520 = vsyncadd [#allocation16], 4294967264 }
 0x120   :  { %5521 = dma.done.wait [#allocation19], 272  }
 0x121   :  { %5522 = vsyncadd [#allocation19], 4294967024 }
 0x122   :  { %5523 = dma.done.wait [#allocation22], 2304  }
 0x123   :  { %5524 = vsyncadd [#allocation22], 4294964992 }
 0x124   :  { %5525 = dma.done.wait [#allocation25], 33280  }
 0x125   :  { %5526 = vsyncadd [#allocation25], 4294934016 }
 0x126   :  { %5527 = dma.done.wait [#allocation28], 2048  }
 0x127   :  { %5528 = vsyncadd [#allocation28], 4294965248  ;;  %v5551_v0 = vmov 0.0|0.0   ;;  %v5552_v1 = vmov 0.0   ;;  %vm5553_vm0 = vmmov 0   ;;  %v244_v2 = vld [vmem:[#allocation9] sm:$0xff] }
 0x128   :  { %4022 = vmatprep.subr.bf16.mxu1 %v5551_v0  ;;  %620 = vst [vmem:[#allocation3] sm:$0xff] %v5552_v1  ;;  %621 = vst [vmem:[#allocation3 + $0x8] sm:$0xff] %v5552_v1  ;;  %4001 = vmatprep.mubr.msk.f32.mxu1 %vm5553_vm0, %v5552_v1  ;;  %v245_v3 = vld [vmem:[#allocation9 + $0x8] sm:$0xff]  ;;  %v246_v5 = vld [vmem:[#allocation9 + $0x10] sm:$0x3]  ;;  %vm258_vm1 = vcmask 1041408  }
 0x129   :  { %625 = vst [vmem:[#allocation3 + $0x20] sm:$0xff] %v5552_v1  ;;  %1079 = vmatprep.mubr.f32.mxu0 %v5552_v1  ;;  %v4023_v4 = vpack.c.bf16 %v245_v3, %v244_v2  ;;  %v243_v6 = vld [vmem:[#allocation6] sm:$0x3]  ;;  %vm254_vm2 = vcmask 146432   ;;  %s7529_s18 = sld [smem:[#allocation77_spill]]  ;;  %vm332_vm3 = vcmask 254976  }
 0x12a   :  { %v3953_v13 = vld [vmem:[#allocation11] ss:$0 sm:$0xff]  ;;  %v3956_v37 = vld [vmem:[#allocation12] ss:$0 sm:$0xff]  ;;  %v3957_v39 = vld [vmem:[#allocation14] ss:$0 sm:$0xff] }
 0x12b   :  { %4024 = vmatpush3.bf16.msra.mxu1 %v4023_v4  ;;  %vm383_vm4 = vcmask 261120   ;;  %v3958_v43 = vld [vmem:[#allocation15] ss:$0 sm:$0xff]  ;;  %vm494_vm5 = vcmask 122880   ;;  %vm525_vm6 = vcmask 123905   ;;  %s5554_s14 = smov 80  }
 0x12c   :  { %3999 = vmatprep.subr.mxu1 %v5552_v1  ;;  %s5555_s16 = smov 112   ;;  %s5556_s6 = smov 96   ;;  %vm538_vm7 = vcmask 130048   ;;  %vm622_vm8 = vcmask 523264   ;;  %vm748_vm9 = vcmask 1039360   ;;  %vm763_vm10 = vcmask 1031168  }
 0x12d   :  { %s5557_s13 = smov 32   ;;  %s5558_s2 = smov 48   ;;  %vm778_vm11 = vcmask 982016   ;;  %vm883_vm12 = vcmask 72704   ;;  %vm1150_vm13 = vcmask 916480   ;;  %vm1176_vm14 = vcmask 924672  }
 0x12e   :  { %s5559_s19 = smov 120   ;;  %s5560_s29 = smov 121   ;;  %vm1250_vm15 = vcmask 7168  }
 0x12f   :  { %4000 = vmatpush3.msk.msra.mxu1 %vm258_vm1, %v246_v5  ;;  %v372_v7 = vld [vmem:[%s7529_s18] sm:$0xff]  ;;  %v373_v8 = vld [vmem:[%s7529_s18 + $0x8] sm:$0xff]  ;;  %v374_v10 = vld [vmem:[%s7529_s18 + $0x10] sm:$0xff]  ;;  %s5561_s17 = smov 127   ;;  %s5562_s28 = smov 1  }
 0x130   :  { %4002 = vmatmul.mubr.msk.f32.vlgmr.msra.gmra.mrb[0].mxu1 %vm254_vm2, %v243_v6  ;;  %4025 = vmatprep.subr.bf16.mxu1 %v5551_v0  ;;  %v4026_v9 = vpack.c.bf16 %v373_v8, %v372_v7  ;;  %v375_v11 = vld [vmem:[%s7529_s18 + $0x18] sm:$0xff]  ;;  %v3960_v5 = vld [vmem:[#allocation17] ss:$0 sm:$0xff]  ;;  %v3961_v7 = vld [vmem:[#allocation18] ss:$0 sm:$0xff]  ;;  %s5563_s30 = smov 7  }
 0x131   :  { %4012 = vmatprep.mubr.msk.f32.mxu1 %vm5553_vm0, %v5552_v1  ;;  %v4029_v12 = vpack.c.bf16 %v375_v11, %v374_v10  ;;  %v536_v10 = vld [vmem:[#allocation20] sm:$0xff]  ;;  %v537_v11 = vld [vmem:[#allocation20 + $0x8] sm:$0xff]  ;;  %s5565_s24 = smov 119   ;;  %s5568_s9 = smov 111   ;;  %vm1276_vm0 = vcmask 121856   ;;  %vm1124_vm2 = vcmask 908288  }
 0x132   :  { %4027 = vmatpush3.bf16.msra.mxu1 %v4026_v9  ;;  %s5577_s27 = smov 31   ;;  %s5578_s0 = smov 33  }
 0x133   :  { %4028 = vmatprep.subr.bf16.mxu1 %v5551_v0 }
 0x136   :  { %4030 = vmatpush3.bf16.msra.mxu1 %v4029_v12  ;;  %v4031_v12 = vpack.c.bf16 %v537_v11, %v536_v10 }
 0x138   :  { %4032 = vmatprep.subr.bf16.mxu1 %v4031_v12 }
 0x203   :  { %v328_v14 = vpop.f32.mrb[0].mxu1 }
 0x204   :  { %v329_v15 = vadd.f32 %v3953_v13, %v328_v14  ;;  %v4003_v16 = vpop.f32.mrb[1].mxu1  ;;  %v3965_v13 = vld [vmem:[%s7464_s12 + $0x1] ss:$0 sm:$0xff]  ;;  %v3966_v14 = vld [vmem:[%s7464_s12 + $0x2] ss:$0 sm:$0xff] }
 0x205   :  { %v3969_v16 = vld [vmem:[%s7464_s12 + $0x5] ss:$0 sm:$0xff] }
 0x206   :  { %v333_v17 = vsel %vm332_vm3, %v329_v15, 0.0 }
 0x207   :  { %v334_v18 = vrot.slane %v333_v17, 4 }
 0x209   :  { %v335_v19 = vadd.f32 %v334_v18, %v333_v17  ;;  %v3970_v17 = vld [vmem:[%s7464_s12 + $0x6] ss:$0 sm:$0xff]  ;;  %v3971_v18 = vld [vmem:[%s7464_s12 + $0x7] ss:$0 sm:$0xff] }
 0x20b   :  { %v336_v20 = vrot.slane %v335_v19, 2 }
 0x20d   :  { %v337_v21 = vadd.f32 %v336_v20, %v335_v19  ;;  %v3972_v19 = vld [vmem:[%s7464_s12 + $0x8] ss:$0 sm:$0xff]  ;;  %v3964_v20 = vld [vmem:[%s7464_s12] ss:$0 sm:$0xff] }
 0x20f   :  { %v338_v22 = vrot.slane %v337_v21, 1 }
 0x211   :  { %v339_v23 = vadd.f32 %v338_v22, %v337_v21 }
 0x213   :  { %v341_v24 = vmul.f32 0.5, %v339_v23 }
 0x215   :  { %v342_v25 = vsub.f32 %v329_v15, %v341_v24  ;;  %v3967_v15 = vld [vmem:[%s7464_s12 + $0x3] ss:$0 sm:$0xff] }
 0x217   :  { %v343_v26 = vmul.f32 %v342_v25, %v342_v25 }
 0x219   :  { %v344_v27 = vsel %vm332_vm3, %v343_v26, 0.0  ;;  %vm1436_vm3 = vcmask 900096  }
 0x21a   :  { %v345_v28 = vrot.slane %v344_v27, 4 }
 0x21c   :  { %v346_v29 = vadd.f32 %v345_v28, %v344_v27 }
 0x21e   :  { %v347_v30 = vrot.slane %v346_v29, 2 }
 0x220   :  { %v348_v31 = vadd.f32 %v347_v30, %v346_v29 }
 0x222   :  { %v349_v32 = vrot.slane %v348_v31, 1 }
 0x224   :  { %v350_v33 = vadd.f32 %v349_v32, %v348_v31 }
 0x226   :  { %v351_v34 = vmul.f32 0.5, %v350_v33 }
 0x228   :  { %v352_v35 = vadd.f32 1e-05, %v351_v34 }
 0x22a   :  { %5177 = vrsqrt.f32 %v352_v35 }
 0x234   :  { %v5178_v36 = vpop.eup %5177 }
 0x235   :  { %v354_v38 = vmul.f32 %v5178_v36, %v342_v25 }
 0x237   :  { %v362_v40 = vmul.f32 %v3956_v37, %v354_v38 }
 0x239   :  { %v370_v41 = vadd.f32 %v3957_v39, %v362_v40 }
 0x23b   :  { %v371_v42 = vmax.f32 %v370_v41, 0.0 }
 0x23d   :  { %4013 = vmatmul.mubr.msk.f32.vlgmr.msra.gmra.mrb[2].mxu1 %vm383_vm4, %v371_v42 }
 0x23e   :  { %4034 = vmatpush3.bf16.msra.mxu1 %v4031_v12 }
 0x23f   :  { %4035 = vmatprep.subr.bf16.mxu1 %v5551_v0 }
 0x310   :  { %v453_v44 = vpop.f32.mrb[2].mxu1 }
 0x311   :  { %v454_v45 = vadd.f32 %v3958_v43, %v453_v44  ;;  %v4014_v46 = vpop.f32.mrb[3].mxu1 }
 0x313   :  { %v457_v47 = vsel %vm258_vm1, %v454_v45, 0.0 }
 0x314   :  { %v458_v48 = vrot.slane %v457_v47, 4 }
 0x316   :  { %v459_v49 = vadd.f32 %v458_v48, %v457_v47 }
 0x318   :  { %v460_v50 = vrot.slane %v459_v49, 2 }
 0x31a   :  { %v461_v51 = vadd.f32 %v460_v50, %v459_v49 }
 0x31c   :  { %v462_v52 = vrot.slane %v461_v51, 1 }
 0x31e   :  { %v463_v53 = vadd.f32 %v462_v52, %v461_v51  ;;  %v3968_v51 = vld [vmem:[%s7464_s12 + $0x4] ss:$0 sm:$0xff]  ;;  %s5567_s12 = smov 118  }
 0x320   :  { %v464_v54 = vmul.f32 0.5, %v463_v53 }
 0x322   :  { %v465_v55 = vsub.f32 %v454_v45, %v464_v54 }
 0x324   :  { %v466_v56 = vmul.f32 %v465_v55, %v465_v55 }
 0x326   :  { %v467_v57 = vsel %vm258_vm1, %v466_v56, 0.0  ;;  %vm1327_vm1 = vcmask 138240  }
 0x327   :  { %v468_v58 = vrot.slane %v467_v57, 4 }
 0x329   :  { %v469_v59 = vadd.f32 %v468_v58, %v467_v57 }
 0x32b   :  { %v470_v60 = vrot.slane %v469_v59, 2 }
 0x32d   :  { %v471_v61 = vadd.f32 %v470_v60, %v469_v59 }
 0x32f   :  { %v472_v62 = vrot.slane %v471_v61, 1 }
 0x331   :  { %v473_v63 = vadd.f32 %v472_v62, %v471_v61 }
 0x333   :  { %v474_v2 = vmul.f32 0.5, %v473_v63 }
 0x335   :  { %v475_v3 = vadd.f32 1e-05, %v474_v2 }
 0x337   :  { %5179 = vrsqrt.f32 %v475_v3 }
 0x341   :  { %v5180_v4 = vpop.eup %5179 }
 0x342   :  { %v477_v6 = vmul.f32 %v5180_v4, %v465_v55 }
 0x344   :  { %v485_v8 = vmul.f32 %v3960_v5, %v477_v6 }
 0x346   :  { %v493_v9 = vadd.f32 %v3961_v7, %v485_v8 }
 0x348   :  { %505 = vrot.lane.b32.xlu1 %v493_v9, %s5554_s14  ;;  %497 = vrot.lane.b32.xlu0 %v493_v9, %s5555_s16  ;;  %526 = vst.msk [vmem:[#allocation2 + $0x7] sm:$0x2] %vm525_vm6, %v493_v9  ;;  %s5564_s14 = smov 9  }
 0x349   :  { %495 = vst.msk [vmem:[#allocation2] sm:$0x1] %vm494_vm5, %v493_v9 }
 0x34c   :  { %509 = vrot.lane.b32.xlu1 %v493_v9, %s5549_s25  ;;  %501 = vrot.lane.b32.xlu0 %v493_v9, %s5556_s6 }
 0x350   :  { %517 = vrot.lane.b32.xlu1 %v493_v9, %s5557_s13  ;;  %513 = vrot.lane.b32.xlu0 %v493_v9, %s5558_s2  ;;  %s5573_s2 = smov 17  }
 0x354   :  { %521 = vrot.lane.b32.xlu0 %v493_v9, %s5539_s3  ;;  %652 = vrot.lane.b32.xlu1 %v3965_v13, %s5559_s19 }
 0x358   :  { %665 = vrot.lane.b32.xlu0 %v3966_v14, %s5560_s29  ;;  %678 = vrot.lane.b32.xlu1 %v3967_v15, %s5561_s17 }
 0x35c   :  { %698 = vrot.lane.b32.xlu0 %v3969_v16, %s5562_s28  ;;  %709 = vrot.lane.b32.xlu1 %v3970_v17, %s5563_s30 }
 0x360   :  { %720 = vrot.lane.b32.xlu0 %v3971_v18, %s5533_s23  ;;  %731 = vrot.lane.b32.xlu1 %v3972_v19, %s5564_s14  ;;  %s5566_s23 = smov 126  }
 0x364   :  { %639 = vrot.lane.b32.xlu0 %v3964_v20, %s5565_s24 }
 0x3ba   :  { %v506_v21 = vpop.permute.xlu1 %505  ;;  %v498_v22 = vpop.permute.xlu0 %497 }
 0x3bb   :  { %508 = vst.msk [vmem:[#allocation2 + $0x3] sm:$0x1] %vm494_vm5, %v506_v21  ;;  %500 = vst.msk [vmem:[#allocation2 + $0x1] sm:$0x1] %vm494_vm5, %v498_v22 }
 0x3bc   :  { %529 = vst.msk [vmem:[#allocation2 + $0xa] sm:$0x2] %vm525_vm6, %v506_v21  ;;  %527 = vst.msk [vmem:[#allocation2 + $0x8] sm:$0x2] %vm525_vm6, %v498_v22 }
 0x3be   :  { %v510_v23 = vpop.permute.xlu1 %509  ;;  %v502_v24 = vpop.permute.xlu0 %501 }
 0x3bf   :  { %512 = vst.msk [vmem:[#allocation2 + $0x4] sm:$0x1] %vm494_vm5, %v510_v23  ;;  %504 = vst.msk [vmem:[#allocation2 + $0x2] sm:$0x1] %vm494_vm5, %v502_v24 }
 0x3c0   :  { %530 = vst.msk [vmem:[#allocation2 + $0xb] sm:$0x2] %vm525_vm6, %v510_v23  ;;  %528 = vst.msk [vmem:[#allocation2 + $0x9] sm:$0x2] %vm525_vm6, %v502_v24 }
 0x3c2   :  { %v518_v25 = vpop.permute.xlu1 %517  ;;  %v514_v26 = vpop.permute.xlu0 %513 }
 0x3c3   :  { %520 = vst.msk [vmem:[#allocation2 + $0x6] sm:$0x1] %vm494_vm5, %v518_v25  ;;  %516 = vst.msk [vmem:[#allocation2 + $0x5] sm:$0x1] %vm494_vm5, %v514_v26 }
 0x3c4   :  { %532 = vst.msk [vmem:[#allocation2 + $0xd] sm:$0x2] %vm525_vm6, %v518_v25  ;;  %531 = vst.msk [vmem:[#allocation2 + $0xc] sm:$0x2] %vm525_vm6, %v514_v26 }
 0x3c6   :  { %v522_v27 = vpop.permute.xlu0 %521  ;;  %v653_v32 = vpop.permute.xlu1 %652 }
 0x3c7   :  { %524 = vst.msk [vmem:[#allocation2 + $0x7] sm:$0x1] %vm494_vm5, %v522_v27  ;;  %v657_v34 = vmul.f32 0.0, %v653_v32  ;;  %vm1459_vm5 = vcmask 785408  }
 0x3c8   :  { %533 = vst.msk [vmem:[#allocation2 + $0xe] sm:$0x2] %vm525_vm6, %v522_v27  ;;  %vm1482_vm6 = vcmask 777216  }
 0x3ca   :  { %v666_v33 = vpop.permute.xlu0 %665  ;;  %v679_v45 = vpop.permute.xlu1 %678 }
 0x3cb   :  { %v670_v40 = vmul.f32 0.0, %v666_v33  ;;  %v683_v47 = vmul.f32 0.0, %v679_v45 }
 0x3ce   :  { %v534_v28 = vld [vmem:[#allocation2] sm:$0xff]  ;;  %v699_v42 = vpop.permute.xlu0 %698  ;;  %v710_v53 = vpop.permute.xlu1 %709 }
 0x3cf   :  { %v535_v29 = vld [vmem:[#allocation2 + $0x8] sm:$0xff]  ;;  %4019 = vmatprep.mubr.msk.f32.mxu1 %vm538_vm7, %v534_v28 }
 0x3d0   :  { %4020 = vmatmul.mubr.msk.f32.vlgmr.msra.gmra.mrb[4].mxu1 %vm538_vm7, %v535_v29 }
 0x3d2   :  { %v721_v52 = vpop.permute.xlu0 %720  ;;  %v732_v5 = vpop.permute.xlu1 %731 }
 0x3d6   :  { %v640_v3 = vpop.permute.xlu0 %639 }
 0x3d7   :  { %v642_v7 = vmul.f32 0.0, %v640_v3 }
 0x4a3   :  { %v4021_v30 = vpop.f32.mrb[4].mxu1 }
 0x4a4   :  { %628 = vst.msk [vmem:[#allocation3 + $0x20] sm:$0xff] %vm622_vm8, %v4021_v30  ;;  %v611_v31 = vpop.f32.mrb[5].mxu1 }
 0x4a5   :  { %627 = vst.msk [vmem:[#allocation3 + $0x8] sm:$0xff] %vm622_vm8, %v611_v31 }
 0x4ab   :  { %v632_v35 = vld [vmem:[#allocation3 + $0x20] sm:$0xff] }
 0x4ac   :  { %v630_v36 = vld [vmem:[#allocation3 + $0x8] sm:$0xff]  ;;  %v658_v37 = vmul.f32 %v653_v32, %v632_v35  ;;  %v671_v41 = vmul.f32 %v666_v33, %v632_v35  ;;  %v684_v48 = vmul.f32 %v679_v45, %v632_v35  ;;  %v702_v56 = vmul.f32 %v699_v42, %v632_v35 }
 0x4ad   :  { %v656_v38 = vmul.f32 %v653_v32, %v630_v36  ;;  %v669_v44 = vmul.f32 %v666_v33, %v630_v36  ;;  %v682_v50 = vmul.f32 %v679_v45, %v630_v36  ;;  %v701_v55 = vmul.f32 %v699_v42, %v630_v36 }
 0x4ae   :  { %v4485_v39 = vpack.i.bf16 %v658_v37, %v657_v34  ;;  %v4490_v46 = vpack.i.bf16 %v671_v41, %v670_v40  ;;  %v4510_v54 = vpack.i.bf16 %v684_v48, %v683_v47  ;;  %v690_v58 = vmul.f32 %v3968_v51, %v630_v36 }
 0x4af   :  { %v4495_v43 = vpack.i.bf16 %v656_v38, %v657_v34  ;;  %v4500_v49 = vpack.i.bf16 %v669_v44, %v670_v40  ;;  %v4505_v57 = vpack.i.bf16 %v682_v50, %v683_v47  ;;  %v691_v59 = vmul.f32 %v3968_v51, %v632_v35 }
 0x4b0   :  { %4486 = vrot.lane.b32.xlu0 %v4485_v39, %s5561_s17  ;;  %v723_v60 = vmul.f32 %v721_v52, %v630_v36  ;;  %v724_v61 = vmul.f32 %v721_v52, %v632_v35  ;;  %v4520_v62 = vpack.i.bf16 %v702_v56, %v701_v55  ;;  %v712_v63 = vmul.f32 %v710_v53, %v630_v36 }
 0x4b1   :  { %4496 = vrot.lane.b32.xlu1 %v4495_v43, %s5561_s17  ;;  %v713_v2 = vmul.f32 %v710_v53, %v632_v35  ;;  %v4515_v4 = vpack.i.bf16 %v691_v59, %v690_v58  ;;  %v643_v8 = vmul.f32 %v640_v3, %v630_v36  ;;  %v734_v9 = vmul.f32 %v732_v5, %v630_v36 }
 0x4b2   :  { %v4530_v6 = vpack.i.bf16 %v724_v61, %v723_v60  ;;  %v735_v10 = vmul.f32 %v732_v5, %v632_v35  ;;  %v645_v14 = vmul.f32 %v640_v3, %v632_v35  ;;  %v815_v61 = vld [vmem:[%s7463_s11] sm:$0xff]  ;;  %v996_v3 = vld [vmem:[#allocation21 + $0x18] sm:$0xff] }
 0x4b3   :  { %v4525_v11 = vpack.i.bf16 %v713_v2, %v712_v63  ;;  %v4545_v12 = vpack.i.bf16 %v643_v8, %v642_v7  ;;  %v994_v63 = vld [vmem:[#allocation21 + $0x8] sm:$0xff]  ;;  %v5570_v2 = vmov 0   ;;  %v995_v5 = vld [vmem:[#allocation21 + $0x10] sm:$0xff] }
 0x4b4   :  { %4491 = vrot.lane.b32.xlu0 %v4490_v46, %s5566_s23  ;;  %v4535_v13 = vpack.i.bf16 %v735_v10, %v734_v9  ;;  %v4540_v15 = vpack.i.bf16 %v645_v14, %v642_v7  ;;  %4605 = vset.pattern.permute.xlu1 %v5570_v2  ;;  %v998_v8 = vld [vmem:[#allocation21 + $0x28] sm:$0xff]  ;;  %v1000_v9 = vld [vmem:[#allocation21 + $0x38] sm:$0xff]  ;;  %v997_v10 = vld [vmem:[#allocation21 + $0x20] sm:$0xff] }
 0x4b5   :  { %4501 = vrot.lane.b32.xlu1 %v4500_v49, %s5566_s23  ;;  %4606 = vset.pattern.permute.xlu0 %v5570_v2  ;;  %v1004_v14 = vld [vmem:[#allocation21 + $0x58] sm:$0xff] }
 0x4b8   :  { %4511 = vrot.lane.b32.xlu0 %v4510_v54, %s5559_s19 }
 0x4b9   :  { %4506 = vrot.lane.b32.xlu1 %v4505_v57, %s5559_s19  ;;  %s5569_s19 = smov 110   ;;  %v812_v57 = vld [vmem:[%s7462_s10 + $0x8] sm:$0xff] }
 0x4ba   :  { %3973 = vmatprep.mubr.msk.f32.mxu1 %vm538_vm7, %v812_v57 }
 0x4bc   :  { %4521 = vrot.lane.b32.xlu0 %v4520_v62, %s5567_s12  ;;  %v816_v62 = vld [vmem:[%s7463_s11 + $0x8] sm:$0xff] }
 0x4bd   :  { %4516 = vrot.lane.b32.xlu1 %v4515_v4, %s5565_s24  ;;  %v993_v4 = vld [vmem:[#allocation21] sm:$0xff] }
 0x4be   :  { %v4064_v7 = vpack.c.bf16 %v995_v5, %v993_v4  ;;  %v811_v5 = vld [vmem:[%s7462_s10] sm:$0xff] }
 0x4c0   :  { %4531 = vrot.lane.b32.xlu0 %v4530_v6, %s5568_s9  ;;  %v4062_v6 = vpack.c.bf16 %v996_v3, %v994_v63 }
 0x4c1   :  { %4526 = vrot.lane.b32.xlu1 %v4525_v11, %s5555_s16  ;;  %v4066_v11 = vpack.c.bf16 %v1000_v9, %v998_v8  ;;  %v1006_v8 = vld [vmem:[#allocation21 + $0x68] sm:$0xff]  ;;  %v1005_v9 = vld [vmem:[#allocation21 + $0x60] sm:$0xff] }
 0x4c2   :  { %4063 = vmatprep.subr.bf16.mxu0 %v4062_v6  ;;  %v814_v6 = vld [vmem:[%s7462_s10 + $0x18] sm:$0xff] }
 0x4c3   :  { %4065 = vmatpush1.bf16.msra.mxu0 %v4064_v7  ;;  %v813_v7 = vld [vmem:[%s7462_s10 + $0x10] sm:$0xff]  ;;  %s5571_s10 = smov 113  }
 0x4c4   :  { %4546 = vrot.lane.b32.xlu0 %v4545_v12, %s5564_s14  ;;  %v999_v12 = vld [vmem:[#allocation21 + $0x30] sm:$0xff]  ;;  %4067 = vmatprep.subr.bf16.mxu0 %v4066_v11 }
 0x4c5   :  { %4536 = vrot.lane.b32.xlu1 %v4535_v13, %s5569_s19  ;;  %v1002_v13 = vld [vmem:[#allocation21 + $0x48] sm:$0xff]  ;;  %v1007_v11 = vld [vmem:[#allocation21 + $0x70] sm:$0xff] }
 0x4c9   :  { %4541 = vrot.lane.b32.xlu1 %v4540_v15, %s5564_s14  ;;  %v4068_v15 = vpack.c.bf16 %v999_v12, %v997_v10  ;;  %v4076_v12 = vpack.c.bf16 %v1007_v11, %v1005_v9 }
 0x4cb   :  { %4069 = vmatpush1.bf16.msra.mxu0 %v4068_v15  ;;  %v1136_v15 = vld [vmem:[#allocation24 + $0x1] ss:$8 sm:$0x3] }
 0x522   :  { %v4487_v16 = vpop.permute.xlu0 %4486 }
 0x523   :  { %v4489_v17 = vunpack.i.h.bf16 %v4487_v16  ;;  %v4488_v18 = vunpack.i.l.bf16 %v4487_v16  ;;  %v4497_v19 = vpop.permute.xlu1 %4496  ;;  %v4070_v16 = vpack.c.bf16 %v1004_v14, %v1002_v13  ;;  %v1112_v13 = vlaneseq }
 0x524   :  { %v4499_v20 = vunpack.i.h.bf16 %v4497_v19  ;;  %v4498_v21 = vunpack.i.l.bf16 %v4497_v19 }
 0x525   :  { %v750_v22 = vsel %vm748_vm9, %v4488_v18, %v4489_v17  ;;  %v1003_v18 = vld [vmem:[#allocation21 + $0x50] sm:$0xff]  ;;  %4071 = vmatprep.subr.bf16.mxu0 %v4070_v16  ;;  %v6018_v14 = vshrl.u32 %v1112_v13, 7 }
 0x526   :  { %v4492_v23 = vpop.permute.xlu0 %4491  ;;  %v4550_v24 = vpack.i.bf16 %v4489_v17, %v750_v22  ;;  %v749_v25 = vsel %vm748_vm9, %v4498_v21, %v4499_v20  ;;  %v1001_v17 = vld [vmem:[#allocation21 + $0x40] sm:$0xff]  ;;  %v1162_v16 = vld [vmem:[#allocation24 + $0x2] ss:$8 sm:$0x3] }
 0x527   :  { %v4494_v26 = vunpack.i.h.bf16 %v4492_v23  ;;  %v4493_v27 = vunpack.i.l.bf16 %v4492_v23  ;;  %v4502_v28 = vpop.permute.xlu1 %4501  ;;  %v4560_v29 = vpack.i.bf16 %v4499_v20, %v749_v25  ;;  %v4072_v19 = vpack.c.bf16 %v1003_v18, %v1001_v17 }
 0x528   :  { %v4504_v30 = vunpack.i.h.bf16 %v4502_v28  ;;  %v4503_v31 = vunpack.i.l.bf16 %v4502_v28  ;;  %4551 = vrot.lane.b32.xlu1 %v4550_v24, %s5564_s14  ;;  %v6021_v17 = vsub.s32 0, %v6018_v14  ;;  %v6024_v18 = vsub.s32 1, %v6018_v14 }
 0x529   :  { %4561 = vrot.lane.b32.xlu0 %v4560_v29, %s5564_s14  ;;  %v765_v32 = vsel %vm763_vm10, %v4493_v27, %v4494_v26  ;;  %4073 = vmatpush1.bf16.msra.mxu0 %v4072_v19  ;;  %v1188_v19 = vld [vmem:[#allocation24 + $0x3] ss:$8 sm:$0x3] }
 0x52a   :  { %v4512_v33 = vpop.permute.xlu0 %4511  ;;  %v4555_v34 = vpack.i.bf16 %v4494_v26, %v765_v32  ;;  %v764_v35 = vsel %vm763_vm10, %v4503_v31, %v4504_v30 }
 0x52b   :  { %v4514_v36 = vunpack.i.h.bf16 %v4512_v33  ;;  %v4513_v37 = vunpack.i.l.bf16 %v4512_v33  ;;  %v4507_v38 = vpop.permute.xlu1 %4506  ;;  %v4565_v39 = vpack.i.bf16 %v4504_v30, %v764_v35 }
 0x52c   :  { %v4509_v40 = vunpack.i.h.bf16 %v4507_v38  ;;  %v4508_v41 = vunpack.i.l.bf16 %v4507_v38  ;;  %4556 = vrot.lane.b32.xlu1 %v4555_v34, %s5564_s14 }
 0x52d   :  { %4566 = vrot.lane.b32.xlu0 %v4565_v39, %s5564_s14  ;;  %v780_v42 = vsel %vm778_vm11, %v4513_v37, %v4514_v36 }
 0x52e   :  { %v4522_v43 = vpop.permute.xlu0 %4521  ;;  %v4575_v44 = vpack.i.bf16 %v4514_v36, %v780_v42  ;;  %v779_v45 = vsel %vm778_vm11, %v4508_v41, %v4509_v40  ;;  %vm1505_vm11 = vcmask 769024  }
 0x52f   :  { %v4517_v46 = vpop.permute.xlu1 %4516  ;;  %v4570_v47 = vpack.i.bf16 %v4509_v40, %v779_v45 }
 0x530   :  { %4576 = vrot.lane.b32.xlu1 %v4575_v44, %s5564_s14 }
 0x531   :  { %4571 = vrot.lane.b32.xlu0 %v4570_v47, %s5564_s14 }
 0x532   :  { %v4532_v48 = vpop.permute.xlu0 %4531 }
 0x533   :  { %v4527_v49 = vpop.permute.xlu1 %4526 }
 0x534   :  { %4586 = vrot.lane.b32.xlu1 %v4522_v43, %s5564_s14 }
 0x535   :  { %4581 = vrot.lane.b32.xlu0 %v4517_v46, %s5564_s14 }
 0x536   :  { %v4547_v50 = vpop.permute.xlu0 %4546 }
 0x537   :  { %v4537_v51 = vpop.permute.xlu1 %4536  ;;  %v4549_v52 = vunpack.i.h.bf16 %v4547_v50  ;;  %v4548_v53 = vunpack.i.l.bf16 %v4547_v50 }
 0x538   :  { %4596 = vrot.lane.b32.xlu1 %v4532_v48, %s5564_s14 }
 0x539   :  { %4591 = vrot.lane.b32.xlu0 %v4527_v49, %s5564_s14  ;;  %v884_v58 = vsel %vm883_vm12, %v4548_v53, %v4549_v52 }
 0x53b   :  { %v4542_v54 = vpop.permute.xlu1 %4541 }
 0x53c   :  { %v4544_v55 = vunpack.i.h.bf16 %v4542_v54  ;;  %v4543_v56 = vunpack.i.l.bf16 %v4542_v54  ;;  %819 = vperm.xlu1 %4605, %v815_v61  }
 0x53d   :  { %4601 = vrot.lane.b32.xlu0 %v4537_v51, %s5564_s14  ;;  %s5572_s14 = smov 15  }
 0x53e   :  { %v885_v59 = vsel %vm883_vm12, %v4543_v56, %v4544_v55 }
 0x53f   :  { %v4036_v60 = vpack.c.bf16 %v885_v59, %v884_v58 }
 0x541   :  { %4037 = vmatpush1.bf16.msra.mxu1 %v4036_v60  ;;  %824 = vperm.xlu0 %4606, %v816_v62  }
 0x542   :  { %4038 = vmatprep.subr.bf16.mxu1 %v5551_v0 }
 0x59a   :  { %v4552_v20 = vpop.permute.xlu1 %4551 }
 0x59b   :  { %v4554_v21 = vunpack.i.h.bf16 %v4552_v20  ;;  %v4553_v22 = vunpack.i.l.bf16 %v4552_v20  ;;  %v4562_v23 = vpop.permute.xlu0 %4561  ;;  %v1141_v20 = vrot.slane %v1136_v15, %v6021_v17 }
 0x59c   :  { %v4564_v24 = vunpack.i.h.bf16 %v4562_v23  ;;  %v4563_v25 = vunpack.i.l.bf16 %v4562_v23  ;;  %v1193_v23 = vrot.slane %v1188_v19, %v6021_v17 }
 0x59d   :  { %v887_v26 = vsel %vm883_vm12, %v4553_v22, %v4554_v21  ;;  %v1167_v21 = vrot.slane %v1162_v16, %v6021_v17  ;;  %1146 = vrot.lane.b32.xlu1 %v1141_v20, %s5555_s16  ;;  %v1145_v22 = vrot.slane %v1136_v15, %v6024_v18 }
 0x59e   :  { %v886_v27 = vsel %vm883_vm12, %v4563_v25, %v4564_v24  ;;  %v4557_v28 = vpop.permute.xlu1 %4556  ;;  %v1236_v24 = vld [vmem:[#allocation24 + $0x5] ss:$8 sm:$0x3]  ;;  %v1171_v25 = vrot.slane %v1162_v16, %v6024_v18 }
 0x59f   :  { %v4559_v29 = vunpack.i.h.bf16 %v4557_v28  ;;  %v4558_v30 = vunpack.i.l.bf16 %v4557_v28  ;;  %v4567_v31 = vpop.permute.xlu0 %4566  ;;  %v4039_v32 = vpack.c.bf16 %v887_v26, %v886_v27  ;;  %1172 = vrot.lane.b32.xlu0 %v1167_v21, %s5571_s10  ;;  %v1241_v26 = vrot.slane %v1236_v24, %v6021_v17  ;;  %v1262_v27 = vld [vmem:[#allocation24 + $0x6] ss:$8 sm:$0x3] }
 0x5a0   :  { %v4569_v33 = vunpack.i.h.bf16 %v4567_v31  ;;  %v4568_v34 = vunpack.i.l.bf16 %v4567_v31  ;;  %v1197_v28 = vrot.slane %v1188_v19, %v6024_v18  ;;  %v1245_v31 = vrot.slane %v1236_v24, %v6024_v18 }
 0x5a1   :  { %v889_v35 = vsel %vm883_vm12, %v4558_v30, %v4559_v29  ;;  %4040 = vmatpush1.bf16.msra.mxu1 %v4039_v32  ;;  %1148 = vrot.lane.b32.xlu1 %v1145_v22, %s5555_s16  ;;  %v1267_v29 = vrot.slane %v1262_v27, %v6021_v17  ;;  %v1288_v30 = vld [vmem:[#allocation24 + $0x7] ss:$8 sm:$0x3] }
 0x5a2   :  { %v888_v36 = vsel %vm883_vm12, %v4568_v34, %v4569_v33  ;;  %v4577_v37 = vpop.permute.xlu1 %4576  ;;  %4041 = vmatprep.subr.bf16.mxu1 %v5551_v0  ;;  %v1293_v32 = vrot.slane %v1288_v30, %v6021_v17  ;;  %v1313_v33 = vld [vmem:[#allocation24 + $0x10] ss:$8 sm:$0x3]  ;;  %v1271_v34 = vrot.slane %v1262_v27, %v6024_v18 }
 0x5a3   :  { %v4579_v38 = vunpack.i.h.bf16 %v4577_v37  ;;  %v4578_v39 = vunpack.i.l.bf16 %v4577_v37  ;;  %v4572_v40 = vpop.permute.xlu0 %4571  ;;  %v4042_v41 = vpack.c.bf16 %v889_v35, %v888_v36  ;;  %1198 = vrot.lane.b32.xlu0 %v1193_v23, %s5561_s17  ;;  %v1318_v35 = vrot.slane %v1313_v33, %v6021_v17  ;;  %v1110_v36 = vld [vmem:[#allocation24] ss:$8 sm:$0x3] }
 0x5a4   :  { %v4574_v42 = vunpack.i.h.bf16 %v4572_v40  ;;  %v4573_v43 = vunpack.i.l.bf16 %v4572_v40  ;;  %v1297_v37 = vrot.slane %v1288_v30, %v6024_v18  ;;  %v1119_v40 = vrot.slane %v1110_v36, %v6024_v18 }
 0x5a5   :  { %v891_v44 = vsel %vm883_vm12, %v4578_v39, %v4579_v38  ;;  %4043 = vmatpush1.bf16.msra.mxu1 %v4042_v41  ;;  %1174 = vrot.lane.b32.xlu1 %v1171_v25, %s5571_s10  ;;  %v1115_v38 = vrot.slane %v1110_v36, %v6021_v17  ;;  %v1322_v39 = vrot.slane %v1313_v33, %v6024_v18 }
 0x5a6   :  { %v890_v45 = vsel %vm883_vm12, %v4573_v43, %v4574_v42  ;;  %4044 = vmatprep.subr.bf16.mxu1 %v5551_v0  ;;  %v4587_v48 = vpop.permute.xlu1 %4586  ;;  %vm2852_vm12 = vcmask 252928  }
 0x5a7   :  { %v4582_v46 = vpop.permute.xlu0 %4581  ;;  %v4045_v47 = vpack.c.bf16 %v891_v44, %v890_v45  ;;  %v4589_v52 = vunpack.i.h.bf16 %v4587_v48  ;;  %v4588_v53 = vunpack.i.l.bf16 %v4587_v48  ;;  %1246 = vrot.lane.b32.xlu0 %v1241_v26, %s5562_s28 }
 0x5a8   :  { %v4584_v49 = vunpack.i.h.bf16 %v4582_v46  ;;  %v4583_v50 = vunpack.i.l.bf16 %v4582_v46 }
 0x5a9   :  { %4046 = vmatpush1.bf16.msra.mxu1 %v4045_v47  ;;  %v4051_v55 = vpack.c.bf16 %v4589_v52, %v4588_v53  ;;  %1200 = vrot.lane.b32.xlu1 %v1197_v28, %s5561_s17 }
 0x5aa   :  { %v4048_v51 = vpack.c.bf16 %v4584_v49, %v4583_v50  ;;  %4047 = vmatprep.subr.bf16.mxu1 %v5551_v0  ;;  %v4597_v58 = vpop.permute.xlu1 %4596 }
 0x5ab   :  { %v4592_v54 = vpop.permute.xlu0 %4591  ;;  %v4599_v59 = vunpack.i.h.bf16 %v4597_v58  ;;  %v4598_v60 = vunpack.i.l.bf16 %v4597_v58  ;;  %1272 = vrot.lane.b32.xlu0 %v1267_v29, %s5572_s14 }
 0x5ac   :  { %v4594_v56 = vunpack.i.h.bf16 %v4592_v54  ;;  %v4593_v57 = vunpack.i.l.bf16 %v4592_v54 }
 0x5ad   :  { %4049 = vmatpush1.bf16.msra.mxu1 %v4048_v51  ;;  %v4057_v63 = vpack.c.bf16 %v4599_v59, %v4598_v60  ;;  %1248 = vrot.lane.b32.xlu1 %v1245_v31, %s5562_s28 }
 0x5ae   :  { %4050 = vmatprep.subr.bf16.mxu1 %v5551_v0  ;;  %v4054_v61 = vpack.c.bf16 %v4594_v56, %v4593_v57 }
 0x5af   :  { %v4602_v62 = vpop.permute.xlu0 %4601  ;;  %1298 = vrot.lane.b32.xlu0 %v1293_v32, %s5539_s3 }
 0x5b0   :  { %v4604_v2 = vunpack.i.h.bf16 %v4602_v62  ;;  %v4603_v3 = vunpack.i.l.bf16 %v4602_v62 }
 0x5b1   :  { %4052 = vmatpush1.bf16.msra.mxu1 %v4051_v55  ;;  %1274 = vrot.lane.b32.xlu1 %v1271_v34, %s5572_s14 }
 0x5b2   :  { %4053 = vmatprep.subr.bf16.mxu1 %v5551_v0  ;;  %v4060_v4 = vpack.c.bf16 %v4604_v2, %v4603_v3 }
 0x5b3   :  { %1323 = vrot.lane.b32.xlu0 %v1318_v35, %s5573_s2 }
 0x5b5   :  { %4055 = vmatpush1.bf16.msra.mxu1 %v4054_v61  ;;  %1300 = vrot.lane.b32.xlu1 %v1297_v37, %s5539_s3  ;;  %s5574_s3 = smov 95  }
 0x5b6   :  { %4056 = vmatprep.subr.bf16.mxu1 %v5551_v0 }
 0x5b7   :  { %1120 = vrot.lane.b32.xlu0 %v1115_v38, %s5568_s9 }
 0x5b9   :  { %4058 = vmatpush1.bf16.msra.mxu1 %v4057_v63  ;;  %1325 = vrot.lane.b32.xlu1 %v1322_v39, %s5573_s2 }
 0x5ba   :  { %4059 = vmatprep.subr.bf16.mxu1 %v5551_v0  ;;  %v1008_v0 = vld [vmem:[#allocation21 + $0x78] sm:$0xff] }
 0x5bb   :  { %v4074_v10 = vpack.c.bf16 %v1008_v0, %v1006_v8  ;;  %v820_v41 = vpop.permute.xlu1 %819 }
 0x5bd   :  { %4061 = vmatpush1.bf16.msra.mxu1 %v4060_v4  ;;  %4075 = vmatprep.subr.bf16.mxu0 %v4074_v10 }
 0x5be   :  { %4077 = vmatpush1.bf16.msra.mxu0 %v4076_v12  ;;  %1122 = vrot.lane.b32.xlu1 %v1119_v40, %s5568_s9 }
 0x5c0   :  { %981 = vmatmul.mubr.f32.vlgmr.msra.gmra.mrb[6].mxu1 %v811_v5  ;;  %v825_v42 = vpop.permute.xlu0 %824 }
 0x5c1   :  { %3974 = vmatprep.mubr.msk.f32.mxu1 %vm538_vm7, %v814_v6  ;;  %v1213_v6 = vld [vmem:[#allocation24 + $0x4] ss:$8 sm:$0x3] }
 0x5c2   :  { %v1222_v0 = vrot.slane %v1213_v6, %v6024_v18 }
 0x5c4   :  { %986 = vmatmul.mubr.f32.gmra.mrb[8].mxu1 %v813_v7  ;;  %v1218_v7 = vrot.slane %v1213_v6, %v6021_v17 }
 0x60f   :  { %v1147_v47 = vpop.permute.xlu1 %1146 }
 0x610   :  { %v1155_v50 = vmul.f32 0.0, %v1147_v47 }
 0x611   :  { %v1173_v48 = vpop.permute.xlu0 %1172 }
 0x612   :  { %v1181_v51 = vmul.f32 0.0, %v1173_v48  ;;  %v4607_v54 = vpack.i.bf16 %v1155_v50, %v1155_v50 }
 0x613   :  { %v1149_v60 = vpop.permute.xlu1 %1148 }
 0x614   :  { %v4612_v55 = vpack.i.bf16 %v1181_v51, %v1181_v51  ;;  %4608 = vrot.lane.b32.xlu0 %v4607_v54, %s5561_s17  ;;  %v1151_v10 = vsel %vm1150_vm13, %v1147_v47, %v1149_v60 }
 0x615   :  { %v1199_v57 = vpop.permute.xlu0 %1198 }
 0x616   :  { %4613 = vrot.lane.b32.xlu1 %v4612_v55, %s5566_s23  ;;  %v1206_v58 = vmul.f32 0.0, %v1199_v57 }
 0x617   :  { %v1175_v61 = vpop.permute.xlu1 %1174 }
 0x618   :  { %v4617_v59 = vpack.i.bf16 %v1206_v58, %v1206_v58  ;;  %v1177_v11 = vsel %vm1176_vm14, %v1173_v48, %v1175_v61  ;;  %vm3268_vm14 = vcmask 515072  }
 0x619   :  { %v1247_v63 = vpop.permute.xlu0 %1246 }
 0x61a   :  { %4618 = vrot.lane.b32.xlu0 %v4617_v59, %s5555_s16 }
 0x61b   :  { %v1201_v62 = vpop.permute.xlu1 %1200 }
 0x61c   :  { %v1202_v8 = vsel %vm748_vm9, %v1199_v57, %v1201_v62 }
 0x61f   :  { %v1249_v2 = vpop.permute.xlu1 %1248 }
 0x620   :  { %v6075_v12 = vsel %vm1250_vm15, %v1247_v63, %v1249_v2 }
 0x623   :  { %v6062_v3 = vpop.permute.xlu1 %1274 }
 0x627   :  { %v6066_v5 = vpop.permute.xlu1 %1300 }
 0x62b   :  { %v6081_v15 = vpop.permute.xlu1 %1325 }
 0x693   :  { %v982_v43 = vpop.f32.mrb[6].mxu1 }
 0x694   :  { %v983_v44 = vadd.f32 %v982_v43, %v820_v41  ;;  %v984_v45 = vpop.f32.mrb[7].mxu1  ;;  %v1123_v43 = vpop.permute.xlu1 %1122 }
 0x696   :  { %v991_v46 = vmax.f32 %v983_v44, 0.0 }
 0x697   :  { %v987_v49 = vpop.f32.mrb[8].mxu1 }
 0x698   :  { %v988_v52 = vadd.f32 %v987_v49, %v825_v42  ;;  %3975 = vmatmul.mubr.msk.f32.vlgmr.msra.gmra.mrb[0].mxu0 %vm622_vm8, %v991_v46  ;;  %v989_v53 = vpop.f32.mrb[9].mxu1  ;;  %v1257_v42 = vmul.f32 0.0, %v1249_v2 }
 0x699   :  { %1085 = vmatprep.mubr.f32.mxu0 %v5552_v1  ;;  %v6060_v1 = vpop.permute.xlu0 %1272 }
 0x69a   :  { %v992_v56 = vmax.f32 %v988_v52, 0.0  ;;  %v6079_v13 = vsel %vm1276_vm0, %v6060_v1, %v6062_v3 }
 0x69c   :  { %3976 = vmatmul.mubr.msk.f32.gmra.mrb[2].mxu0 %vm622_vm8, %v992_v56 }
 0x69d   :  { %v6064_v4 = vpop.permute.xlu0 %1298 }
 0x69e   :  { %v1302_v51 = vsel %vm538_vm7, %v6064_v4, %v6066_v5 }
 0x6a1   :  { %v6071_v9 = vpop.permute.xlu0 %1323 }
 0x6a2   :  { %v1328_v55 = vsel %vm1327_vm1, %v6071_v9, %v6081_v15 }
 0x6a5   :  { %v6093_v44 = vpop.permute.xlu0 %1120 }
 0x6a6   :  { %v1125_v56 = vsel %vm1124_vm2, %v6093_v44, %v1123_v43 }
 0x76b   :  { %v1081_v16 = vpop.f32.mrb[0].mxu0 }
 0x76c   :  { %v1083_v19 = vpop.f32.mrb[1].mxu0  ;;  %v1182_v20 = vmul.f32 %v1177_v11, %v1081_v16  ;;  %v1156_v21 = vmul.f32 %v1151_v10, %v1081_v16  ;;  %v1225_v22 = vmul.f32 %v1218_v7, %v1081_v16  ;;  %v1207_v23 = vmul.f32 %v1202_v8, %v1081_v16 }
 0x76d   :  { %v1183_v24 = vmul.f32 %v1175_v61, %v1083_v19  ;;  %v1157_v25 = vmul.f32 %v1149_v60, %v1083_v19  ;;  %v1226_v26 = vmul.f32 %v1222_v0, %v1083_v19  ;;  %v1208_v27 = vmul.f32 %v1201_v62, %v1083_v19 }
 0x76e   :  { %v1255_v28 = vmul.f32 %v1247_v63, %v1081_v16  ;;  %v1256_v29 = vmul.f32 %v6075_v12, %v1083_v19  ;;  %v1281_v30 = vmul.f32 %v6060_v1, %v1081_v16  ;;  %v1282_v31 = vmul.f32 %v6079_v13, %v1083_v19 }
 0x76f   :  { %v6086_v32 = vpop.f32.mrb[2].mxu0  ;;  %v4627_v33 = vpack.i.bf16 %v1183_v24, %v1182_v20  ;;  %v4622_v34 = vpack.i.bf16 %v1157_v25, %v1156_v21  ;;  %v4637_v35 = vpack.i.bf16 %v1226_v26, %v1225_v22  ;;  %v4632_v36 = vpack.i.bf16 %v1208_v27, %v1207_v23 }
 0x770   :  { %v6088_v37 = vpop.f32.mrb[3].mxu0  ;;  %v1258_v38 = vmul.f32 %v1247_v63, %v6086_v32  ;;  %v1159_v39 = vmul.f32 %v1151_v10, %v6086_v32  ;;  %v1185_v40 = vmul.f32 %v1177_v11, %v6086_v32  ;;  %v4647_v41 = vpack.i.bf16 %v1256_v29, %v1255_v28 }
 0x771   :  { %4628 = vrot.lane.b32.xlu1 %v4627_v33, %s5566_s23  ;;  %4623 = vrot.lane.b32.xlu0 %v4622_v34, %s5561_s17  ;;  %v1160_v45 = vmul.f32 %v1149_v60, %v6088_v37  ;;  %v1186_v46 = vmul.f32 %v1175_v61, %v6088_v37  ;;  %v4662_v47 = vpack.i.bf16 %v1282_v31, %v1281_v30  ;;  %v1283_v21 = vmul.f32 0.0, %v6062_v3 }
 0x772   :  { %v1210_v48 = vmul.f32 %v1202_v8, %v6086_v32  ;;  %v1211_v49 = vmul.f32 %v1201_v62, %v6088_v37  ;;  %v1227_v50 = vmul.f32 %v1218_v7, %v6086_v32  ;;  %v1228_v54 = vmul.f32 %v1222_v0, %v6088_v37 }
 0x773   :  { %v4642_v52 = vpack.i.bf16 %v1160_v45, %v1159_v39  ;;  %v4657_v53 = vpack.i.bf16 %v1186_v46, %v1185_v40  ;;  %v4652_v58 = vpack.i.bf16 %v1258_v38, %v1257_v42  ;;  %v1306_v60 = vmul.f32 %v6064_v4, %v1081_v16 }
 0x774   :  { %v4667_v57 = vpack.i.bf16 %v1211_v49, %v1210_v48  ;;  %v4677_v59 = vpack.i.bf16 %v1228_v54, %v1227_v50  ;;  %v1307_v61 = vmul.f32 %v1302_v51, %v1083_v19  ;;  %v1332_v62 = vmul.f32 %v6071_v9, %v1081_v16 }
 0x775   :  { %4638 = vrot.lane.b32.xlu1 %v4637_v35, %s5568_s9  ;;  %4633 = vrot.lane.b32.xlu0 %v4632_v36, %s5555_s16  ;;  %v1333_v63 = vmul.f32 %v1328_v55, %v1083_v19  ;;  %v1130_v6 = vmul.f32 %v1125_v56, %v1081_v16  ;;  %v1131_v7 = vmul.f32 %v1123_v43, %v1083_v19  ;;  %v1308_v19 = vmul.f32 0.0, %v6066_v5 }
 0x776   :  { %v4687_v2 = vpack.i.bf16 %v1307_v61, %v1306_v60  ;;  %v1133_v10 = vmul.f32 %v1125_v56, %v6086_v32  ;;  %v1134_v11 = vmul.f32 %v1123_v43, %v6088_v37  ;;  %v1284_v16 = vmul.f32 %v6060_v1, %v6086_v32 }
 0x777   :  { %v4702_v8 = vpack.i.bf16 %v1333_v63, %v1332_v62  ;;  %v4722_v0 = vpack.i.bf16 %v1131_v7, %v1130_v6  ;;  %v1309_v23 = vmul.f32 %v6064_v4, %v6086_v32  ;;  %v1259_v24 = vmul.f32 %v6075_v12, %v6088_v37 }
 0x778   :  { %v4732_v20 = vpack.i.bf16 %v1134_v11, %v1133_v10  ;;  %v4672_v22 = vpack.i.bf16 %v1284_v16, %v1283_v21  ;;  %v1285_v1 = vmul.f32 %v6079_v13, %v6088_v37  ;;  %v1310_v4 = vmul.f32 %v1302_v51, %v6088_v37 }
 0x779   :  { %4653 = vrot.lane.b32.xlu0 %v4652_v58, %s5569_s19  ;;  %4643 = vrot.lane.b32.xlu1 %v4642_v52, %s5561_s17  ;;  %v4692_v3 = vpack.i.bf16 %v1309_v23, %v1308_v19  ;;  %v4682_v25 = vpack.i.bf16 %v1257_v42, %v1259_v24  ;;  %v1334_v12 = vmul.f32 0.0, %v6081_v15  ;;  %v1336_v27 = vmul.f32 %v1328_v55, %v6088_v37 }
 0x77a   :  { %v4697_v5 = vpack.i.bf16 %v1283_v21, %v1285_v1  ;;  %v4707_v26 = vpack.i.bf16 %v1308_v19, %v1310_v4  ;;  %v1335_v13 = vmul.f32 %v6071_v9, %v6086_v32  ;;  %v1129_v30 = vmul.f32 0.0, %v6093_v44  ;;  %v4609_v9 = vpop.permute.xlu0 %4608  ;;  %v4614_v32 = vpop.permute.xlu1 %4613 }
 0x77b   :  { %v4717_v28 = vpack.i.bf16 %v1334_v12, %v1336_v27  ;;  %v4611_v55 = vunpack.i.h.bf16 %v4609_v9  ;;  %v4610_v56 = vunpack.i.l.bf16 %v4609_v9  ;;  %v4616_v63 = vunpack.i.h.bf16 %v4614_v32 }
 0x77c   :  { %v4712_v29 = vpack.i.bf16 %v1335_v13, %v1334_v12  ;;  %v4727_v15 = vpack.i.bf16 %v1129_v30, %v1129_v30 }
 0x77d   :  { %4658 = vrot.lane.b32.xlu0 %v4657_v53, %s5566_s23  ;;  %4648 = vrot.lane.b32.xlu1 %v4647_v41, %s5569_s19 }
 0x77e   :  { %v4619_v31 = vpop.permute.xlu0 %4618 }
 0x77f   :  { %v4621_v10 = vunpack.i.h.bf16 %v4619_v31  ;;  %v4620_v11 = vunpack.i.l.bf16 %v4619_v31 }
 0x781   :  { %4663 = vrot.lane.b32.xlu0 %v4662_v47, %s5556_s6  ;;  %4668 = vrot.lane.b32.xlu1 %v4667_v57, %s5555_s16  ;;  %s5575_s16 = smov 94  }
 0x785   :  { %4678 = vrot.lane.b32.xlu0 %v4677_v59, %s5568_s9  ;;  %4673 = vrot.lane.b32.xlu1 %v4672_v22, %s5556_s6  ;;  %s7597_s9 = sld [smem:[#allocation78_spill]] }
 0x789   :  { %4693 = vrot.lane.b32.xlu0 %v4692_v3, %s5574_s3  ;;  %4683 = vrot.lane.b32.xlu1 %v4682_v25, %s5569_s19  ;;  %s5581_s19 = smov [#allocation29]  }
 0x78a   :  { %s3937_s22 = sshll.u32 %s5581_s19, 4  ;;  %s3938_s22 = int_to_ptr.vmem [resolvable:$true] %s3937_s22 }
 0x78b   :  { %s5491_s29 = scalar_lea.vmem %s3938_s22, 1024  ;;  %p5496_p1 = scmp.lt.s32.totalorder %s3938_s22, %s3938_s22 }
 0x78c   :  { %p5492_p0 = scmp.ne.s32.totalorder %s3938_s22, %s5491_s29  ;;  %p5497_p2 = scmp.lt.s32.totalorder %s5491_s29, %s5491_s29 }
 0x78d   :  { %4698 = vrot.lane.b32.xlu0 %v4697_v5, %s5556_s6  ;;  %4688 = vrot.lane.b32.xlu1 %v4687_v2, %s5574_s3  ;;  %v4615_v2 = vunpack.i.l.bf16 %v4614_v32 }
 0x78e   :  { %p5498_p3 = por %p5497_p2, %p5496_p1 }
 0x790   :  { %p5499_p4 = pnand %p5498_p3, %p5492_p0 }
 0x791   :  { %4703 = vrot.lane.b32.xlu0 %v4702_v8, %s5575_s16  ;;  %4708 = vrot.lane.b32.xlu1 %v4707_v26, %s5574_s3 }
 0x795   :  { %4718 = vrot.lane.b32.xlu0 %v4717_v28, %s5575_s16  ;;  %4713 = vrot.lane.b32.xlu1 %v4712_v29, %s5575_s16 }
 0x799   :  { %4723 = vrot.lane.b32.xlu1 %v4722_v0, %s5573_s2  ;;  %4733 = vrot.lane.b32.xlu0 %v4732_v20, %s5573_s2 }
 0x79d   :  { %4728 = vrot.lane.b32.xlu1 %v4727_v15, %s5573_s2 }
 0x7e3   :  { %v4629_v33 = vpop.permute.xlu1 %4628  ;;  %v4624_v34 = vpop.permute.xlu0 %4623 }
 0x7e4   :  { %v4631_v35 = vunpack.i.h.bf16 %v4629_v33  ;;  %v4630_v36 = vunpack.i.l.bf16 %v4629_v33  ;;  %v4626_v37 = vunpack.i.h.bf16 %v4624_v34  ;;  %v4625_v38 = vunpack.i.l.bf16 %v4624_v34 }
 0x7e6   :  { %v1379_v39 = vsel %vm763_vm10, %v4630_v36, %v4631_v35  ;;  %v1357_v40 = vsel %vm748_vm9, %v4625_v38, %v4626_v37  ;;  %v1356_v58 = vsel %vm748_vm9, %v4610_v56, %v4625_v38  ;;  %v1378_v8 = vsel %vm763_vm10, %v4615_v2, %v4630_v36 }
 0x7e7   :  { %v4639_v41 = vpop.permute.xlu1 %4638  ;;  %v4634_v42 = vpop.permute.xlu0 %4633  ;;  %v4742_v43 = vpack.i.bf16 %v4631_v35, %v1379_v39  ;;  %v4737_v44 = vpack.i.bf16 %v4626_v37, %v1357_v40 }
 0x7e8   :  { %v4641_v45 = vunpack.i.h.bf16 %v4639_v41  ;;  %v4640_v46 = vunpack.i.l.bf16 %v4639_v41  ;;  %v4636_v47 = vunpack.i.h.bf16 %v4634_v42  ;;  %v4635_v48 = vunpack.i.l.bf16 %v4634_v42 }
 0x7e9   :  { %4743 = vrot.lane.b32.xlu1 %v4742_v43, %s5573_s2  ;;  %4738 = vrot.lane.b32.xlu0 %v4737_v44, %s5573_s2 }
 0x7ea   :  { %v1416_v49 = vsel %vm1124_vm2, %v4640_v46, %v4641_v45  ;;  %v1401_v50 = vsel %vm1150_vm13, %v4635_v48, %v4636_v47  ;;  %v1400_v25 = vsel %vm1150_vm13, %v4620_v11, %v4635_v48 }
 0x7eb   :  { %v6158_v51 = vpop.permute.xlu0 %4653  ;;  %v4644_v52 = vpop.permute.xlu1 %4643  ;;  %v4752_v53 = vpack.i.bf16 %v4641_v45, %v1416_v49  ;;  %v4747_v54 = vpack.i.bf16 %v4636_v47, %v1401_v50 }
 0x7ec   :  { %v4645_v57 = vunpack.i.l.bf16 %v4644_v52  ;;  %v4646_v6 = vunpack.i.h.bf16 %v4644_v52  ;;  %v4655_v3 = vunpack.i.l.bf16 %v6158_v51 }
 0x7ed   :  { %4753 = vrot.lane.b32.xlu1 %v4752_v53, %s5573_s2  ;;  %4748 = vrot.lane.b32.xlu0 %v4747_v54, %s5573_s2 }
 0x7ee   :  { %v1358_v59 = vsel %vm748_vm9, %v4611_v55, %v4645_v57  ;;  %v1359_v24 = vsel %vm748_vm9, %v4645_v57, %v4646_v6 }
 0x7ef   :  { %v4659_v60 = vpop.permute.xlu0 %4658  ;;  %v4649_v61 = vpop.permute.xlu1 %4648  ;;  %v4757_v62 = vpack.i.bf16 %v1358_v59, %v1356_v58  ;;  %v4772_v26 = vpack.i.bf16 %v4646_v6, %v1359_v24 }
 0x7f0   :  { %v4660_v7 = vunpack.i.l.bf16 %v4659_v60  ;;  %v4651_v19 = vunpack.i.h.bf16 %v4649_v61  ;;  %v4650_v22 = vunpack.i.l.bf16 %v4649_v61  ;;  %v4661_v5 = vunpack.i.h.bf16 %v4659_v60 }
 0x7f1   :  { %4758 = vrot.lane.b32.xlu0 %v4757_v62, %s5573_s2 }
 0x7f2   :  { %v1380_v0 = vsel %vm763_vm10, %v4616_v63, %v4660_v7  ;;  %v1437_v29 = vsel %vm1436_vm3, %v4650_v22, %v4651_v19  ;;  %v1438_v30 = vsel %vm1436_vm3, %v4651_v19, %v4655_v3  ;;  %v1381_v35 = vsel %vm763_vm10, %v4660_v7, %v4661_v5 }
 0x7f3   :  { %v6167_v20 = vpop.permute.xlu0 %4663  ;;  %v4669_v21 = vpop.permute.xlu1 %4668  ;;  %v4762_v16 = vpack.i.bf16 %v1380_v0, %v1378_v8  ;;  %v4782_v32 = vpack.i.bf16 %v1438_v30, %v1437_v29  ;;  %v4787_v42 = vpack.i.bf16 %v4661_v5, %v1381_v35 }
 0x7f4   :  { %v4670_v23 = vunpack.i.l.bf16 %v4669_v21  ;;  %v4671_v13 = vunpack.i.h.bf16 %v4669_v21  ;;  %v4666_v36 = vunpack.i.h.bf16 %v6167_v20  ;;  %v4665_v37 = vunpack.i.l.bf16 %v6167_v20 }
 0x7f5   :  { %4763 = vrot.lane.b32.xlu1 %v4762_v16, %s5573_s2 }
 0x7f6   :  { %v1402_v1 = vsel %vm1150_vm13, %v4621_v10, %v4670_v23  ;;  %v1403_v34 = vsel %vm1150_vm13, %v4670_v23, %v4671_v13  ;;  %v1460_v47 = vsel %vm1459_vm5, %v4665_v37, %v4666_v36  ;;  %vm3009_vm13 = vcmask 269312  }
 0x7f7   :  { %v4679_v4 = vpop.permute.xlu0 %4678  ;;  %v6174_v12 = vpop.permute.xlu1 %4673  ;;  %v4767_v27 = vpack.i.bf16 %v1402_v1, %v1400_v25  ;;  %v4797_v41 = vpack.i.bf16 %v4671_v13, %v1403_v34 }
 0x7f8   :  { %v4680_v28 = vunpack.i.l.bf16 %v4679_v4  ;;  %v4675_v33 = vunpack.i.l.bf16 %v6174_v12  ;;  %v4681_v38 = vunpack.i.h.bf16 %v4679_v4  ;;  %v4676_v57 = vunpack.i.h.bf16 %v6174_v12 }
 0x7f9   :  { %4773 = vrot.lane.b32.xlu1 %v4772_v26, %s5573_s2  ;;  %4768 = vrot.lane.b32.xlu0 %v4767_v27, %s5573_s2 }
 0x7fa   :  { %v4777_v15 = vpack.i.bf16 %v4680_v28, %v4640_v46  ;;  %v1461_v45 = vsel %vm1459_vm5, %v4666_v36, %v4675_v33  ;;  %v4656_v46 = vunpack.i.h.bf16 %v6158_v51  ;;  %v1417_v53 = vsel %vm1124_vm2, %v4680_v28, %v4681_v38 }
 0x7fb   :  { %v6180_v9 = vpop.permute.xlu0 %4693  ;;  %v4684_v31 = vpop.permute.xlu1 %4683  ;;  %v4802_v50 = vpack.i.bf16 %v1461_v45, %v1460_v47  ;;  %v4807_v7 = vpack.i.bf16 %v4681_v38, %v1417_v53  ;;  %v4817_v11 = vpack.i.bf16 %v4676_v57, %v4665_v37  ;;  %v1512_v47 = vld [vmem:[%s7467_s15] sm:$0xff]  ;;  %s5576_s15 = smov 97  }
 0x7fc   :  { %v4686_v43 = vunpack.i.h.bf16 %v4684_v31  ;;  %v4685_v44 = vunpack.i.l.bf16 %v4684_v31  ;;  %v4792_v52 = vpack.i.bf16 %v4656_v46, %v4650_v22  ;;  %v4695_v58 = vunpack.i.l.bf16 %v6180_v9  ;;  %v2426_v53 = vld [vmem:[#allocation27 + $0x1] ss:$8 sm:$0xf0] }
 0x7fd   :  { %4778 = vrot.lane.b32.xlu1 %v4777_v15, %s5573_s2  ;;  %4783 = vrot.lane.b32.xlu0 %v4782_v32, %s5573_s2  ;;  %v4696_v10 = vunpack.i.h.bf16 %v6180_v9 }
 0x7fe   :  { %v1439_v54 = vsel %vm1436_vm3, %v4656_v46, %v4685_v44  ;;  %v1440_v55 = vsel %vm1436_vm3, %v4685_v44, %v4686_v43 }
 0x7ff   :  { %v4699_v39 = vpop.permute.xlu0 %4698  ;;  %v6189_v40 = vpop.permute.xlu1 %4688  ;;  %v4812_v6 = vpack.i.bf16 %v1440_v55, %v1439_v54 }
 0x800   :  { %v4691_v56 = vunpack.i.h.bf16 %v6189_v40  ;;  %v4690_v51 = vunpack.i.l.bf16 %v6189_v40  ;;  %v4701_v59 = vunpack.i.h.bf16 %v4699_v39  ;;  %v4700_v60 = vunpack.i.l.bf16 %v4699_v39  ;;  %v1511_v39 = vld [vmem:[#allocation23 + $0x8] sm:$0xff] }
 0x801   :  { %4798 = vrot.lane.b32.xlu1 %v4797_v41, %s5573_s2  ;;  %4788 = vrot.lane.b32.xlu0 %v4787_v42, %s5573_s2 }
 0x802   :  { %v1484_v8 = vsel %vm1482_vm6, %v4691_v56, %v4695_v58  ;;  %v1483_v0 = vsel %vm1482_vm6, %v4690_v51, %v4691_v56  ;;  %v1462_v20 = vsel %vm1459_vm5, %v4676_v57, %v4700_v60  ;;  %v1463_v21 = vsel %vm1459_vm5, %v4700_v60, %v4701_v59  ;;  %3977 = vmatprep.mubr.msk.f32.mxu0 %vm538_vm7, %v1511_v39  ;;  %v1781_v57 = vld [vmem:[#allocation26 + $0x8] sm:$0xff]  ;;  %v1780_v59 = vld [vmem:[#allocation26] sm:$0xff] }
 0x803   :  { %v6196_v48 = vpop.permute.xlu0 %4703  ;;  %v4709_v49 = vpop.permute.xlu1 %4708  ;;  %v4822_v3 = vpack.i.bf16 %v1484_v8, %v1483_v0  ;;  %v4827_v12 = vpack.i.bf16 %v1463_v21, %v1462_v20  ;;  %v4832_v40 = vpack.i.bf16 %v4696_v10, %v4690_v51  ;;  %v6248_v51 = vsub.s32 2, %v6018_v14  ;;  %v1789_v58 = vld [vmem:[#allocation26 + $0x48] sm:$0xff] }
 0x804   :  { %v4711_v61 = vunpack.i.h.bf16 %v4709_v49  ;;  %v4710_v62 = vunpack.i.l.bf16 %v4709_v49  ;;  %v4706_v26 = vunpack.i.h.bf16 %v6196_v48  ;;  %v4705_v27 = vunpack.i.l.bf16 %v6196_v48  ;;  %v2347_v48 = vld [vmem:[#allocation27] ss:$8 sm:$0xf]  ;;  %v2503_v8 = vld [vmem:[#allocation27 + $0x2] ss:$8 sm:$0xf] }
 0x805   :  { %4803 = vrot.lane.b32.xlu1 %v4802_v50, %s5573_s2  ;;  %4793 = vrot.lane.b32.xlu0 %v4792_v52, %s5573_s2  ;;  %v2348_v49 = vld [vmem:[#allocation27] ss:$8 sm:$0xf0]  ;;  %v2425_v52 = vld [vmem:[#allocation27 + $0x1] ss:$8 sm:$0xf]  ;;  %v4114_v60 = vpack.c.bf16 %v1789_v58, %v1781_v57 }
 0x806   :  { %v1485_v16 = vsel %vm1482_vm6, %v4696_v10, %v4710_v62  ;;  %v1486_v19 = vsel %vm1482_vm6, %v4710_v62, %v4711_v61  ;;  %v1506_v36 = vsel %vm1505_vm11, %v4705_v27, %v4706_v26  ;;  %v6238_v50 = vor.u32 %v2348_v49, %v2347_v48  ;;  %v1788_v61 = vld [vmem:[#allocation26 + $0x40] sm:$0xff] }
 0x807   :  { %v4719_v63 = vpop.permute.xlu0 %4718  ;;  %v4714_v2 = vpop.permute.xlu1 %4713  ;;  %v4837_v9 = vpack.i.bf16 %v1486_v19, %v1485_v16  ;;  %v6240_v54 = vor.u32 %v2426_v53, %v2425_v52  ;;  %v4116_v62 = vpack.c.bf16 %v1788_v61, %v1780_v59  ;;  %4115 = vmatprep.subr.bf16.mxu1 %v4114_v60  ;;  %v1796_v10 = vld [vmem:[#allocation26 + $0x80] sm:$0xff]  ;;  %v1813_v16 = vld [vmem:[#allocation26 + $0x108] sm:$0xff]  ;;  %vm2555_vm7 = vcmask 793600  }
 0x808   :  { %v4715_v22 = vunpack.i.l.bf16 %v4714_v2  ;;  %v4721_v29 = vunpack.i.h.bf16 %v4719_v63  ;;  %v4720_v30 = vunpack.i.l.bf16 %v4719_v63  ;;  %v4716_v32 = vunpack.i.h.bf16 %v4714_v2  ;;  %v1797_v63 = vld [vmem:[#allocation26 + $0x88] sm:$0xff]  ;;  %v1876_v57 = vld [vmem:[#allocation26 + $0x300] sm:$0xff] }
 0x809   :  { %4813 = vrot.lane.b32.xlu1 %v4812_v6, %s5573_s2  ;;  %4808 = vrot.lane.b32.xlu0 %v4807_v7, %s5573_s2  ;;  %v2354_v55 = vrot.slane %v6238_v50, %v6021_v17  ;;  %v2432_v56 = vrot.slane %v6240_v54, %v6021_v17  ;;  %v1805_v2 = vld [vmem:[#allocation26 + $0xc8] sm:$0xff]  ;;  %v2440_v6 = vrot.slane %v6240_v54, %v6248_v51  ;;  %v6254_v7 = vsub.s32 4, %v6018_v14  ;;  %v1884_v58 = vld [vmem:[#allocation26 + $0x340] sm:$0xff] }
 0x80a   :  { %v1507_v33 = vsel %vm1505_vm11, %v4706_v26, %v4715_v22  ;;  %v1509_v43 = vsel %vm1505_vm11, %v4720_v30, %v4721_v29  ;;  %v1508_v44 = vsel %vm1505_vm11, %v4716_v32, %v4720_v30  ;;  %v4852_v45 = vpack.i.bf16 %v4716_v32, %v4705_v27  ;;  %v2504_v20 = vld [vmem:[#allocation27 + $0x2] ss:$8 sm:$0xf0]  ;;  %4117 = vmatpush1.bf16.msra.mxu1 %v4116_v62  ;;  %v2582_v39 = vld [vmem:[#allocation27 + $0x3] ss:$8 sm:$0xf] }
 0x80b   :  { %v4724_v23 = vpop.permute.xlu1 %4723  ;;  %v4734_v24 = vpop.permute.xlu0 %4733  ;;  %v4842_v41 = vpack.i.bf16 %v1507_v33, %v1506_v36  ;;  %v4847_v46 = vpack.i.bf16 %v1509_v43, %v1508_v44  ;;  %7530 = vst [vmem:[#allocation39_spill] sm:$0xff] %v6254_v7  ;;  %v4118_v0 = vpack.c.bf16 %v1805_v2, %v1797_v63  ;;  %v2358_v19 = vrot.slane %v6238_v50, %v6024_v18  ;;  %v1821_v22 = vld [vmem:[#allocation26 + $0x148] sm:$0xff]  ;;  %v1860_v44 = vld [vmem:[#allocation26 + $0x280] sm:$0xff] }
 0x80c   :  { %v4726_v25 = vunpack.i.h.bf16 %v4724_v23  ;;  %v4725_v1 = vunpack.i.l.bf16 %v4724_v23  ;;  %v4736_v5 = vunpack.i.h.bf16 %v4734_v24  ;;  %v4735_v4 = vunpack.i.l.bf16 %v4734_v24  ;;  %v1812_v24 = vld [vmem:[#allocation26 + $0x100] sm:$0xff]  ;;  %v1845_v30 = vld [vmem:[#allocation26 + $0x208] sm:$0xff] }
 0x80d   :  { %4818 = vrot.lane.b32.xlu1 %v4817_v11, %s5573_s2  ;;  %4823 = vrot.lane.b32.xlu0 %v4822_v3, %s5573_s2  ;;  %v1804_v11 = vld [vmem:[#allocation26 + $0xc0] sm:$0xff]  ;;  %v4122_v23 = vpack.c.bf16 %v1821_v22, %v1813_v16  ;;  %v2436_v26 = vrot.slane %v6240_v54, %v6024_v18  ;;  %v6267_v29 = vsub.s32 3, %v6018_v14  ;;  %v1861_v36 = vld [vmem:[#allocation26 + $0x288] sm:$0xff]  ;;  %v4140_v62 = vpack.c.bf16 %v1884_v58, %v1876_v57 }
 0x80e   :  { %v1633_v13 = vsel %vm1327_vm1, %v4725_v1, %v4726_v25  ;;  %v1635_v28 = vsel %vm1327_vm1, %v4735_v4, %v4736_v5  ;;  %v4120_v21 = vpack.c.bf16 %v1804_v11, %v1796_v10  ;;  %4119 = vmatprep.subr.bf16.mxu1 %v4118_v0  ;;  %v1820_v3 = vld [vmem:[#allocation26 + $0x140] sm:$0xff]  ;;  %v2448_v25 = vrot.slane %v6240_v54, %v6254_v7  ;;  %v1829_v5 = vld [vmem:[#allocation26 + $0x188] sm:$0xff] }
 0x80f   :  { %v4729_v15 = vpop.permute.xlu1 %4728  ;;  %v4078_v31 = vpack.c.bf16 %v1635_v28, %v1633_v13  ;;  %v1828_v13 = vld [vmem:[#allocation26 + $0x180] sm:$0xff]  ;;  %v2444_v32 = vrot.slane %v6240_v54, %v6267_v29  ;;  %v1893_v59 = vld [vmem:[#allocation26 + $0x388] sm:$0xff] }
 0x810   :  { %v4731_v34 = vunpack.i.h.bf16 %v4729_v15  ;;  %v4730_v35 = vunpack.i.l.bf16 %v4729_v15  ;;  %4121 = vmatpush1.bf16.msra.mxu1 %v4120_v21  ;;  %v1836_v28 = vld [vmem:[#allocation26 + $0x1c0] sm:$0xff]  ;;  %v1901_v60 = vld [vmem:[#allocation26 + $0x3c8] sm:$0xff] }
 0x811   :  { %4838 = vrot.lane.b32.xlu1 %v4837_v9, %s5573_s2  ;;  %4828 = vrot.lane.b32.xlu0 %v4827_v12, %s5573_s2  ;;  %v1837_v12 = vld [vmem:[#allocation26 + $0x1c8] sm:$0xff]  ;;  %v4142_v63 = vpack.c.bf16 %v1901_v60, %v1893_v59  ;;  %v1892_v2 = vld [vmem:[#allocation26 + $0x380] sm:$0xff] }
 0x812   :  { %v1632_v37 = vsel %vm1327_vm1, %v4730_v35, %v4725_v1  ;;  %v1634_v38 = vsel %vm1327_vm1, %v4731_v34, %v4735_v4  ;;  %4079 = vmatprep.subr.bf16.mxu0 %v4078_v31  ;;  %v6262_v1 = vor.u32 %v2504_v20, %v2503_v8  ;;  %v4124_v4 = vpack.c.bf16 %v1820_v3, %v1812_v24  ;;  %v1853_v9 = vld [vmem:[#allocation26 + $0x248] sm:$0xff]  ;;  %v1844_v34 = vld [vmem:[#allocation26 + $0x200] sm:$0xff] }
 0x813   :  { %v4080_v42 = vpack.c.bf16 %v1634_v38, %v1632_v37  ;;  %4123 = vmatprep.subr.bf16.mxu1 %v4122_v23  ;;  %v4126_v27 = vpack.c.bf16 %v1837_v12, %v1829_v5  ;;  %v4128_v31 = vpack.c.bf16 %v1836_v28, %v1828_v13  ;;  %v4130_v33 = vpack.c.bf16 %v1853_v9, %v1845_v30  ;;  %v1852_v35 = vld [vmem:[#allocation26 + $0x240] sm:$0xff]  ;;  %v1869_v37 = vld [vmem:[#allocation26 + $0x2c8] sm:$0xff] }
 0x814   :  { %v2510_v15 = vrot.slane %v6262_v1, %v6021_v17  ;;  %4125 = vmatpush1.bf16.msra.mxu1 %v4124_v4  ;;  %v2518_v38 = vrot.slane %v6262_v1, %v6248_v51  ;;  %v4134_v43 = vpack.c.bf16 %v1869_v37, %v1861_v36  ;;  %v2526_v49 = vrot.slane %v6262_v1, %v6254_v7  ;;  %v1909_v0 = vld [vmem:[#allocation26 + $0x408] sm:$0xff]  ;;  %v1908_v22 = vld [vmem:[#allocation26 + $0x400] sm:$0xff] }
 0x815   :  { %4843 = vrot.lane.b32.xlu1 %v4842_v41, %s5573_s2  ;;  %4833 = vrot.lane.b32.xlu0 %v4832_v40, %s5573_s2  ;;  %v2583_v40 = vld [vmem:[#allocation27 + $0x3] ss:$8 sm:$0xf0]  ;;  %v4132_v41 = vpack.c.bf16 %v1852_v35, %v1844_v34  ;;  %v2522_v8 = vrot.slane %v6262_v1, %v6267_v29  ;;  %v2722_v20 = vld [vmem:[#allocation27 + $0x5] ss:$8 sm:$0xf] }
 0x816   :  { %4081 = vmatpush1.bf16.msra.mxu0 %v4080_v42  ;;  %4127 = vmatprep.subr.bf16.mxu1 %v4126_v27  ;;  %v6280_v42 = vsub.s32 5, %v6018_v14  ;;  %v6287_v52 = vor.u32 %v2583_v40, %v2582_v39  ;;  %v1917_v10 = vld [vmem:[#allocation26 + $0x448] sm:$0xff]  ;;  %v1916_v23 = vld [vmem:[#allocation26 + $0x440] sm:$0xff] }
 0x817   :  { %v2723_v21 = vld [vmem:[#allocation27 + $0x5] ss:$8 sm:$0xf0]  ;;  %v4148_v12 = vpack.c.bf16 %v1916_v23, %v1908_v22  ;;  %v2800_v39 = vld [vmem:[#allocation27 + $0x6] ss:$8 sm:$0xf] }
 0x818   :  { %4129 = vmatpush1.bf16.msra.mxu1 %v4128_v31  ;;  %7531 = vst [vmem:[#allocation40_spill] sm:$0xff] %v6280_v42  ;;  %v2452_v48 = vrot.slane %v6240_v54, %v6280_v42  ;;  %v2589_v61 = vrot.slane %v6287_v52, %v6021_v17  ;;  %v2597_v11 = vrot.slane %v6287_v52, %v6248_v51  ;;  %v1925_v3 = vld [vmem:[#allocation26 + $0x488] sm:$0xff]  ;;  %v1924_v27 = vld [vmem:[#allocation26 + $0x480] sm:$0xff] }
 0x819   :  { %4853 = vrot.lane.b32.xlu1 %v4852_v45, %s5573_s2  ;;  %4848 = vrot.lane.b32.xlu0 %v4847_v46, %s5573_s2  ;;  %v1868_v45 = vld [vmem:[#allocation26 + $0x2c0] sm:$0xff]  ;;  %v1877_v46 = vld [vmem:[#allocation26 + $0x308] sm:$0xff]  ;;  %v2530_v24 = vrot.slane %v6262_v1, %v6280_v42  ;;  %v2605_v5 = vrot.slane %v6287_v52, %v6254_v7  ;;  %v6307_v4 = vor.u32 %v2723_v21, %v2722_v20 }
 0x81a   :  { %4131 = vmatprep.subr.bf16.mxu1 %v4130_v33  ;;  %v4136_v53 = vpack.c.bf16 %v1868_v45, %v1860_v44  ;;  %v1932_v13 = vld [vmem:[#allocation26 + $0x4c0] sm:$0xff]  ;;  %v2593_v28 = vrot.slane %v6287_v52, %v6024_v18  ;;  %v1941_v30 = vld [vmem:[#allocation26 + $0x508] sm:$0xff]  ;;  %v2601_v35 = vrot.slane %v6287_v52, %v6267_v29 }
 0x81b   :  { %v2729_v9 = vrot.slane %v6307_v4, %v6021_v17  ;;  %v4152_v31 = vpack.c.bf16 %v1932_v13, %v1924_v27  ;;  %v1940_v33 = vld [vmem:[#allocation26 + $0x500] sm:$0xff]  ;;  %v1957_v36 = vld [vmem:[#allocation26 + $0x588] sm:$0xff]  ;;  %v6350_v13 = vsub.s32 7, %v6018_v14 }
 0x81c   :  { %4133 = vmatpush1.bf16.msra.mxu1 %v4132_v41  ;;  %v1948_v34 = vld [vmem:[#allocation26 + $0x540] sm:$0xff]  ;;  %v1965_v37 = vld [vmem:[#allocation26 + $0x5c8] sm:$0xff] }
 0x81d   :  { %1515 = vperm.xlu0 %4606, %v1512_v47   ;;  %2383 = vrot.lane.b32.xlu1 %v2354_v55, %s5574_s3  ;;  %v1885_v47 = vld [vmem:[#allocation26 + $0x348] sm:$0xff]  ;;  %v2514_v55 = vrot.slane %v6262_v1, %v6024_v18  ;;  %v4156_v41 = vpack.c.bf16 %v1948_v34, %v1940_v33  ;;  %v1956_v44 = vld [vmem:[#allocation26 + $0x580] sm:$0xff]  ;;  %7532 = vst [vmem:[#allocation41_spill] sm:$0xff] %v6350_v13 }
 0x81e   :  { %4135 = vmatprep.subr.bf16.mxu1 %v4134_v43  ;;  %v2801_v40 = vld [vmem:[#allocation27 + $0x6] ss:$8 sm:$0xf0]  ;;  %v4158_v43 = vpack.c.bf16 %v1965_v37, %v1957_v36 }
 0x81f   :  { %v1964_v45 = vld [vmem:[#allocation26 + $0x5c0] sm:$0xff]  ;;  %v1989_v59 = vld [vmem:[#allocation26 + $0x688] sm:$0xff] }
 0x820   :  { %4137 = vmatpush1.bf16.msra.mxu1 %v4136_v53  ;;  %v6327_v53 = vor.u32 %v2801_v40, %v2800_v39  ;;  %v1972_v57 = vld [vmem:[#allocation26 + $0x600] sm:$0xff]  ;;  %v1997_v60 = vld [vmem:[#allocation26 + $0x6c8] sm:$0xff] }
 0x821   :  { %2461 = vrot.lane.b32.xlu1 %v2432_v56, %s5556_s6  ;;  %2385 = vrot.lane.b32.xlu0 %v2358_v19, %s5574_s3  ;;  %v4138_v56 = vpack.c.bf16 %v1885_v47, %v1877_v46  ;;  %v4146_v19 = vpack.c.bf16 %v1917_v10, %v1909_v0  ;;  %v2609_v46 = vrot.slane %v6287_v52, %v6280_v42  ;;  %v1973_v47 = vld [vmem:[#allocation26 + $0x608] sm:$0xff]  ;;  %v1980_v58 = vld [vmem:[#allocation26 + $0x640] sm:$0xff] }
 0x822   :  { %v1996_v0 = vld [vmem:[#allocation26 + $0x6c0] sm:$0xff]  ;;  %v2005_v10 = vld [vmem:[#allocation26 + $0x708] sm:$0xff]  ;;  %v2819_v20 = vrot.slane %v6327_v53, %v6267_v29 }
 0x823   :  { %4139 = vmatprep.subr.bf16.mxu1 %v4138_v56  ;;  %v2004_v22 = vld [vmem:[#allocation26 + $0x700] sm:$0xff] }
 0x824   :  { %4141 = vmatpush1.bf16.msra.mxu1 %v4140_v62  ;;  %v2879_v62 = vld [vmem:[#allocation27 + $0x7] ss:$8 sm:$0xf] }
 0x825   :  { %2465 = vrot.lane.b32.xlu1 %v2440_v6, %s5556_s6  ;;  %2463 = vrot.lane.b32.xlu0 %v2436_v26, %s5556_s6  ;;  %v1900_v6 = vld [vmem:[#allocation26 + $0x3c0] sm:$0xff] }
 0x826   :  { %v4144_v16 = vpack.c.bf16 %v1900_v6, %v1892_v2  ;;  %4143 = vmatprep.subr.bf16.mxu1 %v4142_v63  ;;  %v2880_v63 = vld [vmem:[#allocation27 + $0x7] ss:$8 sm:$0xf0]  ;;  %v4164_v2 = vpack.c.bf16 %v1980_v58, %v1972_v57  ;;  %v4166_v6 = vpack.c.bf16 %v1997_v60, %v1989_v59 }
 0x827   :  { %v6336_v21 = vor.u32 %v2880_v63, %v2879_v62  ;;  %v2012_v23 = vld [vmem:[#allocation26 + $0x740] sm:$0xff] }
 0x828   :  { %4145 = vmatpush1.bf16.msra.mxu1 %v4144_v16 }
 0x829   :  { %2469 = vrot.lane.b32.xlu1 %v2448_v25, %s5556_s6  ;;  %2467 = vrot.lane.b32.xlu0 %v2444_v32, %s5556_s6  ;;  %v1933_v25 = vld [vmem:[#allocation26 + $0x4c8] sm:$0xff]  ;;  %v2902_v27 = vrot.slane %v6336_v21, %v6254_v7 }
 0x82a   :  { %4147 = vmatprep.subr.bf16.mxu1 %v4146_v19  ;;  %v4150_v26 = vpack.c.bf16 %v1933_v25, %v1925_v3  ;;  %v4172_v3 = vpack.c.bf16 %v2012_v23, %v2004_v22 }
 0x82c   :  { %4149 = vmatpush1.bf16.msra.mxu1 %v4148_v12  ;;  %v2894_v12 = vrot.slane %v6336_v21, %v6248_v51 }
 0x82d   :  { %2539 = vrot.lane.b32.xlu1 %v2510_v15, %s5576_s15  ;;  %2471 = vrot.lane.b32.xlu0 %v2452_v48, %s5556_s6  ;;  %v1949_v15 = vld [vmem:[#allocation26 + $0x548] sm:$0xff] }
 0x82e   :  { %4151 = vmatprep.subr.bf16.mxu1 %v4150_v26  ;;  %v4154_v32 = vpack.c.bf16 %v1949_v15, %v1941_v30  ;;  %v1981_v48 = vld [vmem:[#allocation26 + $0x648] sm:$0xff] }
 0x82f   :  { %v4162_v56 = vpack.c.bf16 %v1981_v48, %v1973_v47  ;;  %v2958_v30 = vld [vmem:[#allocation27 + $0x40] ss:$8 sm:$0xf0] }
 0x830   :  { %4153 = vmatpush1.bf16.msra.mxu1 %v4152_v31 }
 0x831   :  { %2543 = vrot.lane.b32.xlu1 %v2518_v38, %s5576_s15  ;;  %2541 = vrot.lane.b32.xlu0 %v2514_v55, %s5576_s15  ;;  %v2737_v38 = vrot.slane %v6307_v4, %v6248_v51  ;;  %v4160_v55 = vpack.c.bf16 %v1964_v45, %v1956_v44  ;;  %v6366_v45 = vsub.s32 6, %v6018_v14 }
 0x832   :  { %4155 = vmatprep.subr.bf16.mxu1 %v4154_v32 }
 0x833   :  { %7533 = vst [vmem:[#allocation42_spill] sm:$0xff] %v6366_v45  ;;  %v2534_v14 = vrot.slane %v6262_v1, %v6366_v45  ;;  %v2613_v23 = vrot.slane %v6287_v52, %v6366_v45 }
 0x834   :  { %4157 = vmatpush1.bf16.msra.mxu1 %v4156_v41 }
 0x835   :  { %2547 = vrot.lane.b32.xlu1 %v2526_v49, %s5576_s15  ;;  %2545 = vrot.lane.b32.xlu0 %v2522_v8, %s5576_s15  ;;  %v2745_v49 = vrot.slane %v6307_v4, %v6254_v7  ;;  %v1988_v8 = vld [vmem:[#allocation26 + $0x680] sm:$0xff] }
 0x836   :  { %4159 = vmatprep.subr.bf16.mxu1 %v4158_v43  ;;  %v4168_v16 = vpack.c.bf16 %v1996_v0, %v1988_v8 }
 0x838   :  { %4161 = vmatpush1.bf16.msra.mxu1 %v4160_v55 }
 0x839   :  { %2618 = vrot.lane.b32.xlu1 %v2589_v61, %s5561_s17  ;;  %2549 = vrot.lane.b32.xlu0 %v2530_v24, %s5576_s15  ;;  %v2811_v61 = vrot.slane %v6327_v53, %v6024_v18  ;;  %v2886_v24 = vrot.slane %v6336_v21, %v6021_v17 }
 0x83a   :  { %4163 = vmatprep.subr.bf16.mxu1 %v4162_v56 }
 0x83c   :  { %4165 = vmatpush1.bf16.msra.mxu1 %v4164_v2 }
 0x83d   :  { %2622 = vrot.lane.b32.xlu1 %v2597_v11, %s5561_s17  ;;  %2620 = vrot.lane.b32.xlu0 %v2593_v28, %s5561_s17  ;;  %v2013_v11 = vld [vmem:[#allocation26 + $0x748] sm:$0xff] }
 0x83e   :  { %4167 = vmatprep.subr.bf16.mxu1 %v4166_v6  ;;  %v4170_v19 = vpack.c.bf16 %v2013_v11, %v2005_v10  ;;  %v2957_v28 = vld [vmem:[#allocation27 + $0x40] ss:$8 sm:$0xf] }
 0x83f   :  { %v6357_v31 = vor.u32 %v2958_v30, %v2957_v28 }
 0x840   :  { %4169 = vmatpush1.bf16.msra.mxu1 %v4168_v16 }
 0x841   :  { %2626 = vrot.lane.b32.xlu1 %v2605_v5, %s5561_s17  ;;  %2624 = vrot.lane.b32.xlu0 %v2601_v35, %s5561_s17  ;;  %v2968_v34 = vrot.slane %v6357_v31, %v6024_v18  ;;  %v2976_v44 = vrot.slane %v6357_v31, %v6267_v29 }
 0x842   :  { %4171 = vmatprep.subr.bf16.mxu1 %v4170_v19 }
 0x844   :  { %4173 = vmatpush1.bf16.msra.mxu1 %v4172_v3 }
 0x845   :  { %2758 = vrot.lane.b32.xlu1 %v2729_v9, %s5562_s28  ;;  %2628 = vrot.lane.b32.xlu0 %v2609_v46, %s5561_s17  ;;  %v2460_v9 = vrot.slane %v6240_v54, %v6350_v13 }
 0x849   :  { %2762 = vrot.lane.b32.xlu1 %v2737_v38, %s5562_s28 }
 0x84d   :  { %2766 = vrot.lane.b32.xlu1 %v2745_v49, %s5562_s28 }
 0x851   :  { %2838 = vrot.lane.b32.xlu1 %v2811_v61, %s5577_s27 }
 0x855   :  { %2842 = vrot.lane.b32.xlu1 %v2819_v20, %s5577_s27 }
 0x859   :  { %2915 = vrot.lane.b32.xlu1 %v2886_v24, %s5557_s13 }
 0x85b   :  { %v4739_v25 = vpop.permute.xlu0 %4738  ;;  %v4744_v5 = vpop.permute.xlu1 %4743 }
 0x85c   :  { %v4741_v35 = vunpack.i.h.bf16 %v4739_v25  ;;  %v4740_v36 = vunpack.i.l.bf16 %v4739_v25  ;;  %v4746_v59 = vunpack.i.h.bf16 %v4744_v5  ;;  %v4745_v60 = vunpack.i.l.bf16 %v4744_v5 }
 0x85d   :  { %2919 = vrot.lane.b32.xlu1 %v2894_v12, %s5557_s13 }
 0x85e   :  { %v1637_v48 = vsel %vm1327_vm1, %v4740_v36, %v4741_v35  ;;  %v1641_v22 = vsel %vm1327_vm1, %v4745_v60, %v4746_v59 }
 0x85f   :  { %v6344_v26 = vpop.permute.xlu0 %4748  ;;  %v6352_v15 = vpop.permute.xlu1 %4753 }
 0x860   :  { %v4751_v62 = vunpack.i.h.bf16 %v6344_v26  ;;  %v4750_v63 = vunpack.i.l.bf16 %v6344_v26 }
 0x861   :  { %2923 = vrot.lane.b32.xlu1 %v2902_v27, %s5557_s13 }
 0x863   :  { %v4759_v32 = vpop.permute.xlu0 %4758 }
 0x864   :  { %v4760_v37 = vunpack.i.l.bf16 %v4759_v32  ;;  %v4761_v40 = vunpack.i.h.bf16 %v4759_v32  ;;  %v2749_v32 = vrot.slane %v6307_v4, %v6280_v42 }
 0x865   :  { %2475 = vrot.lane.b32.xlu1 %v2460_v9, %s5556_s6  ;;  %v1645_v9 = vsel %vm1327_vm1, %v4750_v63, %v4751_v62 }
 0x866   :  { %v1636_v46 = vsel %vm1327_vm1, %v4760_v37, %v4740_v36 }
 0x867   :  { %v4764_v33 = vpop.permute.xlu1 %4763 }
 0x868   :  { %v4765_v61 = vunpack.i.l.bf16 %v4764_v33  ;;  %v4766_v2 = vunpack.i.h.bf16 %v4764_v33  ;;  %v4756_v33 = vunpack.i.h.bf16 %v6352_v15 }
 0x869   :  { %2995 = vrot.lane.b32.xlu1 %v2968_v34, %s5578_s0  ;;  %v4755_v34 = vunpack.i.l.bf16 %v6352_v15 }
 0x86a   :  { %v1640_v16 = vsel %vm1327_vm1, %v4765_v61, %v4745_v60 }
 0x86b   :  { %v4774_v38 = vpop.permute.xlu1 %4773  ;;  %v4769_v39 = vpop.permute.xlu0 %4768 }
 0x86c   :  { %v4776_v41 = vunpack.i.h.bf16 %v4774_v38  ;;  %v4775_v43 = vunpack.i.l.bf16 %v4774_v38  ;;  %v4771_v19 = vunpack.i.h.bf16 %v4769_v39  ;;  %v4770_v24 = vunpack.i.l.bf16 %v4769_v39 }
 0x86d   :  { %2999 = vrot.lane.b32.xlu1 %v2976_v44, %s5578_s0 }
 0x86e   :  { %v1638_v47 = vsel %vm1327_vm1, %v4761_v40, %v4775_v43  ;;  %v1639_v49 = vsel %vm1327_vm1, %v4775_v43, %v4776_v41  ;;  %v1644_v37 = vsel %vm1327_vm1, %v4770_v24, %v4750_v63 }
 0x86f   :  { %v6372_v55 = vpop.permute.xlu1 %4778  ;;  %v6374_v56 = vpop.permute.xlu0 %4783  ;;  %v4082_v57 = vpack.c.bf16 %v1639_v49, %v1637_v48  ;;  %v4084_v58 = vpack.c.bf16 %v1638_v47, %v1636_v46 }
 0x870   :  { %v4780_v35 = vunpack.i.l.bf16 %v6372_v55  ;;  %v4781_v38 = vunpack.i.h.bf16 %v6372_v55  ;;  %v4786_v39 = vunpack.i.h.bf16 %v6374_v56  ;;  %v4785_v40 = vunpack.i.l.bf16 %v6374_v56 }
 0x871   :  { %4083 = vmatprep.subr.bf16.mxu0 %v4082_v57  ;;  %2551 = vrot.lane.b32.xlu1 %v2534_v14, %s5576_s15  ;;  %v2757_v55 = vrot.slane %v6307_v4, %v6350_v13 }
 0x872   :  { %4085 = vmatpush1.bf16.msra.mxu0 %v4084_v58  ;;  %v1648_v49 = vsel %vm1327_vm1, %v4780_v35, %v4755_v34  ;;  %v1649_v58 = vsel %vm1327_vm1, %v4755_v34, %v4756_v33 }
 0x873   :  { %v4799_v6 = vpop.permute.xlu1 %4798  ;;  %v4789_v8 = vpop.permute.xlu0 %4788 }
 0x874   :  { %v4801_v0 = vunpack.i.h.bf16 %v4799_v6  ;;  %v4800_v10 = vunpack.i.l.bf16 %v4799_v6  ;;  %v4791_v11 = vunpack.i.h.bf16 %v4789_v8  ;;  %v4790_v20 = vunpack.i.l.bf16 %v4789_v8 }
 0x875   :  { %2630 = vrot.lane.b32.xlu1 %v2613_v23, %s5561_s17  ;;  %v1653_v8 = vsel %vm1327_vm1, %v4785_v40, %v4786_v39 }
 0x876   :  { %v1642_v3 = vsel %vm1327_vm1, %v4766_v2, %v4790_v20  ;;  %v1643_v25 = vsel %vm1327_vm1, %v4790_v20, %v4791_v11  ;;  %v1647_v5 = vsel %vm1327_vm1, %v4800_v10, %v4801_v0  ;;  %v1646_v30 = vsel %vm1327_vm1, %v4771_v19, %v4800_v10 }
 0x877   :  { %v6389_v12 = vpop.permute.xlu1 %4803  ;;  %v4794_v26 = vpop.permute.xlu0 %4793  ;;  %v4086_v27 = vpack.c.bf16 %v1643_v25, %v1641_v22  ;;  %v4088_v28 = vpack.c.bf16 %v1642_v3, %v1640_v16  ;;  %v4090_v36 = vpack.c.bf16 %v1647_v5, %v1645_v9  ;;  %v4092_v44 = vpack.c.bf16 %v1646_v30, %v1644_v37 }
 0x878   :  { %v4796_v57 = vunpack.i.h.bf16 %v4794_v26  ;;  %v4795_v59 = vunpack.i.l.bf16 %v4794_v26  ;;  %v4806_v0 = vunpack.i.h.bf16 %v6389_v12  ;;  %v4805_v10 = vunpack.i.l.bf16 %v6389_v12 }
 0x879   :  { %4087 = vmatprep.subr.bf16.mxu0 %v4086_v27  ;;  %2768 = vrot.lane.b32.xlu1 %v2749_v32, %s5562_s28 }
 0x87a   :  { %4089 = vmatpush1.bf16.msra.mxu0 %v4088_v28  ;;  %v1652_v20 = vsel %vm1327_vm1, %v4795_v59, %v4785_v40  ;;  %v1657_v12 = vsel %vm1327_vm1, %v4805_v10, %v4806_v0  ;;  %v1782_v0 = vld [vmem:[#allocation26 + $0x10] sm:$0xff] }
 0x87b   :  { %v4814_v41 = vpop.permute.xlu1 %4813  ;;  %v4809_v43 = vpop.permute.xlu0 %4808  ;;  %4091 = vmatprep.subr.bf16.mxu0 %v4090_v36 }
 0x87c   :  { %v4816_v15 = vunpack.i.h.bf16 %v4814_v41  ;;  %v4815_v46 = vunpack.i.l.bf16 %v4814_v41  ;;  %v4811_v47 = vunpack.i.h.bf16 %v4809_v43  ;;  %v4810_v48 = vunpack.i.l.bf16 %v4809_v43 }
 0x87d   :  { %2772 = vrot.lane.b32.xlu1 %v2757_v55, %s5562_s28 }
 0x87e   :  { %v1650_v56 = vsel %vm1327_vm1, %v4781_v38, %v4810_v48  ;;  %4093 = vmatpush1.bf16.msra.mxu0 %v4092_v44  ;;  %v1651_v60 = vsel %vm1327_vm1, %v4810_v48, %v4811_v47  ;;  %v1655_v61 = vsel %vm1327_vm1, %v4815_v46, %v4816_v15  ;;  %v1654_v6 = vsel %vm1327_vm1, %v4796_v57, %v4815_v46 }
 0x87f   :  { %v4819_v14 = vpop.permute.xlu1 %4818  ;;  %v4824_v62 = vpop.permute.xlu0 %4823  ;;  %v4094_v63 = vpack.c.bf16 %v1651_v60, %v1649_v58  ;;  %v4096_v2 = vpack.c.bf16 %v1650_v56, %v1648_v49  ;;  %v4098_v11 = vpack.c.bf16 %v1655_v61, %v1653_v8  ;;  %v4100_v25 = vpack.c.bf16 %v1654_v6, %v1652_v20  ;;  %v1783_v56 = vld [vmem:[#allocation26 + $0x18] sm:$0xff] }
 0x880   :  { %v4820_v16 = vunpack.i.l.bf16 %v4819_v14  ;;  %v4821_v19 = vunpack.i.h.bf16 %v4819_v14  ;;  %v4826_v22 = vunpack.i.h.bf16 %v4824_v62  ;;  %v4825_v23 = vunpack.i.l.bf16 %v4824_v62  ;;  %v1791_v60 = vld [vmem:[#allocation26 + $0x58] sm:$0xff] }
 0x881   :  { %4095 = vmatprep.subr.bf16.mxu0 %v4094_v63  ;;  %v4178_v8 = vpack.c.bf16 %v1791_v60, %v1783_v56  ;;  %v1807_v20 = vld [vmem:[#allocation26 + $0xd8] sm:$0xff] }
 0x882   :  { %4097 = vmatpush1.bf16.msra.mxu0 %v4096_v2  ;;  %v1656_v30 = vsel %vm1327_vm1, %v4820_v16, %v4805_v10  ;;  %v1661_v40 = vsel %vm1327_vm1, %v4825_v23, %v4826_v22  ;;  %v1790_v10 = vld [vmem:[#allocation26 + $0x50] sm:$0xff]  ;;  %v1895_v56 = vld [vmem:[#allocation26 + $0x398] sm:$0xff] }
 0x883   :  { %v4839_v24 = vpop.permute.xlu1 %4838  ;;  %v4829_v3 = vpop.permute.xlu0 %4828  ;;  %4099 = vmatprep.subr.bf16.mxu0 %v4098_v11  ;;  %v1799_v11 = vld [vmem:[#allocation26 + $0x98] sm:$0xff]  ;;  %v1510_v16 = vld [vmem:[#allocation23] sm:$0xff] }
 0x884   :  { %v4841_v5 = vunpack.i.h.bf16 %v4839_v24  ;;  %v4840_v26 = vunpack.i.l.bf16 %v4839_v24  ;;  %v4831_v27 = vunpack.i.h.bf16 %v4829_v3  ;;  %v4830_v28 = vunpack.i.l.bf16 %v4829_v3  ;;  %v1806_v24 = vld [vmem:[#allocation26 + $0xd0] sm:$0xff]  ;;  %v1815_v3 = vld [vmem:[#allocation26 + $0x118] sm:$0xff] }
 0x885   :  { %v4182_v22 = vpack.c.bf16 %v1807_v20, %v1799_v11  ;;  %v1903_v60 = vld [vmem:[#allocation26 + $0x3d8] sm:$0xff]  ;;  %v1918_v11 = vld [vmem:[#allocation26 + $0x450] sm:$0xff] }
 0x886   :  { %v1658_v9 = vsel %vm1327_vm1, %v4821_v19, %v4830_v28  ;;  %4101 = vmatpush1.bf16.msra.mxu0 %v4100_v25  ;;  %v1659_v32 = vsel %vm1327_vm1, %v4830_v28, %v4831_v27  ;;  %v1663_v33 = vsel %vm1327_vm1, %v4840_v26, %v4841_v5  ;;  %v4180_v19 = vpack.c.bf16 %v1790_v10, %v1782_v0  ;;  %v1823_v25 = vld [vmem:[#allocation26 + $0x158] sm:$0xff]  ;;  %v1814_v27 = vld [vmem:[#allocation26 + $0x110] sm:$0xff] }
 0x887   :  { %v4844_v34 = vpop.permute.xlu1 %4843  ;;  %v4834_v35 = vpop.permute.xlu0 %4833  ;;  %v4102_v36 = vpack.c.bf16 %v1659_v32, %v1657_v12  ;;  %v4104_v37 = vpack.c.bf16 %v1658_v9, %v1656_v30  ;;  %v4106_v41 = vpack.c.bf16 %v1663_v33, %v1661_v40  ;;  %v1822_v28 = vld [vmem:[#allocation26 + $0x150] sm:$0xff]  ;;  %v1831_v12 = vld [vmem:[#allocation26 + $0x198] sm:$0xff] }
 0x888   :  { %v4836_v38 = vunpack.i.h.bf16 %v4834_v35  ;;  %v4835_v39 = vunpack.i.l.bf16 %v4834_v35  ;;  %v4846_v43 = vunpack.i.h.bf16 %v4844_v34  ;;  %v4845_v44 = vunpack.i.l.bf16 %v4844_v34  ;;  %v1839_v30 = vld [vmem:[#allocation26 + $0x1d8] sm:$0xff]  ;;  %v1830_v33 = vld [vmem:[#allocation26 + $0x190] sm:$0xff] }
 0x889   :  { %4103 = vmatprep.subr.bf16.mxu0 %v4102_v36  ;;  %v4188_v9 = vpack.c.bf16 %v1822_v28, %v1814_v27  ;;  %v4190_v32 = vpack.c.bf16 %v1839_v30, %v1831_v12  ;;  %v1838_v34 = vld [vmem:[#allocation26 + $0x1d0] sm:$0xff]  ;;  %v1847_v35 = vld [vmem:[#allocation26 + $0x218] sm:$0xff] }
 0x88a   :  { %v1662_v15 = vsel %vm1327_vm1, %v4836_v38, %v4840_v26  ;;  %v1660_v46 = vsel %vm1327_vm1, %v4835_v39, %v4825_v23  ;;  %4105 = vmatpush1.bf16.msra.mxu0 %v4104_v37  ;;  %v1665_v62 = vsel %vm1327_vm1, %v4845_v44, %v4846_v43  ;;  %v1798_v23 = vld [vmem:[#allocation26 + $0x90] sm:$0xff]  ;;  %v4186_v26 = vpack.c.bf16 %v1823_v25, %v1815_v3  ;;  %v1855_v36 = vld [vmem:[#allocation26 + $0x258] sm:$0xff] }
 0x88b   :  { %v4854_v47 = vpop.permute.xlu1 %4853  ;;  %v4849_v48 = vpop.permute.xlu0 %4848  ;;  %4107 = vmatprep.subr.bf16.mxu0 %v4106_v41  ;;  %v4108_v49 = vpack.c.bf16 %v1662_v15, %v1660_v46  ;;  %v4184_v5 = vpack.c.bf16 %v1806_v24, %v1798_v23  ;;  %v4192_v37 = vpack.c.bf16 %v1838_v34, %v1830_v33  ;;  %v4194_v38 = vpack.c.bf16 %v1855_v36, %v1847_v35  ;;  %v1846_v39 = vld [vmem:[#allocation26 + $0x210] sm:$0xff]  ;;  %v1863_v41 = vld [vmem:[#allocation26 + $0x298] sm:$0xff] }
 0x88c   :  { %v4856_v57 = vunpack.i.h.bf16 %v4854_v47  ;;  %v4855_v58 = vunpack.i.l.bf16 %v4854_v47  ;;  %v4851_v55 = vunpack.i.h.bf16 %v4849_v48  ;;  %v4850_v59 = vunpack.i.l.bf16 %v4849_v48  ;;  %v1854_v40 = vld [vmem:[#allocation26 + $0x250] sm:$0xff]  ;;  %v1871_v43 = vld [vmem:[#allocation26 + $0x2d8] sm:$0xff] }
 0x88d   :  { %v4198_v15 = vpack.c.bf16 %v1871_v43, %v1863_v41  ;;  %v1862_v46 = vld [vmem:[#allocation26 + $0x290] sm:$0xff]  ;;  %v1879_v48 = vld [vmem:[#allocation26 + $0x318] sm:$0xff] }
 0x88e   :  { %v1664_v61 = vsel %vm1327_vm1, %v4855_v58, %v4845_v44  ;;  %v1666_v14 = vsel %vm1327_vm1, %v4856_v57, %v4850_v59  ;;  %4109 = vmatpush1.bf16.msra.mxu0 %v4108_v49  ;;  %v1667_v63 = vsel %vm1327_vm1, %v4850_v59, %v4851_v55  ;;  %v4196_v44 = vpack.c.bf16 %v1854_v40, %v1846_v39  ;;  %v1870_v47 = vld [vmem:[#allocation26 + $0x2d0] sm:$0xff]  ;;  %v1887_v49 = vld [vmem:[#allocation26 + $0x358] sm:$0xff] }
 0x88f   :  { %v4110_v2 = vpack.c.bf16 %v1667_v63, %v1665_v62  ;;  %v4112_v6 = vpack.c.bf16 %v1666_v14, %v1664_v61  ;;  %v4200_v57 = vpack.c.bf16 %v1870_v47, %v1862_v46  ;;  %v4202_v58 = vpack.c.bf16 %v1887_v49, %v1879_v48  ;;  %v1878_v55 = vld [vmem:[#allocation26 + $0x310] sm:$0xff]  ;;  %v1927_v20 = vld [vmem:[#allocation26 + $0x498] sm:$0xff] }
 0x890   :  { %v1886_v59 = vld [vmem:[#allocation26 + $0x350] sm:$0xff]  ;;  %v4206_v14 = vpack.c.bf16 %v1903_v60, %v1895_v56  ;;  %v1943_v3 = vld [vmem:[#allocation26 + $0x518] sm:$0xff]  ;;  %v2831_v60 = vrot.slane %v6327_v53, %v6366_v45 }
 0x891   :  { %4111 = vmatprep.subr.bf16.mxu0 %v4110_v2  ;;  %v4204_v61 = vpack.c.bf16 %v1886_v59, %v1878_v55  ;;  %v1894_v62 = vld [vmem:[#allocation26 + $0x390] sm:$0xff]  ;;  %v1911_v2 = vld [vmem:[#allocation26 + $0x418] sm:$0xff] }
 0x892   :  { %4113 = vmatpush1.bf16.msra.mxu0 %v4112_v6  ;;  %v1902_v63 = vld [vmem:[#allocation26 + $0x3d0] sm:$0xff]  ;;  %v1919_v6 = vld [vmem:[#allocation26 + $0x458] sm:$0xff]  ;;  %2848 = vrot.lane.b32.xlu1 %v2831_v60, %s5577_s27 }
 0x893   :  { %4179 = vmatprep.subr.bf16.mxu0 %v4178_v8  ;;  %v4208_v8 = vpack.c.bf16 %v1902_v63, %v1894_v62  ;;  %v4210_v0 = vpack.c.bf16 %v1919_v6, %v1911_v2  ;;  %v1910_v10 = vld [vmem:[#allocation26 + $0x410] sm:$0xff]  ;;  %v1951_v25 = vld [vmem:[#allocation26 + $0x558] sm:$0xff]  ;;  %v2029_v62 = vld [vmem:[#allocation26 + $0x7c8] sm:$0xff] }
 0x894   :  { %v1926_v23 = vld [vmem:[#allocation26 + $0x490] sm:$0xff]  ;;  %v1959_v12 = vld [vmem:[#allocation26 + $0x598] sm:$0xff] }
 0x895   :  { %1772 = vmatmul.mubr.f32.vlgmr.msra.gmra.mrb[4].mxu0 %v1510_v16  ;;  %v1935_v16 = vld [vmem:[#allocation26 + $0x4d8] sm:$0xff]  ;;  %v1934_v24 = vld [vmem:[#allocation26 + $0x4d0] sm:$0xff] }
 0x896   :  { %4181 = vmatpush1.bf16.msra.mxu0 %v4180_v19  ;;  %v4212_v19 = vpack.c.bf16 %v1918_v11, %v1910_v10  ;;  %v1942_v27 = vld [vmem:[#allocation26 + $0x510] sm:$0xff]  ;;  %v1967_v30 = vld [vmem:[#allocation26 + $0x5d8] sm:$0xff]  ;;  %v2906_v10 = vrot.slane %v6336_v21, %v6280_v42 }
 0x897   :  { %4183 = vmatprep.subr.bf16.mxu0 %v4182_v22  ;;  %v4214_v22 = vpack.c.bf16 %v1935_v16, %v1927_v20  ;;  %v1950_v28 = vld [vmem:[#allocation26 + $0x550] sm:$0xff]  ;;  %v1975_v35 = vld [vmem:[#allocation26 + $0x618] sm:$0xff] }
 0x898   :  { %v1958_v33 = vld [vmem:[#allocation26 + $0x590] sm:$0xff]  ;;  %v1983_v36 = vld [vmem:[#allocation26 + $0x658] sm:$0xff]  ;;  %2925 = vrot.lane.b32.xlu1 %v2906_v10, %s5557_s13 }
 0x899   :  { %v1966_v34 = vld [vmem:[#allocation26 + $0x5d0] sm:$0xff]  ;;  %v1991_v41 = vld [vmem:[#allocation26 + $0x698] sm:$0xff] }
 0x89a   :  { %4185 = vmatpush1.bf16.msra.mxu0 %v4184_v5  ;;  %v4216_v5 = vpack.c.bf16 %v1934_v24, %v1926_v23  ;;  %v1974_v39 = vld [vmem:[#allocation26 + $0x610] sm:$0xff]  ;;  %v1999_v43 = vld [vmem:[#allocation26 + $0x6d8] sm:$0xff]  ;;  %v1785_v23 = vld [vmem:[#allocation26 + $0x28] sm:$0xff] }
 0x89b   :  { %4187 = vmatprep.subr.bf16.mxu0 %v4186_v26  ;;  %v4218_v26 = vpack.c.bf16 %v1951_v25, %v1943_v3  ;;  %v1982_v40 = vld [vmem:[#allocation26 + $0x650] sm:$0xff]  ;;  %v2007_v48 = vld [vmem:[#allocation26 + $0x718] sm:$0xff]  ;;  %v1793_v3 = vld [vmem:[#allocation26 + $0x68] sm:$0xff] }
 0x89c   :  { %v1990_v46 = vld [vmem:[#allocation26 + $0x690] sm:$0xff]  ;;  %v2015_v49 = vld [vmem:[#allocation26 + $0x758] sm:$0xff] }
 0x89d   :  { %v1998_v47 = vld [vmem:[#allocation26 + $0x6d0] sm:$0xff]  ;;  %v2023_v63 = vld [vmem:[#allocation26 + $0x798] sm:$0xff] }
 0x89e   :  { %4189 = vmatpush1.bf16.msra.mxu0 %v4188_v9  ;;  %v4220_v9 = vpack.c.bf16 %v1950_v28, %v1942_v27  ;;  %v2006_v55 = vld [vmem:[#allocation26 + $0x710] sm:$0xff]  ;;  %v2031_v6 = vld [vmem:[#allocation26 + $0x7d8] sm:$0xff]  ;;  %v2914_v28 = vrot.slane %v6336_v21, %v6350_v13 }
 0x89f   :  { %4191 = vmatprep.subr.bf16.mxu0 %v4190_v32  ;;  %v4222_v32 = vpack.c.bf16 %v1967_v30, %v1959_v12  ;;  %v2014_v59 = vld [vmem:[#allocation26 + $0x750] sm:$0xff]  ;;  %v4238_v11 = vpack.c.bf16 %v2031_v6, %v2023_v63  ;;  %v1787_v25 = vld [vmem:[#allocation26 + $0x38] sm:$0xff]  ;;  %v2807_v12 = vrot.slane %v6327_v53, %v6021_v17  ;;  %v2988_v30 = vrot.slane %v6357_v31, %v6366_v45 }
 0x8a0   :  { %v4236_v56 = vpack.c.bf16 %v2014_v59, %v2006_v55  ;;  %v2022_v16 = vld [vmem:[#allocation26 + $0x790] sm:$0xff]  ;;  %2929 = vrot.lane.b32.xlu1 %v2914_v28, %s5557_s13  ;;  %v2538_v55 = vrot.slane %v6262_v1, %v6350_v13  ;;  %v2827_v1 = vrot.slane %v6327_v53, %v6280_v42 }
 0x8a2   :  { %4193 = vmatpush1.bf16.msra.mxu0 %v4192_v37  ;;  %v4224_v37 = vpack.c.bf16 %v1966_v34, %v1958_v33  ;;  %v2362_v33 = vrot.slane %v6238_v50, %v6248_v51 }
 0x8a3   :  { %4195 = vmatprep.subr.bf16.mxu0 %v4194_v38  ;;  %v4226_v38 = vpack.c.bf16 %v1983_v36, %v1975_v35  ;;  %v2823_v35 = vrot.slane %v6327_v53, %v6254_v7 }
 0x8a4   :  { %3005 = vrot.lane.b32.xlu1 %v2988_v30, %s5578_s0 }
 0x8a6   :  { %4197 = vmatpush1.bf16.msra.mxu0 %v4196_v44  ;;  %v4228_v44 = vpack.c.bf16 %v1982_v40, %v1974_v39  ;;  %v2898_v39 = vrot.slane %v6336_v21, %v6267_v29 }
 0x8a7   :  { %4199 = vmatprep.subr.bf16.mxu0 %v4198_v15  ;;  %v4230_v15 = vpack.c.bf16 %v1999_v43, %v1991_v41  ;;  %v2456_v41 = vrot.slane %v6240_v54, %v6366_v45  ;;  %v2972_v54 = vrot.slane %v6357_v31, %v6248_v51 }
 0x8a8   :  { %2387 = vrot.lane.b32.xlu1 %v2362_v33, %s5574_s3 }
 0x8aa   :  { %4201 = vmatpush1.bf16.msra.mxu0 %v4200_v57  ;;  %v4232_v57 = vpack.c.bf16 %v1998_v47, %v1990_v46  ;;  %v2964_v47 = vrot.slane %v6357_v31, %v6021_v17 }
 0x8ab   :  { %4203 = vmatprep.subr.bf16.mxu0 %v4202_v58  ;;  %v4234_v58 = vpack.c.bf16 %v2015_v49, %v2007_v48 }
 0x8ae   :  { %4205 = vmatpush1.bf16.msra.mxu0 %v4204_v61  ;;  %v2733_v61 = vrot.slane %v6307_v4, %v6024_v18 }
 0x8af   :  { %4207 = vmatprep.subr.bf16.mxu0 %v4206_v14  ;;  %v2021_v14 = vld [vmem:[#allocation26 + $0x788] sm:$0xff] }
 0x8b0   :  { %2760 = vrot.lane.b32.xlu0 %v2733_v61, %s5562_s28  ;;  %v4174_v2 = vpack.c.bf16 %v2029_v62, %v2021_v14  ;;  %v1516_v61 = vpop.permute.xlu0 %1515  ;;  %v2753_v14 = vrot.slane %v6307_v4, %v6366_v45 }
 0x8b2   :  { %4209 = vmatpush1.bf16.msra.mxu0 %v4208_v8  ;;  %v2020_v8 = vld [vmem:[#allocation26 + $0x780] sm:$0xff]  ;;  %4175 = vmatprep.subr.bf16.mxu1 %v4174_v2  ;;  %v2835_v2 = vrot.slane %v6327_v53, %v6350_v13 }
 0x8b3   :  { %4211 = vmatprep.subr.bf16.mxu0 %v4210_v0  ;;  %v2028_v0 = vld [vmem:[#allocation26 + $0x7c0] sm:$0xff] }
 0x8b4   :  { %v4176_v20 = vpack.c.bf16 %v2028_v0, %v2020_v8  ;;  %v6518_v63 = vpop.permute.xlu0 %2385  ;;  %v2374_v8 = vrot.slane %v6238_v50, %v6280_v42  ;;  %v2910_v0 = vrot.slane %v6336_v21, %v6366_v45 }
 0x8b6   :  { %4213 = vmatpush1.bf16.msra.mxu0 %v4212_v19  ;;  %v2030_v19 = vld [vmem:[#allocation26 + $0x7d0] sm:$0xff]  ;;  %4177 = vmatpush1.bf16.msra.mxu1 %v4176_v20  ;;  %v2984_v20 = vrot.slane %v6357_v31, %v6280_v42  ;;  %v1817_v42 = vld [vmem:[#allocation26 + $0x128] sm:$0xff] }
 0x8b7   :  { %4215 = vmatprep.subr.bf16.mxu0 %v4214_v22  ;;  %v2741_v22 = vrot.slane %v6307_v4, %v6267_v29  ;;  %v4240_v24 = vpack.c.bf16 %v2030_v19, %v2022_v16 }
 0x8b8   :  { %v6527_v4 = vpop.permute.xlu0 %2463 }
 0x8b9   :  { %2764 = vrot.lane.b32.xlu0 %v2741_v22, %s5562_s28 }
 0x8ba   :  { %4217 = vmatpush1.bf16.msra.mxu0 %v4216_v5  ;;  %v1795_v5 = vld [vmem:[#allocation26 + $0x78] sm:$0xff] }
 0x8bb   :  { %4219 = vmatprep.subr.bf16.mxu0 %v4218_v26  ;;  %v4242_v26 = vpack.c.bf16 %v1793_v3, %v1785_v23  ;;  %v4306_v27 = vpack.c.bf16 %v1795_v5, %v1787_v25  ;;  %v2378_v5 = vrot.slane %v6238_v50, %v6366_v45  ;;  %v1802_v45 = vld [vmem:[#allocation26 + $0xb0] sm:$0xff] }
 0x8bd   :  { %4243 = vmatprep.subr.bf16.mxu1 %v4242_v26  ;;  %2836 = vrot.lane.b32.xlu0 %v2807_v12, %s5577_s27 }
 0x8be   :  { %4221 = vmatpush1.bf16.msra.mxu0 %v4220_v9  ;;  %v6448_v9 = vpop.permute.xlu1 %2383 }
 0x8bf   :  { %4223 = vmatprep.subr.bf16.mxu0 %v4222_v32  ;;  %7534 = vst [vmem:[#allocation43_spill] sm:$0xff] %v6448_v9  ;;  %v2815_v32 = vrot.slane %v6327_v53, %v6248_v51  ;;  %v2382_v53 = vrot.slane %v6238_v50, %v6350_v13 }
 0x8c1   :  { %2840 = vrot.lane.b32.xlu0 %v2815_v32, %s5577_s27 }
 0x8c2   :  { %4225 = vmatpush1.bf16.msra.mxu0 %v4224_v37  ;;  %v6456_v34 = vpop.permute.xlu1 %2461  ;;  %v2890_v37 = vrot.slane %v6336_v21, %v6024_v18  ;;  %v2992_v21 = vrot.slane %v6357_v31, %v6350_v13 }
 0x8c3   :  { %4227 = vmatprep.subr.bf16.mxu0 %v4226_v38 }
 0x8c5   :  { %2844 = vrot.lane.b32.xlu0 %v2823_v35, %s5577_s27 }
 0x8c6   :  { %4229 = vmatpush1.bf16.msra.mxu0 %v4228_v44  ;;  %v6462_v36 = vpop.permute.xlu1 %2465 }
 0x8c7   :  { %4231 = vmatprep.subr.bf16.mxu0 %v4230_v15 }
 0x8c9   :  { %2917 = vrot.lane.b32.xlu0 %v2890_v37, %s5557_s13 }
 0x8ca   :  { %4233 = vmatpush1.bf16.msra.mxu0 %v4232_v57  ;;  %v6467_v38 = vpop.permute.xlu1 %2469  ;;  %v2980_v57 = vrot.slane %v6357_v31, %v6254_v7 }
 0x8cb   :  { %4235 = vmatprep.subr.bf16.mxu0 %v4234_v58 }
 0x8cd   :  { %2921 = vrot.lane.b32.xlu0 %v2898_v39, %s5557_s13 }
 0x8ce   :  { %4237 = vmatpush1.bf16.msra.mxu0 %v4236_v56  ;;  %v6472_v40 = vpop.permute.xlu1 %2539  ;;  %v2617_v56 = vrot.slane %v6287_v52, %v6350_v13  ;;  %v2370_v52 = vrot.slane %v6238_v50, %v6254_v7 }
 0x8cf   :  { %4239 = vmatprep.subr.bf16.mxu0 %v4238_v11  ;;  %v6537_v11 = vpop.permute.xlu0 %2467 }
 0x8d0   :  { %2391 = vrot.lane.b32.xlu1 %v2370_v52, %s5574_s3  ;;  %v1801_v52 = vld [vmem:[#allocation26 + $0xa8] sm:$0xff] }
 0x8d1   :  { %2473 = vrot.lane.b32.xlu0 %v2456_v41, %s5556_s6 }
 0x8d2   :  { %4241 = vmatpush1.bf16.msra.mxu0 %v4240_v24  ;;  %v6477_v43 = vpop.permute.xlu1 %2543  ;;  %v2366_v24 = vrot.slane %v6238_v50, %v6267_v29 }
 0x8d3   :  { %4307 = vmatprep.subr.bf16.mxu0 %v4306_v27  ;;  %v6547_v19 = vpop.permute.xlu0 %2471 }
 0x8d4   :  { %2393 = vrot.lane.b32.xlu1 %v2374_v8, %s5574_s3  ;;  %7538 = vst [vmem:[#allocation47_spill] sm:$0xff] %v6547_v19  ;;  %v1809_v8 = vld [vmem:[#allocation26 + $0xe8] sm:$0xff] }
 0x8d5   :  { %2993 = vrot.lane.b32.xlu0 %v2964_v47, %s5578_s0  ;;  %v1784_v47 = vld [vmem:[#allocation26 + $0x20] sm:$0xff]  ;;  %v4246_v7 = vpack.c.bf16 %v1809_v8, %v1801_v52  ;;  %v1818_v8 = vld [vmem:[#allocation26 + $0x130] sm:$0xff] }
 0x8d6   :  { %v6480_v44 = vpop.permute.xlu1 %2547 }
 0x8d7   :  { %v6555_v23 = vpop.permute.xlu0 %2541 }
 0x8d8   :  { %2397 = vrot.lane.b32.xlu1 %v2382_v53, %s5574_s3  ;;  %v1811_v53 = vld [vmem:[#allocation26 + $0xf8] sm:$0xff] }
 0x8d9   :  { %2997 = vrot.lane.b32.xlu0 %v2972_v54, %s5578_s0 }
 0x8da   :  { %v6482_v15 = vpop.permute.xlu1 %2618 }
 0x8db   :  { %v6562_v25 = vpop.permute.xlu0 %2545 }
 0x8dd   :  { %3001 = vrot.lane.b32.xlu0 %v2980_v57, %s5578_s0 }
 0x8de   :  { %v6484_v46 = vpop.permute.xlu1 %2622 }
 0x8df   :  { %v6569_v31 = vpop.permute.xlu0 %2549 }
 0x8e0   :  { %7540 = vst [vmem:[#allocation49_spill] sm:$0xff] %v6569_v31  ;;  %v1987_v31 = vld [vmem:[#allocation26 + $0x678] sm:$0xff] }
 0x8e1   :  { %2553 = vrot.lane.b32.xlu0 %v2538_v55, %s5576_s15  ;;  %v1792_v55 = vld [vmem:[#allocation26 + $0x60] sm:$0xff] }
 0x8e2   :  { %v6488_v48 = vpop.permute.xlu1 %2626 }
 0x8e3   :  { %v6574_v28 = vpop.permute.xlu0 %2620 }
 0x8e5   :  { %2632 = vrot.lane.b32.xlu0 %v2617_v56, %s5561_s17  ;;  %v1786_v56 = vld [vmem:[#allocation26 + $0x30] sm:$0xff] }
 0x8e6   :  { %v6493_v49 = vpop.permute.xlu1 %2758 }
 0x8e7   :  { %v6580_v32 = vpop.permute.xlu0 %2624 }
 0x8e9   :  { %2770 = vrot.lane.b32.xlu0 %v2753_v14, %s5562_s28  ;;  %v1794_v14 = vld [vmem:[#allocation26 + $0x70] sm:$0xff]  ;;  %s5580_s28 = smov 62  }
 0x8ea   :  { %v6498_v58 = vpop.permute.xlu1 %2762 }
 0x8eb   :  { %v6585_v35 = vpop.permute.xlu0 %2628 }
 0x8ec   :  { %7545 = vst [vmem:[#allocation54_spill] sm:$0xff] %v6585_v35  ;;  %v1843_v35 = vld [vmem:[#allocation26 + $0x1f8] sm:$0xff] }
 0x8ed   :  { %2846 = vrot.lane.b32.xlu0 %v2827_v1, %s5577_s27 }
 0x8ee   :  { %v6503_v59 = vpop.permute.xlu1 %2766 }
 0x8ef   :  { %7535 = vst [vmem:[#allocation44_spill] sm:$0xff] %v6503_v59 }
 0x8f1   :  { %2850 = vrot.lane.b32.xlu0 %v2835_v2, %s5577_s27 }
 0x8f2   :  { %v6508_v60 = vpop.permute.xlu1 %2838 }
 0x8f5   :  { %2927 = vrot.lane.b32.xlu0 %v2910_v0, %s5557_s13  ;;  %v1803_v0 = vld [vmem:[#allocation26 + $0xb8] sm:$0xff]  ;;  %s5579_s13 = smov 63  }
 0x8f6   :  { %v6514_v62 = vpop.permute.xlu1 %2842 }
 0x8f7   :  { %7536 = vst [vmem:[#allocation45_spill] sm:$0xff] %v6514_v62 }
 0x8f9   :  { %3003 = vrot.lane.b32.xlu0 %v2984_v20, %s5578_s0 }
 0x8fa   :  { %v6525_v6 = vpop.permute.xlu1 %2915 }
 0x8fd   :  { %3007 = vrot.lane.b32.xlu0 %v2992_v21, %s5578_s0  ;;  %v4244_v21 = vpack.c.bf16 %v1792_v55, %v1784_v47 }
 0x8fe   :  { %v6535_v10 = vpop.permute.xlu1 %2919 }
 0x901   :  { %2389 = vrot.lane.b32.xlu0 %v2366_v24, %s5574_s3  ;;  %v4308_v24 = vpack.c.bf16 %v1794_v14, %v1786_v56  ;;  %v1824_v56 = vld [vmem:[#allocation26 + $0x160] sm:$0xff] }
 0x902   :  { %v6545_v16 = vpop.permute.xlu1 %2923 }
 0x903   :  { %7537 = vst [vmem:[#allocation46_spill] sm:$0xff] %v6545_v16  ;;  %v1841_v16 = vld [vmem:[#allocation26 + $0x1e8] sm:$0xff] }
 0x905   :  { %2395 = vrot.lane.b32.xlu0 %v2378_v5, %s5574_s3  ;;  %v1800_v5 = vld [vmem:[#allocation26 + $0xa0] sm:$0xff] }
 0x906   :  { %v6553_v22 = vpop.permute.xlu1 %2475 }
 0x907   :  { %7539 = vst [vmem:[#allocation48_spill] sm:$0xff] %v6553_v22  ;;  %v1827_v22 = vld [vmem:[#allocation26 + $0x178] sm:$0xff] }
 0x90a   :  { %v6560_v3 = vpop.permute.xlu1 %2995 }
 0x90e   :  { %v6567_v26 = vpop.permute.xlu1 %2999 }
 0x912   :  { %v6572_v27 = vpop.permute.xlu1 %2551 }
 0x913   :  { %7541 = vst [vmem:[#allocation50_spill] sm:$0xff] %v6572_v27 }
 0x916   :  { %v6576_v12 = vpop.permute.xlu1 %2630 }
 0x917   :  { %7542 = vst [vmem:[#allocation51_spill] sm:$0xff] %v6576_v12  ;;  %v1835_v12 = vld [vmem:[#allocation26 + $0x1b8] sm:$0xff] }
 0x91a   :  { %v6578_v30 = vpop.permute.xlu1 %2768 }
 0x91b   :  { %7543 = vst [vmem:[#allocation52_spill] sm:$0xff] %v6578_v30 }
 0x91e   :  { %v6582_v33 = vpop.permute.xlu1 %2772 }
 0x91f   :  { %7544 = vst [vmem:[#allocation53_spill] sm:$0xff] %v6582_v33  ;;  %v2798_v50 = vmul.f32 0.0, %v6582_v33  ;;  %v1819_v33 = vld [vmem:[#allocation26 + $0x138] sm:$0xff] }
 0x920   :  { %v4314_v52 = vpack.c.bf16 %v1827_v22, %v1819_v33  ;;  %v1842_v22 = vld [vmem:[#allocation26 + $0x1f0] sm:$0xff]  ;;  %v1849_v33 = vld [vmem:[#allocation26 + $0x228] sm:$0xff] }
 0x921   :  { %3196 = vrot.lane.b32.xlu1 %v2798_v50, %s5575_s16  ;;  %v1808_v50 = vld [vmem:[#allocation26 + $0xe0] sm:$0xff] }
 0x922   :  { %v6588_v37 = vpop.permute.xlu0 %2760  ;;  %v4248_v47 = vpack.c.bf16 %v1808_v50, %v1800_v5  ;;  %v1840_v5 = vld [vmem:[#allocation26 + $0x1e0] sm:$0xff]  ;;  %v6618_v19 = vpop.permute.xlu1 %2848 }
 0x923   :  { %7553 = vst [vmem:[#allocation62_spill] sm:$0xff] %v6618_v19 }
 0x92b   :  { %v6590_v39 = vpop.permute.xlu0 %2764 }
 0x92c   :  { %7546 = vst [vmem:[#allocation55_spill] sm:$0xff] %v6590_v39 }
 0x92f   :  { %v6592_v2 = vpop.permute.xlu0 %2836 }
 0x933   :  { %v6598_v14 = vpop.permute.xlu0 %2840 }
 0x968   :  { %v1773_v41 = vpop.f32.mrb[4].mxu0 }
 0x969   :  { %v1774_v54 = vadd.f32 %v1773_v41, %v1516_v61  ;;  %v1775_v57 = vpop.f32.mrb[5].mxu0  ;;  %v1810_v41 = vld [vmem:[#allocation26 + $0xf0] sm:$0xff] }
 0x96a   :  { %v1776_v1 = vadd.f32 %v1775_v57, %v1516_v61  ;;  %v4310_v61 = vpack.c.bf16 %v1811_v53, %v1803_v0  ;;  %v1825_v57 = vld [vmem:[#allocation26 + $0x168] sm:$0xff]  ;;  %v4312_v55 = vpack.c.bf16 %v1810_v41, %v1802_v45  ;;  %v1826_v0 = vld [vmem:[#allocation26 + $0x170] sm:$0xff] }
 0x96b   :  { %v6594_v13 = vmax.f32 %v1774_v54, 0.0  ;;  %v1816_v54 = vld [vmem:[#allocation26 + $0x120] sm:$0xff]  ;;  %v1833_v53 = vld [vmem:[#allocation26 + $0x1a8] sm:$0xff]  ;;  %v4316_v45 = vpack.c.bf16 %v1826_v0, %v1818_v8  ;;  %v1867_v0 = vld [vmem:[#allocation26 + $0x2b8] sm:$0xff] }
 0x96c   :  { %v1779_v20 = vmax.f32 %v1776_v1, 0.0  ;;  %v4250_v1 = vpack.c.bf16 %v1825_v57, %v1817_v42  ;;  %v4254_v50 = vpack.c.bf16 %v1841_v16, %v1833_v53  ;;  %v1834_v42 = vld [vmem:[#allocation26 + $0x1b0] sm:$0xff]  ;;  %v1857_v41 = vld [vmem:[#allocation26 + $0x268] sm:$0xff]  ;;  %v1851_v57 = vld [vmem:[#allocation26 + $0x238] sm:$0xff] }
 0x96d   :  { %v1850_v16 = vld [vmem:[#allocation26 + $0x230] sm:$0xff]  ;;  %v1873_v8 = vld [vmem:[#allocation26 + $0x2e8] sm:$0xff]  ;;  %v1875_v53 = vld [vmem:[#allocation26 + $0x2f8] sm:$0xff] }
 0x96e   :  { %2100 = vmatprep.mubr.f32.mxu1 %v1779_v20  ;;  %2171 = vmatprep.mubr.f32.mxu0 %v1779_v20 }
 0x96f   :  { %2101 = vmatmul.mubr.f32.vlgmr.msra.gmra.mrb[10].mxu1 %v6594_v13  ;;  %2172 = vmatmul.mubr.f32.vlgmr.msra.gmra.mrb[6].mxu0 %v6594_v13 }
 0x970   :  { %4245 = vmatpush1.bf16.msra.mxu1 %v4244_v21  ;;  %4309 = vmatpush1.bf16.msra.mxu0 %v4308_v24  ;;  %v4252_v21 = vpack.c.bf16 %v1824_v56, %v1816_v54  ;;  %v1832_v24 = vld [vmem:[#allocation26 + $0x1a0] sm:$0xff] }
 0x971   :  { %2242 = vmatprep.mubr.f32.mxu1 %v1779_v20  ;;  %2313 = vmatprep.mubr.f32.mxu0 %v1779_v20  ;;  %v4318_v20 = vpack.c.bf16 %v1843_v35, %v1835_v12  ;;  %v1848_v54 = vld [vmem:[#allocation26 + $0x220] sm:$0xff]  ;;  %v1858_v12 = vld [vmem:[#allocation26 + $0x270] sm:$0xff]  ;;  %v1865_v35 = vld [vmem:[#allocation26 + $0x2a8] sm:$0xff] }
 0x972   :  { %4247 = vmatprep.subr.bf16.mxu1 %v4246_v7  ;;  %4311 = vmatprep.subr.bf16.mxu0 %v4310_v61  ;;  %v1859_v7 = vld [vmem:[#allocation26 + $0x278] sm:$0xff]  ;;  %v6600_v61 = vpop.permute.xlu0 %2844  ;;  %v1856_v56 = vld [vmem:[#allocation26 + $0x260] sm:$0xff] }
 0x973   :  { %7547 = vst [vmem:[#allocation56_spill] sm:$0xff] %v6600_v61  ;;  %v4260_v59 = vpack.c.bf16 %v1856_v56, %v1848_v54  ;;  %v4324_v61 = vpack.c.bf16 %v1858_v12, %v1850_v16  ;;  %v1888_v54 = vld [vmem:[#allocation26 + $0x360] sm:$0xff]  ;;  %v1897_v12 = vld [vmem:[#allocation26 + $0x3a8] sm:$0xff] }
 0x974   :  { %4249 = vmatpush1.bf16.msra.mxu1 %v4248_v47  ;;  %4313 = vmatpush1.bf16.msra.mxu0 %v4312_v55  ;;  %v4256_v47 = vpack.c.bf16 %v1840_v5, %v1832_v24  ;;  %v4320_v55 = vpack.c.bf16 %v1842_v22, %v1834_v42  ;;  %v4262_v5 = vpack.c.bf16 %v1873_v8, %v1865_v35  ;;  %v1874_v42 = vld [vmem:[#allocation26 + $0x2f0] sm:$0xff]  ;;  %v1881_v22 = vld [vmem:[#allocation26 + $0x328] sm:$0xff]  ;;  %v1899_v8 = vld [vmem:[#allocation26 + $0x3b8] sm:$0xff] }
 0x975   :  { %4251 = vmatprep.subr.bf16.mxu1 %v4250_v1  ;;  %4315 = vmatprep.subr.bf16.mxu0 %v4314_v52  ;;  %v4258_v1 = vpack.c.bf16 %v1857_v41, %v1849_v33  ;;  %v4322_v52 = vpack.c.bf16 %v1859_v7, %v1851_v57  ;;  %v1889_v33 = vld [vmem:[#allocation26 + $0x368] sm:$0xff]  ;;  %v1883_v41 = vld [vmem:[#allocation26 + $0x338] sm:$0xff] }
 0x976   :  { %v6602_v24 = vpop.permute.xlu0 %2917  ;;  %v1891_v57 = vld [vmem:[#allocation26 + $0x378] sm:$0xff]  ;;  %v4266_v56 = vpack.c.bf16 %v1889_v33, %v1881_v22  ;;  %v1905_v35 = vld [vmem:[#allocation26 + $0x3e8] sm:$0xff] }
 0x977   :  { %v4330_v16 = vpack.c.bf16 %v1891_v57, %v1883_v41  ;;  %v1913_v22 = vld [vmem:[#allocation26 + $0x428] sm:$0xff]  ;;  %v1915_v41 = vld [vmem:[#allocation26 + $0x438] sm:$0xff] }
 0x978   :  { %4253 = vmatpush1.bf16.msra.mxu1 %v4252_v21  ;;  %4317 = vmatpush1.bf16.msra.mxu0 %v4316_v45  ;;  %v1864_v21 = vld [vmem:[#allocation26 + $0x2a0] sm:$0xff]  ;;  %v1921_v33 = vld [vmem:[#allocation26 + $0x468] sm:$0xff]  ;;  %v1923_v57 = vld [vmem:[#allocation26 + $0x478] sm:$0xff] }
 0x979   :  { %4255 = vmatprep.subr.bf16.mxu1 %v4254_v50  ;;  %4319 = vmatprep.subr.bf16.mxu0 %v4318_v20  ;;  %v1872_v45 = vld [vmem:[#allocation26 + $0x2e0] sm:$0xff]  ;;  %v4326_v50 = vpack.c.bf16 %v1875_v53, %v1867_v0  ;;  %v1866_v20 = vld [vmem:[#allocation26 + $0x2b0] sm:$0xff]  ;;  %v1907_v0 = vld [vmem:[#allocation26 + $0x3f8] sm:$0xff] }
 0x97a   :  { %v4264_v7 = vpack.c.bf16 %v1872_v45, %v1864_v21  ;;  %v6604_v53 = vpop.permute.xlu0 %2921  ;;  %v1896_v21 = vld [vmem:[#allocation26 + $0x3a0] sm:$0xff] }
 0x97b   :  { %7548 = vst [vmem:[#allocation57_spill] sm:$0xff] %v6604_v53  ;;  %v1904_v45 = vld [vmem:[#allocation26 + $0x3e0] sm:$0xff] }
 0x97c   :  { %4257 = vmatpush1.bf16.msra.mxu1 %v4256_v47  ;;  %4321 = vmatpush1.bf16.msra.mxu0 %v4320_v55  ;;  %v4328_v47 = vpack.c.bf16 %v1874_v42, %v1866_v20  ;;  %v1880_v55 = vld [vmem:[#allocation26 + $0x320] sm:$0xff]  ;;  %v1898_v20 = vld [vmem:[#allocation26 + $0x3b0] sm:$0xff]  ;;  %v4272_v30 = vpack.c.bf16 %v1904_v45, %v1896_v21 }
 0x97d   :  { %4259 = vmatprep.subr.bf16.mxu1 %v4258_v1  ;;  %4323 = vmatprep.subr.bf16.mxu0 %v4322_v52  ;;  %v1882_v1 = vld [vmem:[#allocation26 + $0x330] sm:$0xff]  ;;  %v1936_v21 = vld [vmem:[#allocation26 + $0x4e0] sm:$0xff] }
 0x97e   :  { %v1890_v52 = vld [vmem:[#allocation26 + $0x370] sm:$0xff] }
 0x97f   :  { %v1906_v42 = vld [vmem:[#allocation26 + $0x3f0] sm:$0xff] }
 0x980   :  { %4261 = vmatpush1.bf16.msra.mxu1 %v4260_v59  ;;  %4325 = vmatpush1.bf16.msra.mxu0 %v4324_v61  ;;  %v4268_v59 = vpack.c.bf16 %v1888_v54, %v1880_v55  ;;  %v4332_v61 = vpack.c.bf16 %v1890_v52, %v1882_v1  ;;  %v4336_v27 = vpack.c.bf16 %v1906_v42, %v1898_v20  ;;  %v6606_v55 = vpop.permute.xlu0 %2473  ;;  %v1922_v1 = vld [vmem:[#allocation26 + $0x470] sm:$0xff]  ;;  %v1929_v52 = vld [vmem:[#allocation26 + $0x4a8] sm:$0xff] }
 0x981   :  { %4263 = vmatprep.subr.bf16.mxu1 %v4262_v5  ;;  %4327 = vmatprep.subr.bf16.mxu0 %v4326_v50  ;;  %v4270_v5 = vpack.c.bf16 %v1905_v35, %v1897_v12  ;;  %v4334_v50 = vpack.c.bf16 %v1907_v0, %v1899_v8  ;;  %7549 = vst [vmem:[#allocation58_spill] sm:$0xff] %v6606_v55  ;;  %v1937_v12 = vld [vmem:[#allocation26 + $0x4e8] sm:$0xff]  ;;  %v1931_v35 = vld [vmem:[#allocation26 + $0x4b8] sm:$0xff]  ;;  %v1930_v20 = vld [vmem:[#allocation26 + $0x4b0] sm:$0xff] }
 0x982   :  { %v4274_v54 = vpack.c.bf16 %v1921_v33, %v1913_v22  ;;  %v1939_v8 = vld [vmem:[#allocation26 + $0x4f8] sm:$0xff]  ;;  %v1938_v42 = vld [vmem:[#allocation26 + $0x4f0] sm:$0xff]  ;;  %v1945_v22 = vld [vmem:[#allocation26 + $0x528] sm:$0xff] }
 0x983   :  { %v1953_v33 = vld [vmem:[#allocation26 + $0x568] sm:$0xff]  ;;  %v1971_v55 = vld [vmem:[#allocation26 + $0x5f8] sm:$0xff] }
 0x984   :  { %4265 = vmatpush1.bf16.msra.mxu1 %v4264_v7  ;;  %4329 = vmatpush1.bf16.msra.mxu0 %v4328_v47  ;;  %v1912_v7 = vld [vmem:[#allocation26 + $0x420] sm:$0xff]  ;;  %v6608_v45 = vpop.permute.xlu0 %2993 }
 0x985   :  { %4267 = vmatprep.subr.bf16.mxu1 %v4266_v56  ;;  %4331 = vmatprep.subr.bf16.mxu0 %v4330_v16  ;;  %v1920_v47 = vld [vmem:[#allocation26 + $0x460] sm:$0xff]  ;;  %v4338_v56 = vpack.c.bf16 %v1923_v57, %v1915_v41  ;;  %v1914_v16 = vld [vmem:[#allocation26 + $0x430] sm:$0xff]  ;;  %v1947_v41 = vld [vmem:[#allocation26 + $0x538] sm:$0xff] }
 0x986   :  { %v4276_v0 = vpack.c.bf16 %v1920_v47, %v1912_v7  ;;  %v1955_v57 = vld [vmem:[#allocation26 + $0x578] sm:$0xff]  ;;  %v1944_v7 = vld [vmem:[#allocation26 + $0x520] sm:$0xff] }
 0x987   :  { %v1952_v47 = vld [vmem:[#allocation26 + $0x560] sm:$0xff] }
 0x988   :  { %4269 = vmatpush1.bf16.msra.mxu1 %v4268_v59  ;;  %4333 = vmatpush1.bf16.msra.mxu0 %v4332_v61  ;;  %v4340_v59 = vpack.c.bf16 %v1922_v1, %v1914_v16  ;;  %v1928_v61 = vld [vmem:[#allocation26 + $0x4a0] sm:$0xff]  ;;  %v6610_v16 = vpop.permute.xlu0 %2997  ;;  %v1946_v1 = vld [vmem:[#allocation26 + $0x530] sm:$0xff] }
 0x989   :  { %4271 = vmatprep.subr.bf16.mxu1 %v4270_v5  ;;  %4335 = vmatprep.subr.bf16.mxu0 %v4334_v50  ;;  %v4278_v5 = vpack.c.bf16 %v1937_v12, %v1929_v52  ;;  %v4342_v50 = vpack.c.bf16 %v1939_v8, %v1931_v35  ;;  %v1954_v52 = vld [vmem:[#allocation26 + $0x570] sm:$0xff]  ;;  %v1961_v12 = vld [vmem:[#allocation26 + $0x5a8] sm:$0xff]  ;;  %v1963_v8 = vld [vmem:[#allocation26 + $0x5b8] sm:$0xff] }
 0x98a   :  { %v1969_v35 = vld [vmem:[#allocation26 + $0x5e8] sm:$0xff] }
 0x98c   :  { %4273 = vmatpush1.bf16.msra.mxu1 %v4272_v30  ;;  %4337 = vmatpush1.bf16.msra.mxu0 %v4336_v27  ;;  %v4280_v30 = vpack.c.bf16 %v1936_v21, %v1928_v61  ;;  %v4344_v27 = vpack.c.bf16 %v1938_v42, %v1930_v20  ;;  %v1960_v61 = vld [vmem:[#allocation26 + $0x5a0] sm:$0xff]  ;;  %v6612_v20 = vpop.permute.xlu0 %3001  ;;  %v1962_v42 = vld [vmem:[#allocation26 + $0x5b0] sm:$0xff] }
 0x98d   :  { %4275 = vmatprep.subr.bf16.mxu1 %v4274_v54  ;;  %4339 = vmatprep.subr.bf16.mxu0 %v4338_v56  ;;  %v4282_v54 = vpack.c.bf16 %v1953_v33, %v1945_v22  ;;  %v4346_v56 = vpack.c.bf16 %v1955_v57, %v1947_v41  ;;  %v1968_v21 = vld [vmem:[#allocation26 + $0x5e0] sm:$0xff]  ;;  %7550 = vst [vmem:[#allocation59_spill] sm:$0xff] %v6612_v20  ;;  %v1970_v22 = vld [vmem:[#allocation26 + $0x5f0] sm:$0xff]  ;;  %v1977_v33 = vld [vmem:[#allocation26 + $0x628] sm:$0xff] }
 0x98e   :  { %v1985_v41 = vld [vmem:[#allocation26 + $0x668] sm:$0xff]  ;;  %v1979_v57 = vld [vmem:[#allocation26 + $0x638] sm:$0xff] }
 0x98f   :  { %v2003_v20 = vld [vmem:[#allocation26 + $0x6f8] sm:$0xff] }
 0x990   :  { %4277 = vmatpush1.bf16.msra.mxu1 %v4276_v0  ;;  %4341 = vmatpush1.bf16.msra.mxu0 %v4340_v59  ;;  %v4284_v0 = vpack.c.bf16 %v1952_v47, %v1944_v7  ;;  %v4348_v59 = vpack.c.bf16 %v1954_v52, %v1946_v1  ;;  %v1976_v7 = vld [vmem:[#allocation26 + $0x620] sm:$0xff]  ;;  %v6614_v1 = vpop.permute.xlu0 %2553  ;;  %v1978_v52 = vld [vmem:[#allocation26 + $0x630] sm:$0xff] }
 0x991   :  { %4279 = vmatprep.subr.bf16.mxu1 %v4278_v5  ;;  %4343 = vmatprep.subr.bf16.mxu0 %v4342_v50  ;;  %v4286_v5 = vpack.c.bf16 %v1969_v35, %v1961_v12  ;;  %v4350_v50 = vpack.c.bf16 %v1971_v55, %v1963_v8  ;;  %v1984_v47 = vld [vmem:[#allocation26 + $0x660] sm:$0xff]  ;;  %7551 = vst [vmem:[#allocation60_spill] sm:$0xff] %v6614_v1  ;;  %v1986_v55 = vld [vmem:[#allocation26 + $0x670] sm:$0xff]  ;;  %v1993_v12 = vld [vmem:[#allocation26 + $0x6a8] sm:$0xff] }
 0x992   :  { %v2001_v35 = vld [vmem:[#allocation26 + $0x6e8] sm:$0xff]  ;;  %v1995_v8 = vld [vmem:[#allocation26 + $0x6b8] sm:$0xff] }
 0x993   :  { %v2019_v1 = vld [vmem:[#allocation26 + $0x778] sm:$0xff] }
 0x994   :  { %4281 = vmatpush1.bf16.msra.mxu1 %v4280_v30  ;;  %4345 = vmatpush1.bf16.msra.mxu0 %v4344_v27  ;;  %v4288_v30 = vpack.c.bf16 %v1968_v21, %v1960_v61  ;;  %v4352_v27 = vpack.c.bf16 %v1970_v22, %v1962_v42  ;;  %v1992_v61 = vld [vmem:[#allocation26 + $0x6a0] sm:$0xff]  ;;  %v6616_v42 = vpop.permute.xlu0 %2632  ;;  %v1994_v22 = vld [vmem:[#allocation26 + $0x6b0] sm:$0xff] }
 0x995   :  { %4283 = vmatprep.subr.bf16.mxu1 %v4282_v54  ;;  %4347 = vmatprep.subr.bf16.mxu0 %v4346_v56  ;;  %v4290_v54 = vpack.c.bf16 %v1985_v41, %v1977_v33  ;;  %v4354_v56 = vpack.c.bf16 %v1987_v31, %v1979_v57  ;;  %v2000_v21 = vld [vmem:[#allocation26 + $0x6e0] sm:$0xff]  ;;  %7552 = vst [vmem:[#allocation61_spill] sm:$0xff] %v6616_v42  ;;  %v2002_v31 = vld [vmem:[#allocation26 + $0x6f0] sm:$0xff]  ;;  %v2009_v33 = vld [vmem:[#allocation26 + $0x728] sm:$0xff] }
 0x996   :  { %v2017_v41 = vld [vmem:[#allocation26 + $0x768] sm:$0xff]  ;;  %v2011_v57 = vld [vmem:[#allocation26 + $0x738] sm:$0xff] }
 0x997   :  { %v2035_v42 = vld [vmem:[#allocation26 + $0x7f8] sm:$0xff] }
 0x998   :  { %4285 = vmatpush1.bf16.msra.mxu1 %v4284_v0  ;;  %4349 = vmatpush1.bf16.msra.mxu0 %v4348_v59  ;;  %v4292_v0 = vpack.c.bf16 %v1984_v47, %v1976_v7  ;;  %v4356_v59 = vpack.c.bf16 %v1986_v55, %v1978_v52  ;;  %v2008_v7 = vld [vmem:[#allocation26 + $0x720] sm:$0xff]  ;;  %v6620_v52 = vpop.permute.xlu0 %2770  ;;  %v2018_v55 = vld [vmem:[#allocation26 + $0x770] sm:$0xff] }
 0x999   :  { %4287 = vmatprep.subr.bf16.mxu1 %v4286_v5  ;;  %4351 = vmatprep.subr.bf16.mxu0 %v4350_v50  ;;  %v4294_v5 = vpack.c.bf16 %v2001_v35, %v1993_v12  ;;  %v4358_v50 = vpack.c.bf16 %v2003_v20, %v1995_v8  ;;  %v2016_v47 = vld [vmem:[#allocation26 + $0x760] sm:$0xff]  ;;  %7554 = vst [vmem:[#allocation63_spill] sm:$0xff] %v6620_v52  ;;  %v2025_v12 = vld [vmem:[#allocation26 + $0x7a8] sm:$0xff]  ;;  %v2027_v8 = vld [vmem:[#allocation26 + $0x7b8] sm:$0xff] }
 0x99a   :  { %v4362_v20 = vpack.c.bf16 %v2019_v1, %v2011_v57  ;;  %v2033_v35 = vld [vmem:[#allocation26 + $0x7e8] sm:$0xff]  ;;  %v2034_v1 = vld [vmem:[#allocation26 + $0x7f0] sm:$0xff] }
 0x99c   :  { %4289 = vmatpush1.bf16.msra.mxu1 %v4288_v30  ;;  %4353 = vmatpush1.bf16.msra.mxu0 %v4352_v27  ;;  %v4296_v30 = vpack.c.bf16 %v2000_v21, %v1992_v61  ;;  %v4360_v27 = vpack.c.bf16 %v2002_v31, %v1994_v22  ;;  %v2024_v61 = vld [vmem:[#allocation26 + $0x7a0] sm:$0xff]  ;;  %v6622_v21 = vpop.permute.xlu0 %2846  ;;  %v4302_v22 = vpack.c.bf16 %v2033_v35, %v2025_v12  ;;  %v2026_v31 = vld [vmem:[#allocation26 + $0x7b0] sm:$0xff] }
 0x99d   :  { %4291 = vmatprep.subr.bf16.mxu1 %v4290_v54  ;;  %4355 = vmatprep.subr.bf16.mxu0 %v4354_v56  ;;  %v4298_v54 = vpack.c.bf16 %v2017_v41, %v2009_v33  ;;  %v2010_v56 = vld [vmem:[#allocation26 + $0x730] sm:$0xff]  ;;  %7555 = vst [vmem:[#allocation64_spill] sm:$0xff] %v6622_v21  ;;  %v6624_v33 = vpop.permute.xlu1 %2925  ;;  %v4368_v57 = vpack.c.bf16 %v2034_v1, %v2026_v31 }
 0x99e   :  { %v6649_v12 = vsel %vm1482_vm6, %v6448_v9, %v6518_v63  ;;  %v2660_v35 = vld [vmem:[#allocation27 + $0x4] ss:$8 sm:$0xf]  ;;  %v2635_v31 = vsel %vm748_vm9, %v6574_v28, %v6484_v46 }
 0x9a0   :  { %4293 = vmatpush1.bf16.msra.mxu1 %v4292_v0  ;;  %4357 = vmatpush1.bf16.msra.mxu0 %v4356_v59  ;;  %v4300_v0 = vpack.c.bf16 %v2016_v47, %v2008_v7  ;;  %v4364_v59 = vpack.c.bf16 %v2018_v55, %v2010_v56  ;;  %v5181_v47 = vld [vmem:[#allocation3] sm:$0xff] }
 0x9a1   :  { %4295 = vmatprep.subr.bf16.mxu1 %v4294_v5  ;;  %4359 = vmatprep.subr.bf16.mxu0 %v4358_v50  ;;  %v4366_v5 = vpack.c.bf16 %v2035_v42, %v2027_v8  ;;  %v2032_v50 = vld [vmem:[#allocation26 + $0x7e0] sm:$0xff]  ;;  %v6629_v7 = vpop.permute.xlu1 %2929 }
 0x9a2   :  { %v4304_v41 = vpack.c.bf16 %v2032_v50, %v2024_v61  ;;  %7557 = vst [vmem:[#allocation66_spill] sm:$0xff] %v6629_v7  ;;  %v2955_v42 = vmul.f32 0.0, %v6629_v7  ;;  %v2661_v8 = vld [vmem:[#allocation27 + $0x4] ss:$8 sm:$0xf0]  ;;  %v2479_v61 = vsel %vm1459_vm5, %v6462_v36, %v6537_v11  ;;  %v2557_v50 = vsel %vm2555_vm7, %v6555_v23, %v6477_v43 }
 0x9a4   :  { %4297 = vmatpush1.bf16.msra.mxu1 %v4296_v30  ;;  %4361 = vmatpush1.bf16.msra.mxu0 %v4360_v27  ;;  %v6626_v30 = vpop.permute.xlu0 %2850 }
 0x9a5   :  { %4299 = vmatprep.subr.bf16.mxu1 %v4298_v54  ;;  %4363 = vmatprep.subr.bf16.mxu0 %v4362_v20  ;;  %7556 = vst [vmem:[#allocation65_spill] sm:$0xff] %v6626_v30  ;;  %v2877_v27 = vmul.f32 0.0, %v6626_v30 }
 0x9a7   :  { %3231 = vrot.lane.b32.xlu1 %v2877_v27, %s5549_s25  ;;  %v2855_v27 = vsel %vm2852_vm12, %v6598_v14, %v6514_v62 }
 0x9a8   :  { %4301 = vmatpush1.bf16.msra.mxu1 %v4300_v0  ;;  %4365 = vmatpush1.bf16.msra.mxu0 %v4364_v59  ;;  %v6636_v54 = vpop.permute.xlu0 %2927  ;;  %v2477_v0 = vsel %vm1459_vm5, %v6456_v34, %v6527_v4  ;;  %v2478_v59 = vsel %vm1459_vm5, %v6527_v4, %v6462_v36  ;;  %v2558_v4 = vsel %vm2555_vm7, %v6477_v43, %v6562_v25 }
 0x9a9   :  { %4303 = vmatprep.subr.bf16.mxu1 %v4302_v22  ;;  %4367 = vmatprep.subr.bf16.mxu0 %v4366_v5  ;;  %7558 = vst [vmem:[#allocation67_spill] sm:$0xff] %v6636_v54  ;;  %v2480_v22 = vsel %vm1459_vm5, %v6537_v11, %v6467_v38  ;;  %v2556_v5 = vsel %vm2555_vm7, %v6472_v40, %v6555_v23 }
 0x9aa   :  { %v2559_v36 = vsel %vm2555_vm7, %v6562_v25, %v6480_v44  ;;  %v2634_v11 = vsel %vm748_vm9, %v6482_v15, %v6574_v28  ;;  %v2636_v23 = vsel %vm748_vm9, %v6484_v46, %v6580_v32  ;;  %v2637_v43 = vsel %vm748_vm9, %v6580_v32, %v6488_v48 }
 0x9ab   :  { %3266 = vrot.lane.b32.xlu1 %v2955_v42, %s5579_s13  ;;  %v2774_v25 = vsel %vm1250_vm15, %v6493_v49, %v6588_v37  ;;  %v2775_v28 = vsel %vm1250_vm15, %v6588_v37, %v6498_v58  ;;  %v2776_v46 = vsel %vm1250_vm15, %v6498_v58, %v6590_v39  ;;  %v2854_v32 = vsel %vm2852_vm12, %v6508_v60, %v6598_v14 }
 0x9ac   :  { %4305 = vmatpush1.bf16.msra.mxu1 %v4304_v41  ;;  %4369 = vmatpush1.bf16.msra.mxu0 %v4368_v57  ;;  %v6638_v20 = vpop.permute.xlu0 %3003  ;;  %v6686_v41 = vor.u32 %v2661_v8, %v2660_v35  ;;  %v2853_v57 = vsel %vm2852_vm12, %v6592_v2, %v6508_v60  ;;  %v2931_v37 = vsel %vm383_vm4, %v6525_v6, %v6602_v24 }
 0x9ad   :  { %7559 = vst [vmem:[#allocation68_spill] sm:$0xff] %v6638_v20  ;;  %v2932_v58 = vsel %vm383_vm4, %v6602_v24, %v6535_v10  ;;  %v3011_v60 = vsel %vm3009_vm13, %v6560_v3, %v6610_v16 }
 0x9ae   :  { %7562 = vst [vmem:[#allocation71_spill] sm:$0xff] %v6686_v41  ;;  %v2667_v8 = vrot.slane %v6686_v41, %v6021_v17  ;;  %v2671_v9 = vrot.slane %v6686_v41, %v6024_v18  ;;  %v2675_v24 = vrot.slane %v6686_v41, %v6248_v51 }
 0x9af   :  { %2243 = vmatmul.mubr.f32.vlgmr.msra.gmra.mrb[12].mxu1 %v6594_v13  ;;  %2314 = vmatmul.mubr.f32.vlgmr.msra.gmra.mrb[8].mxu0 %v6594_v13  ;;  %v6644_v13 = vpop.permute.xlu1 %3005 }
 0x9b0   :  { %3703 = vmatprep.mubr.f32.mxu1 %v5181_v47  ;;  %3774 = vmatprep.mubr.f32.mxu0 %v5181_v47  ;;  %v6640_v56 = vpop.permute.xlu0 %3007  ;;  %7561 = vst [vmem:[#allocation70_spill] sm:$0xff] %v6644_v13  ;;  %v2933_v47 = vsel %vm383_vm4, %v6535_v10, %v6604_v53  ;;  %v2679_v10 = vrot.slane %v6686_v41, %v6267_v29 }
 0x9b1   :  { %7560 = vst [vmem:[#allocation69_spill] sm:$0xff] %v6640_v56  ;;  %v3034_v55 = vmul.f32 0.0, %v6640_v56 }
 0x9b3   :  { %3302 = vrot.lane.b32.xlu1 %v3034_v55, %s5580_s28  ;;  %v2388_v42 = vpop.permute.xlu1 %2387 }
 0x9b4   :  { %v6684_v1 = vpop.permute.xlu0 %2389 }
 0x9b5   :  { %v2401_v14 = vsel %vm1482_vm6, %v2388_v42, %v6684_v1 }
 0xa42   :  { %v2102_v55 = vpop.f32.mrb[10].mxu1  ;;  %v2173_v35 = vpop.f32.mrb[6].mxu0 }
 0xa43   :  { %v6731_v56 = vpop.f32.mrb[11].mxu1  ;;  %v6733_v13 = vpop.f32.mrb[7].mxu0  ;;  %v3026_v20 = vmul.f32 %v6608_v45, %v2102_v55  ;;  %v2496_v7 = vmul.f32 %v2479_v61, %v2173_v35  ;;  %v3028_v54 = vmul.f32 %v3011_v60, %v2173_v35  ;;  %v2573_v30 = vmul.f32 %v2556_v5, %v2102_v55 }
 0xa44   :  { %v2497_v17 = vmul.f32 %v2480_v22, %v6733_v13  ;;  %v2574_v19 = vmul.f32 %v2557_v50, %v6731_v56  ;;  %v2494_v18 = vmul.f32 %v2477_v0, %v2102_v55  ;;  %v2495_v21 = vmul.f32 %v2478_v59, %v6731_v56 }
 0xa45   :  { %3286 = vrot.lane.b32.xlu0 %v3026_v20, %s5580_s28  ;;  %v2653_v51 = vmul.f32 %v2636_v23, %v2173_v35  ;;  %v2654_v29 = vmul.f32 %v2637_v43, %v6733_v13  ;;  %v2575_v41 = vmul.f32 %v2558_v4, %v2173_v35  ;;  %v2576_v52 = vmul.f32 %v2559_v36, %v6733_v13  ;;  %v6746_v4 = vpop.permute.xlu1 %2391 }
 0xa46   :  { %v4862_v53 = vpack.i.bf16 %v2497_v17, %v2496_v7  ;;  %v4867_v62 = vpack.i.bf16 %v2574_v19, %v2573_v30  ;;  %v4857_v61 = vpack.i.bf16 %v2495_v21, %v2494_v18  ;;  %v2704_v60 = vmul.f32 %v2667_v8, %v2102_v55  ;;  %v7566_v17 = vld [vmem:[#allocation52_spill] sm:$0xff] }
 0xa47   :  { %v4882_v5 = vpack.i.bf16 %v2654_v29, %v2653_v51  ;;  %v4872_v39 = vpack.i.bf16 %v2576_v52, %v2575_v41  ;;  %v2705_v22 = vmul.f32 %v2671_v9, %v6731_v56  ;;  %v2651_v50 = vmul.f32 %v2634_v11, %v2102_v55  ;;  %v7567_v18 = vld [vmem:[#allocation44_spill] sm:$0xff]  ;;  %v7569_v51 = vld [vmem:[#allocation51_spill] sm:$0xff]  ;;  %v7570_v29 = vld [vmem:[#allocation46_spill] sm:$0xff] }
 0xa48   :  { %4863 = vrot.lane.b32.xlu1 %v4862_v53, %s5561_s17  ;;  %v2652_v0 = vmul.f32 %v2635_v31, %v6731_v56  ;;  %v2792_v20 = vmul.f32 %v2775_v28, %v2173_v35  ;;  %v2793_v59 = vmul.f32 %v2776_v46, %v6733_v13  ;;  %v2706_v23 = vmul.f32 %v2675_v24, %v2173_v35 }
 0xa49   :  { %3290 = vrot.lane.b32.xlu0 %v3028_v54, %s5580_s28  ;;  %v4887_v19 = vpack.i.bf16 %v2705_v22, %v2704_v60  ;;  %v2707_v21 = vmul.f32 %v2679_v10, %v6733_v13  ;;  %v2869_v52 = vmul.f32 %v6592_v2, %v2102_v55  ;;  %v2870_v9 = vmul.f32 %v2853_v57, %v6731_v56  ;;  %v7573_v22 = vld [vmem:[#allocation45_spill] sm:$0xff] }
 0xa4a   :  { %v4877_v30 = vpack.i.bf16 %v2652_v0, %v2651_v50  ;;  %v4902_v7 = vpack.i.bf16 %v2793_v59, %v2792_v20  ;;  %v2790_v53 = vmul.f32 %v6493_v49, %v2102_v55  ;;  %v2791_v36 = vmul.f32 %v2774_v25, %v6731_v56  ;;  %v7574_v0 = vld [vmem:[#allocation57_spill] sm:$0xff]  ;;  %v7575_v20 = vld [vmem:[#allocation58_spill] sm:$0xff] }
 0xa4b   :  { %v4892_v11 = vpack.i.bf16 %v2707_v21, %v2706_v23  ;;  %v4907_v31 = vpack.i.bf16 %v2870_v9, %v2869_v52  ;;  %v2949_v41 = vmul.f32 %v2932_v58, %v2173_v35  ;;  %v2950_v43 = vmul.f32 %v2933_v47, %v6733_v13  ;;  %v7576_v23 = vld [vmem:[#allocation48_spill] sm:$0xff]  ;;  %v7577_v21 = vld [vmem:[#allocation59_spill] sm:$0xff] }
 0xa4c   :  { %v2402_v54 = vsel %vm1482_vm6, %v6684_v1, %v6746_v4  ;;  %4868 = vrot.lane.b32.xlu1 %v4867_v62, %s5566_s23  ;;  %v4897_v2 = vpack.i.bf16 %v2791_v36, %v2790_v53  ;;  %v2871_v28 = vmul.f32 %v2854_v32, %v2173_v35  ;;  %v2872_v46 = vmul.f32 %v2855_v27, %v6733_v13  ;;  %v7578_v9 = vld [vmem:[#allocation60_spill] sm:$0xff]  ;;  %v7580_v36 = vld [vmem:[#allocation63_spill] sm:$0xff] }
 0xa4d   :  { %v2400_v49 = vsel %vm1482_vm6, %v6518_v63, %v2388_v42  ;;  %4858 = vrot.lane.b32.xlu0 %v4857_v61, %s5561_s17  ;;  %v4922_v25 = vpack.i.bf16 %v2950_v43, %v2949_v41  ;;  %v2947_v57 = vmul.f32 %v6525_v6, %v2102_v55  ;;  %v2948_v58 = vmul.f32 %v2931_v37, %v6731_v56  ;;  %v7571_v61 = vld [vmem:[#allocation55_spill] sm:$0xff] }
 0xa4e   :  { %v4912_v47 = vpack.i.bf16 %v2872_v46, %v2871_v28  ;;  %v2416_v8 = vmul.f32 %v6649_v12, %v2102_v55  ;;  %v2417_v1 = vmul.f32 %v2400_v49, %v6731_v56  ;;  %v2418_v62 = vmul.f32 %v2401_v14, %v2173_v35  ;;  %v7565_v35 = vld [vmem:[#allocation50_spill] sm:$0xff]  ;;  %v7584_v49 = vld [vmem:[#allocation39_spill] sm:$0xff] }
 0xa4f   :  { %v4917_v24 = vpack.i.bf16 %v2948_v58, %v2947_v57  ;;  %v2419_v32 = vmul.f32 %v2402_v54, %v6733_v13  ;;  %v3010_v6 = vsel %vm3009_vm13, %v6608_v45, %v6560_v3  ;;  %v3012_v12 = vsel %vm3009_vm13, %v6610_v16, %v6567_v26  ;;  %v6791_v3 = vpop.permute.xlu1 %2393  ;;  %v7563_v16 = vld [vmem:[#allocation47_spill] sm:$0xff]  ;;  %v2396_v54 = vpop.permute.xlu0 %2395  ;;  %v7583_v28 = vld [vmem:[#allocation62_spill] sm:$0xff]  ;;  %v7586_v58 = vld [vmem:[#allocation40_spill] sm:$0xff] }
 0xa50   :  { %4883 = vrot.lane.b32.xlu1 %v4882_v5, %s5556_s6  ;;  %v4927_v27 = vpack.i.bf16 %v2417_v1, %v2416_v8  ;;  %v3029_v42 = vmul.f32 %v3012_v12, %v6733_v13  ;;  %v2493_v45 = vmul.f32 0.0, %v6456_v34  ;;  %v6796_v37 = vmul.f32 0.0, %v6482_v15  ;;  %v7564_v13 = vld [vmem:[#allocation49_spill] sm:$0xff]  ;;  %v7572_v5 = vld [vmem:[#allocation56_spill] sm:$0xff] }
 0xa51   :  { %4873 = vrot.lane.b32.xlu0 %v4872_v39, %s5566_s23  ;;  %v4932_v63 = vpack.i.bf16 %v2419_v32, %v2418_v62  ;;  %v3027_v39 = vmul.f32 %v3010_v6, %v6731_v56  ;;  %v2572_v56 = vmul.f32 0.0, %v6472_v40  ;;  %v2481_v14 = vsel %vm1459_vm5, %v6467_v38, %v7563_v16  ;;  %v7568_v40 = vld [vmem:[#allocation54_spill] sm:$0xff]  ;;  %v7587_v8 = vld [vmem:[#allocation65_spill] sm:$0xff]  ;;  %v7588_v62 = vld [vmem:[#allocation67_spill] sm:$0xff] }
 0xa52   :  { %v2560_v55 = vsel %vm2555_vm7, %v6480_v44, %v7564_v13  ;;  %v2561_v10 = vsel %vm2555_vm7, %v7564_v13, %v7565_v35  ;;  %v2778_v34 = vsel %vm1250_vm15, %v7567_v18, %v7566_v17  ;;  %v2638_v15 = vsel %vm748_vm9, %v6488_v48, %v7568_v40  ;;  %v7589_v32 = vld [vmem:[#allocation66_spill] sm:$0xff] }
 0xa53   :  { %v2639_v38 = vsel %vm748_vm9, %v7568_v40, %v7569_v51  ;;  %v2935_v44 = vsel %vm383_vm4, %v7570_v29, %v6624_v33  ;;  %v2777_v60 = vsel %vm1250_vm15, %v7571_v61, %v7567_v18  ;;  %v2856_v50 = vsel %vm2852_vm12, %v7573_v22, %v7572_v5  ;;  %v2398_v43 = vpop.permute.xlu1 %2397 }
 0xa54   :  { %4888 = vrot.lane.b32.xlu1 %v4887_v19, %s5574_s3  ;;  %v2934_v48 = vsel %vm383_vm4, %v7574_v0, %v7570_v29  ;;  %v2482_v59 = vsel %vm1459_vm5, %v7563_v16, %v7575_v20  ;;  %v2483_v19 = vsel %vm1459_vm5, %v7575_v20, %v7576_v23  ;;  %v3013_v52 = vsel %vm3009_vm13, %v6567_v26, %v7577_v21 }
 0xa55   :  { %4878 = vrot.lane.b32.xlu0 %v4877_v30, %s5556_s6  ;;  %v2562_v30 = vsel %vm2555_vm7, %v7565_v35, %v7578_v9  ;;  %v2859_v1 = vsel %vm2852_vm12, %v7583_v28, %v7587_v8  ;;  %v2405_v13 = vsel %vm1482_vm6, %v2396_v54, %v2398_v43 }
 0xa58   :  { %4903 = vrot.lane.b32.xlu1 %v4902_v7, %s5575_s16  ;;  %v7579_v7 = vld [vmem:[#allocation61_spill] sm:$0xff] }
 0xa59   :  { %4893 = vrot.lane.b32.xlu0 %v4892_v11, %s5574_s3  ;;  %v2640_v53 = vsel %vm748_vm9, %v7569_v51, %v7579_v7  ;;  %v2779_v11 = vsel %vm1250_vm15, %v7566_v17, %v7580_v36 }
 0xa5c   :  { %4908 = vrot.lane.b32.xlu1 %v4907_v31, %s5549_s25  ;;  %v7581_v31 = vld [vmem:[#allocation53_spill] sm:$0xff] }
 0xa5d   :  { %4898 = vrot.lane.b32.xlu0 %v4897_v2, %s5575_s16  ;;  %v2780_v41 = vsel %vm1250_vm15, %v7580_v36, %v7581_v31  ;;  %v7582_v2 = vld [vmem:[#allocation64_spill] sm:$0xff] }
 0xa5e   :  { %v2857_v26 = vsel %vm2852_vm12, %v7572_v5, %v7582_v2  ;;  %v2858_v46 = vsel %vm2852_vm12, %v7582_v2, %v7583_v28  ;;  %v7594_v28 = vld [vmem:[#allocation41_spill] sm:$0xff] }
 0xa60   :  { %4923 = vrot.lane.b32.xlu1 %v4922_v25, %s5579_s13  ;;  %v7585_v25 = vld [vmem:[#allocation71_spill] sm:$0xff] }
 0xa61   :  { %4913 = vrot.lane.b32.xlu0 %v4912_v47, %s5549_s25  ;;  %v2683_v57 = vrot.slane %v7585_v25, %v7584_v49  ;;  %v2687_v47 = vrot.slane %v7585_v25, %v7586_v58  ;;  %v2695_v49 = vrot.slane %v7585_v25, %v7594_v28 }
 0xa64   :  { %3288 = vrot.lane.b32.xlu1 %v3027_v39, %s5580_s28  ;;  %v7591_v39 = vld [vmem:[#allocation70_spill] sm:$0xff] }
 0xa65   :  { %4918 = vrot.lane.b32.xlu0 %v4917_v24, %s5579_s13  ;;  %v2936_v24 = vsel %vm383_vm4, %v6624_v33, %v7588_v62  ;;  %v2403_v33 = vsel %vm1482_vm6, %v6746_v4, %v6791_v3 }
 0xa68   :  { %3292 = vrot.lane.b32.xlu1 %v3029_v42, %s5580_s28  ;;  %v7592_v42 = vld [vmem:[#allocation69_spill] sm:$0xff] }
 0xa69   :  { %4928 = vrot.lane.b32.xlu0 %v4927_v27, %s5578_s0  ;;  %v2937_v27 = vsel %vm383_vm4, %v7588_v62, %v7589_v32  ;;  %v3016_v16 = vsel %vm3009_vm13, %v7591_v39, %v7592_v42  ;;  %vm3304_vm4 = vcmask 506880  }
 0xa6c   :  { %4933 = vrot.lane.b32.xlu1 %v4932_v63, %s5578_s0  ;;  %v7590_v63 = vld [vmem:[#allocation68_spill] sm:$0xff] }
 0xa6d   :  { %v3014_v6 = vsel %vm3009_vm13, %v7577_v21, %v7590_v63  ;;  %v3015_v12 = vsel %vm3009_vm13, %v7590_v63, %v7591_v39  ;;  %v7593_v21 = vld [vmem:[#allocation42_spill] sm:$0xff] }
 0xa6e   :  { %v2691_v36 = vrot.slane %v7585_v25, %v7593_v21 }
 0xa82   :  { %v2244_v35 = vpop.f32.mrb[12].mxu1  ;;  %v2315_v17 = vpop.f32.mrb[8].mxu0 }
 0xa83   :  { %v2246_v18 = vpop.f32.mrb[13].mxu1  ;;  %v6881_v40 = vpop.f32.mrb[9].mxu0  ;;  %v2577_v51 = vmul.f32 %v2560_v55, %v2244_v35  ;;  %v2498_v29 = vmul.f32 %v2481_v14, %v2244_v35  ;;  %v3032_v61 = vmul.f32 %v3015_v12, %v2315_v17  ;;  %v2655_v5 = vmul.f32 %v2638_v15, %v2244_v35 }
 0xa84   :  { %v2708_v22 = vmul.f32 %v2683_v57, %v2244_v35  ;;  %v2709_v0 = vmul.f32 %v2687_v47, %v2246_v18  ;;  %v2794_v20 = vmul.f32 %v2777_v60, %v2244_v35  ;;  %v2795_v4 = vmul.f32 %v2778_v34, %v2246_v18 }
 0xa85   :  { %v4942_v31 = vpack.i.bf16 %v2572_v56, %v2577_v51  ;;  %v4937_v2 = vpack.i.bf16 %v2493_v45, %v2498_v29  ;;  %v2873_v8 = vmul.f32 %v2856_v50, %v2244_v35  ;;  %v2874_v62 = vmul.f32 %v2857_v26, %v2246_v18 }
 0xa86   :  { %v4952_v58 = vpack.i.bf16 %v2709_v0, %v2708_v22  ;;  %v2951_v32 = vmul.f32 %v2934_v48, %v2244_v35  ;;  %v4947_v14 = vpack.i.bf16 %v6796_v37, %v2655_v5  ;;  %v4957_v55 = vpack.i.bf16 %v2795_v4, %v2794_v20 }
 0xa87   :  { %4943 = vrot.lane.b32.xlu1 %v4942_v31, %s5566_s23  ;;  %4938 = vrot.lane.b32.xlu0 %v4937_v2, %s5561_s17  ;;  %v2952_v15 = vmul.f32 %v2935_v44, %v2246_v18  ;;  %v4962_v60 = vpack.i.bf16 %v2874_v62, %v2873_v8  ;;  %v2578_v57 = vmul.f32 %v2561_v10, %v2246_v18 }
 0xa88   :  { %v2579_v56 = vmul.f32 %v2562_v30, %v2315_v17  ;;  %v2499_v45 = vmul.f32 %v2482_v59, %v2246_v18  ;;  %v2500_v47 = vmul.f32 %v2483_v19, %v2315_v17  ;;  %v2656_v63 = vmul.f32 %v2639_v38, %v2246_v18 }
 0xa89   :  { %v4967_v34 = vpack.i.bf16 %v2952_v15, %v2951_v32  ;;  %v2657_v25 = vmul.f32 %v2640_v53, %v2315_v17  ;;  %v2404_v50 = vsel %vm1482_vm6, %v6791_v3, %v2396_v54  ;;  %v2710_v26 = vmul.f32 %v2691_v36, %v2315_v17 }
 0xa8a   :  { %v4977_v48 = vpack.i.bf16 %v2579_v56, %v2578_v57  ;;  %v2711_v39 = vmul.f32 %v2695_v49, %v6881_v40  ;;  %v3030_v37 = vmul.f32 %v3013_v52, %v2244_v35  ;;  %v4972_v44 = vpack.i.bf16 %v2500_v47, %v2499_v45 }
 0xa8b   :  { %3298 = vrot.lane.b32.xlu1 %v3032_v61, %s5580_s28  ;;  %4948 = vrot.lane.b32.xlu0 %v4947_v14, %s5556_s6  ;;  %v4982_v10 = vpack.i.bf16 %v2657_v25, %v2656_v63  ;;  %v2422_v59 = vmul.f32 %v2405_v13, %v2315_v17  ;;  %v2423_v19 = vmul.f32 %v2398_v43, %v6881_v40 }
 0xa8c   :  { %v4987_v30 = vpack.i.bf16 %v2711_v39, %v2710_v26  ;;  %v2796_v38 = vmul.f32 %v2779_v11, %v2315_v17  ;;  %v2797_v53 = vmul.f32 %v2780_v41, %v6881_v40  ;;  %v2875_v12 = vmul.f32 %v2858_v46, %v2315_v17  ;;  %v7595_v26 = vld [vmem:[#allocation43_spill] sm:$0xff] }
 0xa8d   :  { %v2876_v3 = vmul.f32 %v2859_v1, %v6881_v40  ;;  %v2953_v54 = vmul.f32 %v2936_v24, %v2315_v17  ;;  %v5012_v42 = vpack.i.bf16 %v2423_v19, %v2422_v59  ;;  %v2954_v51 = vmul.f32 %v2937_v27, %v6881_v40  ;;  %v6916_v27 = vpop.permute.xlu1 %3196 }
 0xa8e   :  { %v3031_v29 = vmul.f32 %v3014_v6, %v2246_v18  ;;  %v3033_v61 = vmul.f32 %v3016_v16, %v6881_v40  ;;  %v4992_v52 = vpack.i.bf16 %v2797_v53, %v2796_v38  ;;  %v2420_v43 = vmul.f32 %v2403_v33, %v2244_v35 }
 0xa8f   :  { %3294 = vrot.lane.b32.xlu0 %v3030_v37, %s5580_s28  ;;  %4953 = vrot.lane.b32.xlu1 %v4952_v58, %s5574_s3  ;;  %v4997_v13 = vpack.i.bf16 %v2876_v3, %v2875_v12  ;;  %v5002_v11 = vpack.i.bf16 %v2954_v51, %v2953_v54  ;;  %v2421_v5 = vmul.f32 %v2404_v50, %v2246_v18  ;;  %v2415_v39 = vmul.f32 0.0, %v7595_v26 }
 0xa90   :  { %v2501_v46 = vmul.f32 %v7576_v23, %v6881_v40  ;;  %v2580_v1 = vmul.f32 %v7578_v9, %v6881_v40  ;;  %v2658_v24 = vmul.f32 %v7579_v7, %v6881_v40 }
 0xa91   :  { %v5007_v41 = vpack.i.bf16 %v2421_v5, %v2420_v43  ;;  %v6922_v23 = vpop.permute.xlu1 %3231 }
 0xa93   :  { %4958 = vrot.lane.b32.xlu0 %v4957_v55, %s5575_s16  ;;  %4963 = vrot.lane.b32.xlu1 %v4962_v60, %s5549_s25 }
 0xa95   :  { %v6925_v9 = vpop.permute.xlu1 %3266 }
 0xa97   :  { %4968 = vrot.lane.b32.xlu0 %v4967_v34, %s5579_s13  ;;  %3060 = vrot.lane.b32.xlu1 %v2501_v46, %s5561_s17 }
 0xa99   :  { %v6929_v7 = vpop.permute.xlu1 %3302 }
 0xa9b   :  { %4978 = vrot.lane.b32.xlu1 %v4977_v48, %s5566_s23  ;;  %4973 = vrot.lane.b32.xlu0 %v4972_v44, %s5561_s17  ;;  %s7596_s17 = sld [smem:[#allocation79_spill]] }
 0xa9f   :  { %4983 = vrot.lane.b32.xlu1 %v4982_v10, %s5556_s6  ;;  %3095 = vrot.lane.b32.xlu0 %v2580_v1, %s5566_s23 }
 0xaa3   :  { %4988 = vrot.lane.b32.xlu1 %v4987_v30, %s5574_s3  ;;  %3130 = vrot.lane.b32.xlu0 %v2658_v24, %s5556_s6 }
 0xaa7   :  { %5013 = vrot.lane.b32.xlu1 %v5012_v42, %s5578_s0  ;;  %4993 = vrot.lane.b32.xlu0 %v4992_v52, %s5575_s16 }
 0xaab   :  { %4998 = vrot.lane.b32.xlu0 %v4997_v13, %s5549_s25 }
 0xaaf   :  { %5003 = vrot.lane.b32.xlu0 %v5002_v11, %s5579_s13 }
 0xab3   :  { %3296 = vrot.lane.b32.xlu0 %v3031_v29, %s5580_s28 }
 0xab7   :  { %3300 = vrot.lane.b32.xlu0 %v3033_v61, %s5580_s28  ;;  %v6932_v6 = vpop.permute.xlu0 %3286 }
 0xaba   :  { %v6934_v16 = vpop.permute.xlu1 %4863 }
 0xabb   :  { %5008 = vrot.lane.b32.xlu0 %v5007_v41, %s5578_s0  ;;  %v6937_v33 = vpop.permute.xlu0 %3290  ;;  %v4865_v37 = vunpack.i.l.bf16 %v6934_v16 }
 0xabe   :  { %v6939_v35 = vpop.permute.xlu1 %4868 }
 0xabf   :  { %v4859_v17 = vpop.permute.xlu0 %4858  ;;  %v4870_v30 = vunpack.i.l.bf16 %v6939_v35  ;;  %v4871_v51 = vunpack.i.h.bf16 %v6939_v35 }
 0xac0   :  { %v4861_v47 = vunpack.i.h.bf16 %v4859_v17  ;;  %v4860_v63 = vunpack.i.l.bf16 %v4859_v17 }
 0xac1   :  { %v3098_v17 = vsel %vm763_vm10, %v4870_v30, %v4871_v51 }
 0xac2   :  { %v6941_v18 = vpop.permute.xlu1 %4883  ;;  %v3064_v59 = vsel %vm748_vm9, %v4861_v47, %v4865_v37  ;;  %v3063_v19 = vsel %vm748_vm9, %v4860_v63, %v4861_v47 }
 0xac3   :  { %v6943_v40 = vpop.permute.xlu0 %4873  ;;  %v5037_v13 = vpack.i.bf16 %v3064_v59, %v3063_v19  ;;  %v4885_v1 = vunpack.i.l.bf16 %v6941_v18 }
 0xac4   :  { %v4875_v12 = vunpack.i.l.bf16 %v6943_v40 }
 0xac6   :  { %v4889_v22 = vpop.permute.xlu1 %4888  ;;  %v3099_v5 = vsel %vm763_vm10, %v4871_v51, %v4875_v12 }
 0xac7   :  { %v6945_v0 = vpop.permute.xlu0 %4878  ;;  %v4890_v2 = vunpack.i.l.bf16 %v4889_v22  ;;  %v4891_v29 = vunpack.i.h.bf16 %v4889_v22 }
 0xac8   :  { %v4880_v3 = vunpack.i.l.bf16 %v6945_v0  ;;  %v4881_v43 = vunpack.i.h.bf16 %v6945_v0 }
 0xac9   :  { %v3164_v22 = vsel %vm1482_vm6, %v4890_v2, %v4891_v29 }
 0xaca   :  { %v6947_v20 = vpop.permute.xlu1 %4903  ;;  %v3133_v47 = vsel %vm1459_vm5, %v4880_v3, %v4881_v43 }
 0xacb   :  { %v6949_v21 = vpop.permute.xlu0 %4893  ;;  %v4905_v0 = vunpack.i.l.bf16 %v6947_v20 }
 0xacc   :  { %v4895_v54 = vunpack.i.l.bf16 %v6949_v21 }
 0xace   :  { %v6951_v36 = vpop.permute.xlu1 %4908  ;;  %v3165_v41 = vsel %vm1482_vm6, %v4891_v29, %v4895_v54 }
 0xacf   :  { %v6953_v31 = vpop.permute.xlu0 %4898  ;;  %v4910_v32 = vunpack.i.l.bf16 %v6951_v36 }
 0xad0   :  { %v4900_v4 = vunpack.i.l.bf16 %v6953_v31  ;;  %v4901_v46 = vunpack.i.h.bf16 %v6953_v31  ;;  %v5052_v31 = vpack.i.bf16 %v3165_v41, %v3164_v22 }
 0xad2   :  { %v5017_v28 = vpack.i.bf16 %v4900_v4, %v4890_v2  ;;  %v6956_v49 = vpop.permute.xlu1 %4923  ;;  %v4911_v2 = vunpack.i.h.bf16 %v6951_v36 }
 0xad3   :  { %v6958_v58 = vpop.permute.xlu0 %4913 }
 0xad4   :  { %5018 = vrot.lane.b32.xlu0 %v5017_v28, %s5578_s0  ;;  %v5042_v28 = vpack.i.bf16 %v3099_v5, %v3098_v17  ;;  %v4915_v26 = vunpack.i.l.bf16 %v6958_v58  ;;  %v3233_v19 = vsel %vm622_vm8, %v4910_v32, %v4911_v2  ;;  %v4886_v5 = vunpack.i.h.bf16 %v6941_v18 }
 0xad6   :  { %v6961_v8 = vpop.permute.xlu1 %3288  ;;  %v3234_v59 = vsel %vm622_vm8, %v4911_v2, %v4915_v26 }
 0xad7   :  { %v6963_v62 = vpop.permute.xlu0 %4918 }
 0xad8   :  { %v4920_v14 = vunpack.i.l.bf16 %v6963_v62  ;;  %3473 = vrot.lane.b32.xlu0 %v6932_v6, %s5578_s0 }
 0xada   :  { %v5022_v55 = vpack.i.bf16 %v4920_v14, %v4910_v32  ;;  %v6973_v15 = vpop.permute.xlu1 %3292  ;;  %v4876_v32 = vunpack.i.h.bf16 %v6943_v40 }
 0xadb   :  { %v6975_v60 = vpop.permute.xlu0 %4928 }
 0xadc   :  { %5023 = vrot.lane.b32.xlu1 %v5022_v55, %s5578_s0  ;;  %v4931_v56 = vunpack.i.h.bf16 %v6975_v60  ;;  %v3134_v55 = vsel %vm1459_vm5, %v4881_v43, %v4885_v1  ;;  %v3100_v41 = vsel %vm763_vm10, %v4875_v12, %v4876_v32  ;;  %v4896_v12 = vunpack.i.h.bf16 %v6949_v21 }
 0xade   :  { %v6978_v57 = vpop.permute.xlu1 %4933 }
 0xadf   :  { %v4935_v45 = vunpack.i.l.bf16 %v6978_v57 }
 0xae1   :  { %v6987_v34 = vsel %vm3009_vm13, %v4931_v56, %v4935_v45 }
 0xaf9   :  { %v6989_v25 = vpop.permute.xlu1 %4943  ;;  %v6991_v50 = vpop.permute.xlu0 %4938 }
 0xafa   :  { %v4941_v48 = vunpack.i.h.bf16 %v6991_v50  ;;  %v4946_v44 = vunpack.i.h.bf16 %v6989_v25 }
 0xafc   :  { %v3062_v10 = vsel %vm748_vm9, %v4941_v48, %v4860_v63  ;;  %v3097_v61 = vsel %vm763_vm10, %v4946_v44, %v4870_v30  ;;  %v3199_v63 = vsel %vm1505_vm11, %v4901_v46, %v4905_v0  ;;  %v3198_v48 = vsel %vm1505_vm11, %v4900_v4, %v4901_v46 }
 0xafd   :  { %v5027_v38 = vpack.i.bf16 %v3062_v10, %v2415_v39  ;;  %v7003_v53 = vpop.permute.xlu0 %4948  ;;  %v7022_v24 = vpop.permute.xlu1 %3298  ;;  %v5047_v39 = vpack.i.bf16 %v3134_v55, %v3133_v47  ;;  %v5057_v44 = vpack.i.bf16 %v3199_v63, %v3198_v48  ;;  %v4921_v4 = vunpack.i.h.bf16 %v6963_v62 }
 0xafe   :  { %v4951_v42 = vunpack.i.h.bf16 %v7003_v53  ;;  %v4950_v43 = vunpack.i.l.bf16 %v7003_v53  ;;  %v3306_v46 = vsel %vm3304_vm4, %v6961_v8, %v6937_v33 }
 0xaff   :  { %5028 = vrot.lane.b32.xlu0 %v5027_v38, %s5578_s0  ;;  %v4925_v38 = vunpack.i.l.bf16 %v6956_v49  ;;  %v3269_v29 = vsel %vm3268_vm14, %v4920_v14, %v4921_v4  ;;  %v4940_v14 = vunpack.i.l.bf16 %v6991_v50 }
 0xb00   :  { %v3132_v52 = vsel %vm1459_vm5, %v4951_v42, %v4880_v3  ;;  %v5062_v3 = vpack.i.bf16 %v3234_v59, %v3233_v19  ;;  %v3305_v42 = vsel %vm3304_vm4, %v6932_v6, %v6961_v8  ;;  %v3307_v6 = vsel %vm3304_vm4, %v6937_v33, %v6973_v15 }
 0xb01   :  { %v5032_v11 = vpack.i.bf16 %v3132_v52, %v3097_v61  ;;  %v7024_v35 = vpop.permute.xlu0 %3294  ;;  %v7041_v10 = vpop.permute.xlu1 %4953  ;;  %v3270_v51 = vsel %vm3268_vm14, %v4921_v4, %v4925_v38  ;;  %v4945_v61 = vunpack.i.l.bf16 %v6989_v25  ;;  %v3136_v55 = vsel %vm1459_vm5, %v4886_v5, %v4950_v43 }
 0xb02   :  { %v4955_v18 = vunpack.i.l.bf16 %v7041_v10  ;;  %v3135_v8 = vsel %vm1459_vm5, %v4885_v1, %v4886_v5  ;;  %v3166_v59 = vsel %vm1482_vm6, %v4895_v54, %v4896_v12  ;;  %v4926_v4 = vunpack.i.h.bf16 %v6956_v49 }
 0xb03   :  { %5033 = vrot.lane.b32.xlu1 %v5032_v11, %s5578_s0  ;;  %5038 = vrot.lane.b32.xlu0 %v5037_v13, %s5578_s0  ;;  %v5067_v13 = vpack.i.bf16 %v3270_v51, %v3269_v29  ;;  %v3101_v62 = vsel %vm763_vm10, %v4876_v32, %v4945_v61  ;;  %v4866_v11 = vunpack.i.h.bf16 %v6934_v16  ;;  %v5082_v63 = vpack.i.bf16 %v3136_v55, %v3135_v8 }
 0xb04   :  { %v5077_v17 = vpack.i.bf16 %v3101_v62, %v3100_v41  ;;  %v3167_v48 = vsel %vm1482_vm6, %v4896_v12, %v4955_v18 }
 0xb05   :  { %v7043_v30 = vpop.permute.xlu0 %4958  ;;  %v7063_v52 = vpop.permute.xlu1 %4963  ;;  %v3065_v33 = vsel %vm748_vm9, %v4865_v37, %v4866_v11 }
 0xb06   :  { %v4965_v40 = vunpack.i.l.bf16 %v7063_v52  ;;  %v4960_v2 = vunpack.i.l.bf16 %v7043_v30 }
 0xb07   :  { %5043 = vrot.lane.b32.xlu1 %v5042_v28, %s5578_s0  ;;  %5053 = vrot.lane.b32.xlu0 %v5052_v31, %s5578_s0  ;;  %v3066_v28 = vsel %vm748_vm9, %v4866_v11, %v4940_v14  ;;  %v4916_v31 = vunpack.i.h.bf16 %v6958_v58  ;;  %v3271_v58 = vsel %vm3268_vm14, %v4925_v38, %v4926_v4 }
 0xb08   :  { %v5072_v47 = vpack.i.bf16 %v3066_v28, %v3065_v33 }
 0xb09   :  { %v7065_v36 = vpop.permute.xlu0 %4968  ;;  %v7088_v50 = vpop.permute.xlu1 %3060  ;;  %v3236_v16 = vsel %vm622_vm8, %v4916_v31, %v4965_v40  ;;  %v3235_v19 = vsel %vm622_vm8, %v4915_v26, %v4916_v31 }
 0xb0a   :  { %v4970_v37 = vunpack.i.l.bf16 %v7065_v36 }
 0xb0b   :  { %5048 = vrot.lane.b32.xlu1 %v5047_v39, %s5578_s0  ;;  %5058 = vrot.lane.b32.xlu0 %v5057_v44, %s5578_s0  ;;  %v4906_v44 = vunpack.i.h.bf16 %v6947_v20  ;;  %v3308_v20 = vsel %vm3304_vm4, %v6973_v15, %v7024_v35 }
 0xb0c   :  { %v3272_v29 = vsel %vm3268_vm14, %v4926_v4, %v4970_v37 }
 0xb0d   :  { %v4974_v22 = vpop.permute.xlu0 %4973  ;;  %v4979_v39 = vpop.permute.xlu1 %4978  ;;  %v3201_v51 = vsel %vm1505_vm11, %v4906_v44, %v4960_v2  ;;  %v3200_v49 = vsel %vm1505_vm11, %v4905_v0, %v4906_v44  ;;  %v5102_v26 = vpack.i.bf16 %v3272_v29, %v3271_v58  ;;  %v4956_v44 = vunpack.i.h.bf16 %v7041_v10 }
 0xb0e   :  { %v4976_v32 = vunpack.i.h.bf16 %v4974_v22  ;;  %v4975_v21 = vunpack.i.l.bf16 %v4974_v22  ;;  %v5092_v54 = vpack.i.bf16 %v3201_v51, %v3200_v49  ;;  %v4981_v5 = vunpack.i.h.bf16 %v4979_v39 }
 0xb0f   :  { %5063 = vrot.lane.b32.xlu1 %v5062_v3, %s5578_s0  ;;  %3475 = vrot.lane.b32.xlu0 %v3305_v42, %s5578_s0  ;;  %v5087_v3 = vpack.i.bf16 %v3167_v48, %v3166_v59  ;;  %v5097_v42 = vpack.i.bf16 %v3236_v16, %v3235_v19  ;;  %v4980_v41 = vunpack.i.l.bf16 %v4979_v39  ;;  %v4961_v51 = vunpack.i.h.bf16 %v7043_v30 }
 0xb10   :  { %v3067_v62 = vsel %vm748_vm9, %v4940_v14, %v4975_v21  ;;  %v3068_v11 = vsel %vm748_vm9, %v4975_v21, %v4976_v32  ;;  %v3069_v0 = vsel %vm748_vm9, %v4976_v32, %v7088_v50  ;;  %v3168_v32 = vsel %vm1482_vm6, %v4955_v18, %v4956_v44 }
 0xb11   :  { %v3096_v1 = vpop.permute.xlu0 %3095  ;;  %v3102_v28 = vsel %vm763_vm10, %v4945_v61, %v4980_v41  ;;  %v5112_v55 = vpack.i.bf16 %v7088_v50, %v3069_v0  ;;  %v3103_v8 = vsel %vm763_vm10, %v4980_v41, %v4981_v5  ;;  %v3202_v10 = vsel %vm1505_vm11, %v4960_v2, %v4961_v51 }
 0xb12   :  { %v3104_v38 = vsel %vm763_vm10, %v4981_v5, %v3096_v1  ;;  %v4966_v18 = vunpack.i.h.bf16 %v7063_v52  ;;  %v4971_v2 = vunpack.i.h.bf16 %v7065_v36 }
 0xb13   :  { %5068 = vrot.lane.b32.xlu1 %v5067_v13, %s5578_s0  ;;  %3479 = vrot.lane.b32.xlu0 %v3307_v6, %s5578_s0  ;;  %v4984_v13 = vpop.permute.xlu1 %4983  ;;  %v5122_v15 = vpack.i.bf16 %v3096_v1, %v3104_v38 }
 0xb14   :  { %v4986_v22 = vunpack.i.h.bf16 %v4984_v13  ;;  %v4985_v33 = vunpack.i.l.bf16 %v4984_v13  ;;  %v3237_v30 = vsel %vm622_vm8, %v4965_v40, %v4966_v18 }
 0xb15   :  { %v3131_v6 = vpop.permute.xlu0 %3130 }
 0xb16   :  { %v3137_v25 = vsel %vm1459_vm5, %v4950_v43, %v4985_v33  ;;  %v3138_v50 = vsel %vm1459_vm5, %v4985_v33, %v4986_v22 }
 0xb17   :  { %3477 = vrot.lane.b32.xlu1 %v3306_v46, %s5578_s0  ;;  %5078 = vrot.lane.b32.xlu0 %v5077_v17, %s5578_s0  ;;  %v5107_v46 = vpack.i.bf16 %v3068_v11, %v3067_v62  ;;  %v4989_v17 = vpop.permute.xlu1 %4988  ;;  %v5127_v59 = vpack.i.bf16 %v3138_v50, %v3137_v25 }
 0xb18   :  { %v4991_v12 = vunpack.i.h.bf16 %v4989_v17  ;;  %v4990_v31 = vunpack.i.l.bf16 %v4989_v17 }
 0xb19   :  { %v4994_v14 = vpop.permute.xlu0 %4993 }
 0xb1a   :  { %v3170_v16 = vsel %vm1482_vm6, %v4990_v31, %v4991_v12  ;;  %v4996_v39 = vunpack.i.h.bf16 %v4994_v14  ;;  %v4995_v1 = vunpack.i.l.bf16 %v4994_v14  ;;  %v3169_v53 = vsel %vm1482_vm6, %v4956_v44, %v4990_v31 }
 0xb1b   :  { %5073 = vrot.lane.b32.xlu1 %v5072_v47, %s5578_s0  ;;  %5083 = vrot.lane.b32.xlu0 %v5082_v63, %s5578_s0  ;;  %v3139_v47 = vsel %vm1459_vm5, %v4986_v22, %v3131_v6  ;;  %v5117_v63 = vpack.i.bf16 %v3103_v8, %v3102_v28  ;;  %v5142_v4 = vpack.i.bf16 %v4991_v12, %v3170_v16  ;;  %v7216_v28 = vpop.permute.xlu1 %5013 }
 0xb1c   :  { %v5132_v61 = vpack.i.bf16 %v3131_v6, %v3139_v47  ;;  %v3205_v43 = vsel %vm1505_vm11, %v4996_v39, %v6916_v27  ;;  %v3204_v19 = vsel %vm1505_vm11, %v4995_v1, %v4996_v39  ;;  %v5137_v21 = vpack.i.bf16 %v3169_v53, %v3168_v32 }
 0xb1d   :  { %v4999_v48 = vpop.permute.xlu0 %4998  ;;  %v5152_v49 = vpack.i.bf16 %v3205_v43, %v3204_v19  ;;  %v3203_v58 = vsel %vm1505_vm11, %v4961_v51, %v4995_v1 }
 0xb1e   :  { %v5147_v6 = vpack.i.bf16 %v3203_v58, %v3202_v10 }
 0xb1f   :  { %5088 = vrot.lane.b32.xlu1 %v5087_v3, %s5578_s0  ;;  %5098 = vrot.lane.b32.xlu0 %v5097_v42, %s5578_s0  ;;  %v5001_v3 = vunpack.i.h.bf16 %v4999_v48  ;;  %v5000_v42 = vunpack.i.l.bf16 %v4999_v48 }
 0xb21   :  { %v5004_v29 = vpop.permute.xlu0 %5003  ;;  %v3240_v27 = vsel %vm622_vm8, %v5001_v3, %v6922_v23  ;;  %v3238_v11 = vsel %vm622_vm8, %v4966_v18, %v5000_v42 }
 0xb22   :  { %v5005_v13 = vunpack.i.l.bf16 %v5004_v29  ;;  %v5157_v41 = vpack.i.bf16 %v3238_v11, %v3237_v30 }
 0xb23   :  { %5093 = vrot.lane.b32.xlu1 %v5092_v54, %s5578_s0  ;;  %5103 = vrot.lane.b32.xlu0 %v5102_v26, %s5578_s0  ;;  %v3239_v54 = vsel %vm622_vm8, %v5000_v42, %v5001_v3  ;;  %v5006_v26 = vunpack.i.h.bf16 %v5004_v29  ;;  %vm3635_vm8 = vcmask 588800  }
 0xb24   :  { %v5162_v62 = vpack.i.bf16 %v3240_v27, %v3239_v54  ;;  %v3274_v0 = vsel %vm3268_vm14, %v4971_v2, %v5005_v13 }
 0xb25   :  { %v3276_v23 = vsel %vm3268_vm14, %v5006_v26, %v6925_v9  ;;  %v3275_v5 = vsel %vm3268_vm14, %v5005_v13, %v5006_v26  ;;  %v3273_v9 = vsel %vm3268_vm14, %v4970_v37, %v4971_v2  ;;  %v3314_v37 = vld [vmem:[%s7596_s17] sm:$0x3f] }
 0xb26   :  { %v5167_v38 = vpack.i.bf16 %v3274_v0, %v3273_v9 }
 0xb27   :  { %3481 = vrot.lane.b32.xlu1 %v3308_v20, %s5578_s0  ;;  %5108 = vrot.lane.b32.xlu0 %v5107_v46, %s5578_s0  ;;  %v5172_v46 = vpack.i.bf16 %v3276_v23, %v3275_v5  ;;  %v3297_v20 = vpop.permute.xlu0 %3296 }
 0xb28   :  { %v3310_v52 = vsel %vm3304_vm4, %v3297_v20, %v7022_v24  ;;  %v3309_v17 = vsel %vm3304_vm4, %v7024_v35, %v3297_v20 }
 0xb2b   :  { %5113 = vrot.lane.b32.xlu1 %v5112_v55, %s5578_s0  ;;  %5123 = vrot.lane.b32.xlu0 %v5122_v15, %s5578_s0  ;;  %v3301_v40 = vpop.permute.xlu0 %3300  ;;  %v4930_v15 = vunpack.i.l.bf16 %v6975_v60 }
 0xb2c   :  { %v3312_v14 = vsel %vm3304_vm4, %v3301_v40, %v6929_v7  ;;  %v3311_v36 = vsel %vm3304_vm4, %v7022_v24, %v3301_v40 }
 0xb2d   :  { %v3492_v48 = vsel %vm3009_vm13, %v4930_v15, %v4931_v56 }
 0xb2f   :  { %5118 = vrot.lane.b32.xlu1 %v5117_v63, %s5578_s0  ;;  %5133 = vrot.lane.b32.xlu0 %v5132_v61, %s5578_s0  ;;  %v7214_v22 = vpop.permute.xlu0 %5008 }
 0xb33   :  { %5128 = vrot.lane.b32.xlu1 %v5127_v59, %s5578_s0  ;;  %5143 = vrot.lane.b32.xlu0 %v5142_v4, %s5578_s0 }
 0xb37   :  { %5138 = vrot.lane.b32.xlu1 %v5137_v21, %s5578_s0  ;;  %5153 = vrot.lane.b32.xlu0 %v5152_v49, %s5578_s0 }
 0xb3b   :  { %5148 = vrot.lane.b32.xlu1 %v5147_v6, %s5578_s0  ;;  %5163 = vrot.lane.b32.xlu0 %v5162_v62, %s5578_s0 }
 0xb3f   :  { %5158 = vrot.lane.b32.xlu1 %v5157_v41, %s5578_s0  ;;  %5173 = vrot.lane.b32.xlu0 %v5172_v46, %s5578_s0 }
 0xb43   :  { %5168 = vrot.lane.b32.xlu1 %v5167_v38, %s5578_s0  ;;  %3485 = vrot.lane.b32.xlu0 %v3310_v52, %s5578_s0 }
 0xb46   :  { %v5019_v35 = vpop.permute.xlu0 %5018 }
 0xb47   :  { %3483 = vrot.lane.b32.xlu1 %v3309_v17, %s5578_s0  ;;  %3489 = vrot.lane.b32.xlu0 %v3312_v14, %s5578_s0  ;;  %v5021_v26 = vunpack.i.h.bf16 %v5019_v35  ;;  %v5020_v11 = vunpack.i.l.bf16 %v5019_v35 }
 0xb4a   :  { %v7218_v7 = vpop.permute.xlu0 %3473 }
 0xb4b   :  { %3487 = vrot.lane.b32.xlu1 %v3311_v36, %s5578_s0 }
 0xb4e   :  { %v5024_v55 = vpop.permute.xlu1 %5023 }
 0xb4f   :  { %3317 = vperm.xlu1 %4605, %v3314_v37   ;;  %v5026_v41 = vunpack.i.h.bf16 %v5024_v55  ;;  %v5025_v9 = vunpack.i.l.bf16 %v5024_v55 }
 0xb71   :  { %v5029_v33 = vpop.permute.xlu0 %5028 }
 0xb72   :  { %v5030_v8 = vunpack.i.l.bf16 %v5029_v33  ;;  %v5031_v31 = vunpack.i.h.bf16 %v5029_v33 }
 0xb74   :  { %v3491_v25 = vsel %vm3009_vm13, %v5030_v8, %v4930_v15  ;;  %v4936_v8 = vunpack.i.h.bf16 %v6978_v57 }
 0xb75   :  { %v5034_v24 = vpop.permute.xlu1 %5033  ;;  %v7221_v12 = vpop.permute.xlu0 %5038 }
 0xb76   :  { %v5041_v47 = vunpack.i.h.bf16 %v7221_v12  ;;  %v5040_v63 = vunpack.i.l.bf16 %v7221_v12  ;;  %v5036_v53 = vunpack.i.h.bf16 %v5034_v24  ;;  %v5035_v60 = vunpack.i.l.bf16 %v5034_v24 }
 0xb78   :  { %v3499_v61 = vsel %vm3009_vm13, %v5031_v31, %v5040_v63  ;;  %v3500_v50 = vsel %vm3009_vm13, %v5040_v63, %v5041_v47 }
 0xb79   :  { %v4372_v16 = vpack.c.bf16 %v3499_v61, %v3491_v25  ;;  %v7233_v39 = vpop.permute.xlu1 %5043  ;;  %v7235_v1 = vpop.permute.xlu0 %5053  ;;  %v4370_v44 = vpack.c.bf16 %v3500_v50, %v3492_v48 }
 0xb7a   :  { %v5045_v59 = vunpack.i.l.bf16 %v7233_v39  ;;  %v5046_v4 = vunpack.i.h.bf16 %v7233_v39  ;;  %v5056_v56 = vunpack.i.h.bf16 %v7235_v1  ;;  %v5055_v43 = vunpack.i.l.bf16 %v7235_v1 }
 0xb7b   :  { %4371 = vmatprep.subr.bf16.mxu1 %v4370_v44 }
 0xb7c   :  { %4373 = vmatpush1.bf16.msra.mxu1 %v4372_v16  ;;  %v3507_v21 = vsel %vm3009_vm13, %v5035_v60, %v5045_v59  ;;  %v3508_v58 = vsel %vm3009_vm13, %v5045_v59, %v5046_v4  ;;  %v3524_v62 = vsel %vm3009_vm13, %v5055_v43, %v5056_v56  ;;  %v3523_v46 = vsel %vm3009_vm13, %v5020_v11, %v5055_v43  ;;  %v7299_v59 = vld [vmem:[%s7597_s9] sm:$0x3f] }
 0xb7d   :  { %v7241_v19 = vpop.permute.xlu1 %5048  ;;  %v7243_v3 = vpop.permute.xlu0 %5058  ;;  %v3494_v43 = vsel %vm3009_vm13, %v4935_v45, %v4936_v8 }
 0xb7e   :  { %v5051_v42 = vunpack.i.h.bf16 %v7241_v19  ;;  %v5050_v51 = vunpack.i.l.bf16 %v7241_v19  ;;  %v5061_v29 = vunpack.i.h.bf16 %v7243_v3  ;;  %v5060_v32 = vunpack.i.l.bf16 %v7243_v3 }
 0xb80   :  { %v3515_v49 = vsel %vm3009_vm13, %v5036_v53, %v5050_v51  ;;  %v3516_v27 = vsel %vm3009_vm13, %v5050_v51, %v5051_v42  ;;  %v3532_v54 = vsel %vm3009_vm13, %v5060_v32, %v5061_v29  ;;  %v3531_v23 = vsel %vm3009_vm13, %v5021_v26, %v5060_v32 }
 0xb81   :  { %v4376_v13 = vpack.c.bf16 %v3515_v49, %v3507_v21  ;;  %v7260_v10 = vpop.permute.xlu1 %5063  ;;  %v3476_v18 = vpop.permute.xlu0 %3475  ;;  %v4374_v6 = vpack.c.bf16 %v3516_v27, %v3508_v58  ;;  %v4378_v5 = vpack.c.bf16 %v3532_v54, %v3524_v62  ;;  %v4380_v38 = vpack.c.bf16 %v3531_v23, %v3523_v46  ;;  %v7328_v58 = vld [vmem:[#allocation3] sm:$0xff] }
 0xb82   :  { %v5066_v30 = vunpack.i.h.bf16 %v7260_v10  ;;  %v5065_v2 = vunpack.i.l.bf16 %v7260_v10  ;;  %v3555_v53 = vsel %vm3009_vm13, %v7218_v7, %v3476_v18  ;;  %v5011_v23 = vunpack.i.h.bf16 %v7214_v22 }
 0xb83   :  { %4375 = vmatprep.subr.bf16.mxu1 %v4374_v6 }
 0xb84   :  { %4377 = vmatpush1.bf16.msra.mxu1 %v4376_v13  ;;  %v3539_v17 = vsel %vm3009_vm13, %v5025_v9, %v5065_v2  ;;  %v3540_v36 = vsel %vm3009_vm13, %v5065_v2, %v5066_v30 }
 0xb85   :  { %v7269_v20 = vpop.permute.xlu1 %5068  ;;  %v7271_v0 = vpop.permute.xlu0 %3479  ;;  %4379 = vmatprep.subr.bf16.mxu1 %v4378_v5  ;;  %v5010_v5 = vunpack.i.l.bf16 %v7214_v22 }
 0xb86   :  { %v5071_v52 = vunpack.i.h.bf16 %v7269_v20  ;;  %v5070_v40 = vunpack.i.l.bf16 %v7269_v20 }
 0xb88   :  { %v3547_v14 = vsel %vm3009_vm13, %v5026_v41, %v5070_v40  ;;  %4381 = vmatpush1.bf16.msra.mxu1 %v4380_v38  ;;  %v3548_v37 = vsel %vm3009_vm13, %v5070_v40, %v5071_v52 }
 0xb89   :  { %v4384_v35 = vpack.c.bf16 %v3547_v14, %v3539_v17  ;;  %v7283_v55 = vpop.permute.xlu1 %3477  ;;  %v7285_v33 = vpop.permute.xlu0 %5078  ;;  %v4382_v15 = vpack.c.bf16 %v3548_v37, %v3540_v36  ;;  %v3495_v37 = vsel %vm3009_vm13, %v4936_v8, %v5010_v5  ;;  %v5015_v8 = vunpack.i.l.bf16 %v7216_v28 }
 0xb8a   :  { %v3556_v24 = vsel %vm3009_vm13, %v3476_v18, %v7283_v55  ;;  %v5081_v31 = vunpack.i.h.bf16 %v7285_v33  ;;  %v5080_v63 = vunpack.i.l.bf16 %v7285_v33 }
 0xb8b   :  { %4383 = vmatprep.subr.bf16.mxu1 %v4382_v15  ;;  %v3496_v15 = vsel %vm3009_vm13, %v5010_v5, %v5011_v23 }
 0xb8c   :  { %4385 = vmatpush1.bf16.msra.mxu1 %v4384_v35  ;;  %v3510_v49 = vsel %vm3009_vm13, %v5080_v63, %v5081_v31  ;;  %v3509_v54 = vsel %vm3009_vm13, %v5046_v4, %v5080_v63  ;;  %v5016_v63 = vunpack.i.h.bf16 %v7216_v28  ;;  %v3497_v28 = vsel %vm3009_vm13, %v5011_v23, %v5015_v8 }
 0xb8d   :  { %v5074_v25 = vpop.permute.xlu1 %5073  ;;  %v7292_v61 = vpop.permute.xlu0 %5083  ;;  %3655 = vmatprep.subr.mxu1 %v3556_v24 }
 0xb8e   :  { %v5076_v48 = vunpack.i.h.bf16 %v5074_v25  ;;  %v5075_v50 = vunpack.i.l.bf16 %v5074_v25  ;;  %v5086_v16 = vunpack.i.h.bf16 %v7292_v61  ;;  %v5085_v44 = vunpack.i.l.bf16 %v7292_v61 }
 0xb90   :  { %v3501_v60 = vsel %vm3009_vm13, %v5041_v47, %v5075_v50  ;;  %3656 = vmatpush1.msra.mxu1 %v3555_v53  ;;  %v3502_v51 = vsel %vm3009_vm13, %v5075_v50, %v5076_v48  ;;  %v3518_v32 = vsel %vm3009_vm13, %v5085_v44, %v5086_v16  ;;  %v3517_v45 = vsel %vm3009_vm13, %v5051_v42, %v5085_v44 }
 0xb91   :  { %v4388_v21 = vpack.c.bf16 %v3501_v60, %v6987_v34  ;;  %v7316_v7 = vpop.permute.xlu1 %5088  ;;  %v7318_v12 = vpop.permute.xlu0 %5098  ;;  %3978 = vmatmul.mubr.msk.f32.vlgmr.msra.gmra.mrb[14].mxu1 %vm3635_vm8, %v7299_v59  ;;  %v4386_v47 = vpack.c.bf16 %v3502_v51, %v3494_v43  ;;  %v4390_v27 = vpack.c.bf16 %v3518_v32, %v3510_v49  ;;  %v4392_v42 = vpack.c.bf16 %v3517_v45, %v3509_v54 }
 0xb92   :  { %3845 = vmatprep.mubr.f32.mxu1 %v7328_v58  ;;  %v5090_v34 = vunpack.i.l.bf16 %v7316_v7  ;;  %v5091_v19 = vunpack.i.h.bf16 %v7316_v7  ;;  %v5101_v26 = vunpack.i.h.bf16 %v7318_v12  ;;  %v5100_v13 = vunpack.i.l.bf16 %v7318_v12 }
 0xb93   :  { %4387 = vmatprep.subr.bf16.mxu0 %v4386_v47  ;;  %v3498_v49 = vsel %vm3009_vm13, %v5015_v8, %v5016_v63 }
 0xb94   :  { %4389 = vmatpush1.bf16.msra.mxu0 %v4388_v21  ;;  %v3525_v2 = vsel %vm3009_vm13, %v5056_v56, %v5090_v34  ;;  %v3526_v46 = vsel %vm3009_vm13, %v5090_v34, %v5091_v19  ;;  %v3542_v17 = vsel %vm3009_vm13, %v5100_v13, %v5101_v26  ;;  %v3541_v20 = vsel %vm3009_vm13, %v5066_v30, %v5100_v13 }
 0xb95   :  { %v7338_v18 = vpop.permute.xlu1 %5093  ;;  %v7340_v6 = vpop.permute.xlu0 %5103  ;;  %4391 = vmatprep.subr.bf16.mxu0 %v4390_v27  ;;  %v3557_v34 = vsel %vm3009_vm13, %v7283_v55, %v7271_v0 }
 0xb96   :  { %v5096_v62 = vunpack.i.h.bf16 %v7338_v18  ;;  %v5095_v11 = vunpack.i.l.bf16 %v7338_v18  ;;  %v5106_v39 = vunpack.i.h.bf16 %v7340_v6  ;;  %v5105_v4 = vunpack.i.l.bf16 %v7340_v6 }
 0xb98   :  { %v3533_v41 = vsel %vm3009_vm13, %v5061_v29, %v5095_v11  ;;  %4393 = vmatpush1.bf16.msra.mxu0 %v4392_v42  ;;  %v3534_v9 = vsel %vm3009_vm13, %v5095_v11, %v5096_v62  ;;  %v3550_v22 = vsel %vm3009_vm13, %v5105_v4, %v5106_v39  ;;  %v3549_v14 = vsel %vm3009_vm13, %v5071_v52, %v5105_v4 }
 0xb99   :  { %v4396_v1 = vpack.c.bf16 %v3533_v41, %v3525_v2  ;;  %v7363_v38 = vpop.permute.xlu1 %3481  ;;  %v5109_v56 = vpop.permute.xlu0 %5108  ;;  %v4394_v3 = vpack.c.bf16 %v3534_v9, %v3526_v46  ;;  %v4398_v36 = vpack.c.bf16 %v3550_v22, %v3542_v17  ;;  %v4400_v44 = vpack.c.bf16 %v3549_v14, %v3541_v20 }
 0xb9a   :  { %v5111_v40 = vunpack.i.h.bf16 %v5109_v56  ;;  %v5110_v29 = vunpack.i.l.bf16 %v5109_v56  ;;  %v3558_v10 = vsel %vm3009_vm13, %v7271_v0, %v7363_v38 }
 0xb9b   :  { %4395 = vmatprep.subr.bf16.mxu0 %v4394_v3 }
 0xb9c   :  { %v3503_v35 = vsel %vm3009_vm13, %v5076_v48, %v5110_v29  ;;  %4397 = vmatpush1.bf16.msra.mxu0 %v4396_v1  ;;  %v3504_v24 = vsel %vm3009_vm13, %v5110_v29, %v5111_v40 }
 0xb9d   :  { %v4404_v52 = vpack.c.bf16 %v3503_v35, %v3495_v37  ;;  %v5114_v25 = vpop.permute.xlu1 %5113  ;;  %v5124_v50 = vpop.permute.xlu0 %5123  ;;  %4399 = vmatprep.subr.bf16.mxu0 %v4398_v36  ;;  %v4402_v57 = vpack.c.bf16 %v3504_v24, %v3496_v15 }
 0xb9e   :  { %v5116_v48 = vunpack.i.h.bf16 %v5114_v25  ;;  %v5115_v53 = vunpack.i.l.bf16 %v5114_v25  ;;  %v5126_v60 = vunpack.i.h.bf16 %v5124_v50  ;;  %v5125_v43 = vunpack.i.l.bf16 %v5124_v50 }
 0xb9f   :  { %4403 = vmatprep.subr.bf16.mxu1 %v4402_v57 }
 0xba0   :  { %4401 = vmatpush1.bf16.msra.mxu0 %v4400_v44  ;;  %4405 = vmatpush1.bf16.msra.mxu1 %v4404_v52  ;;  %v3506_v30 = vsel %vm3009_vm13, %v5115_v53, %v5116_v48  ;;  %v3505_v51 = vsel %vm3009_vm13, %v5111_v40, %v5115_v53  ;;  %v3514_v11 = vsel %vm3009_vm13, %v5125_v43, %v5126_v60 }
 0xba1   :  { %v5119_v32 = vpop.permute.xlu1 %5118  ;;  %v5134_v21 = vpop.permute.xlu0 %5133  ;;  %3726 = vmatprep.subr.mxu0 %v3558_v10  ;;  %v4418_v42 = vpack.c.bf16 %v3506_v30, %v3498_v49  ;;  %v4420_v13 = vpack.c.bf16 %v3505_v51, %v3497_v28 }
 0xba2   :  { %v5136_v47 = vunpack.i.h.bf16 %v5134_v21  ;;  %v5135_v45 = vunpack.i.l.bf16 %v5134_v21  ;;  %v5121_v27 = vunpack.i.h.bf16 %v5119_v32  ;;  %v5120_v54 = vunpack.i.l.bf16 %v5119_v32 }
 0xba4   :  { %3727 = vmatpush1.msra.mxu0 %v3557_v34  ;;  %v3522_v4 = vsel %vm3009_vm13, %v5135_v45, %v5136_v47  ;;  %v3511_v0 = vsel %vm3009_vm13, %v5081_v31, %v5120_v54  ;;  %v3513_v55 = vsel %vm3009_vm13, %v5121_v27, %v5125_v43  ;;  %v3512_v22 = vsel %vm3009_vm13, %v5120_v54, %v5121_v27 }
 0xba5   :  { %v5129_v5 = vpop.permute.xlu1 %5128  ;;  %v5144_v2 = vpop.permute.xlu0 %5143  ;;  %3979 = vmatmul.mubr.msk.f32.vlgmr.msra.gmra.mrb[10].mxu0 %vm3635_vm8, %v7299_v59  ;;  %4419 = vmatprep.subr.bf16.mxu0 %v4418_v42  ;;  %v4422_v23 = vpack.c.bf16 %v3522_v4, %v3514_v11 }
 0xba6   :  { %v5131_v41 = vunpack.i.h.bf16 %v5129_v5  ;;  %v5130_v46 = vunpack.i.l.bf16 %v5129_v5  ;;  %4421 = vmatpush1.bf16.msra.mxu0 %v4420_v13  ;;  %3916 = vmatprep.mubr.f32.mxu0 %v7328_v58  ;;  %v5146_v9 = vunpack.i.h.bf16 %v5144_v2  ;;  %v5145_v3 = vunpack.i.l.bf16 %v5144_v2 }
 0xba7   :  { %4423 = vmatprep.subr.bf16.mxu0 %v4422_v23 }
 0xba8   :  { %v3519_v1 = vsel %vm3009_vm13, %v5086_v16, %v5130_v46  ;;  %v3521_v56 = vsel %vm3009_vm13, %v5131_v41, %v5135_v45  ;;  %v3520_v40 = vsel %vm3009_vm13, %v5130_v46, %v5131_v41  ;;  %v3530_v61 = vsel %vm3009_vm13, %v5145_v3, %v5146_v9 }
 0xba9   :  { %v4408_v58 = vpack.c.bf16 %v3519_v1, %v3511_v0  ;;  %v4424_v29 = vpack.c.bf16 %v3521_v56, %v3513_v55  ;;  %v5139_v33 = vpop.permute.xlu1 %5138  ;;  %v5154_v17 = vpop.permute.xlu0 %5153  ;;  %v4406_v31 = vpack.c.bf16 %v3520_v40, %v3512_v22 }
 0xbaa   :  { %v5156_v14 = vunpack.i.h.bf16 %v5154_v17  ;;  %v5155_v36 = vunpack.i.l.bf16 %v5154_v17  ;;  %v5141_v37 = vunpack.i.h.bf16 %v5139_v33  ;;  %v5140_v35 = vunpack.i.l.bf16 %v5139_v33 }
 0xbab   :  { %4407 = vmatprep.subr.bf16.mxu1 %v4406_v31  ;;  %4425 = vmatpush1.bf16.msra.mxu0 %v4424_v29 }
 0xbac   :  { %4409 = vmatpush1.bf16.msra.mxu1 %v4408_v58  ;;  %v3538_v16 = vsel %vm3009_vm13, %v5155_v36, %v5156_v14  ;;  %v3527_v25 = vsel %vm3009_vm13, %v5091_v19, %v5140_v35  ;;  %v3529_v50 = vsel %vm3009_vm13, %v5141_v37, %v5145_v3  ;;  %v3528_v8 = vsel %vm3009_vm13, %v5140_v35, %v5141_v37 }
 0xbad   :  { %v5149_v15 = vpop.permute.xlu1 %5148  ;;  %v5164_v24 = vpop.permute.xlu0 %5163  ;;  %v4426_v63 = vpack.c.bf16 %v3538_v16, %v3530_v61 }
 0xbae   :  { %v5151_v20 = vunpack.i.h.bf16 %v5149_v15  ;;  %v5150_v52 = vunpack.i.l.bf16 %v5149_v15  ;;  %v5166_v57 = vunpack.i.h.bf16 %v5164_v24  ;;  %v5165_v53 = vunpack.i.l.bf16 %v5164_v24 }
 0xbaf   :  { %4427 = vmatprep.subr.bf16.mxu0 %v4426_v63 }
 0xbb0   :  { %v3535_v44 = vsel %vm3009_vm13, %v5096_v62, %v5150_v52  ;;  %v3537_v48 = vsel %vm3009_vm13, %v5151_v20, %v5155_v36  ;;  %v3536_v60 = vsel %vm3009_vm13, %v5150_v52, %v5151_v20  ;;  %v3546_v18 = vsel %vm3009_vm13, %v5165_v53, %v5166_v57 }
 0xbb1   :  { %v4412_v43 = vpack.c.bf16 %v3535_v44, %v3527_v25  ;;  %v4428_v10 = vpack.c.bf16 %v3537_v48, %v3529_v50  ;;  %v5159_v7 = vpop.permute.xlu1 %5158  ;;  %v5174_v30 = vpop.permute.xlu0 %5173  ;;  %v4410_v19 = vpack.c.bf16 %v3536_v60, %v3528_v8 }
 0xbb2   :  { %v5176_v51 = vunpack.i.h.bf16 %v5174_v30  ;;  %v5175_v32 = vunpack.i.l.bf16 %v5174_v30  ;;  %v5161_v21 = vunpack.i.h.bf16 %v5159_v7  ;;  %v5160_v28 = vunpack.i.l.bf16 %v5159_v7 }
 0xbb3   :  { %4411 = vmatprep.subr.bf16.mxu1 %v4410_v19  ;;  %4429 = vmatpush1.bf16.msra.mxu0 %v4428_v10 }
 0xbb4   :  { %4413 = vmatpush1.bf16.msra.mxu1 %v4412_v43  ;;  %v3554_v62 = vsel %vm3009_vm13, %v5175_v32, %v5176_v51  ;;  %v3543_v27 = vsel %vm3009_vm13, %v5101_v26, %v5160_v28  ;;  %v3545_v54 = vsel %vm3009_vm13, %v5161_v21, %v5165_v53  ;;  %v3544_v4 = vsel %vm3009_vm13, %v5160_v28, %v5161_v21 }
 0xbb5   :  { %v5169_v47 = vpop.permute.xlu1 %5168  ;;  %v4430_v45 = vpack.c.bf16 %v3554_v62, %v3546_v18  ;;  %v3486_v42 = vpop.permute.xlu0 %3485 }
 0xbb6   :  { %v5171_v49 = vunpack.i.h.bf16 %v5169_v47  ;;  %v5170_v34 = vunpack.i.l.bf16 %v5169_v47 }
 0xbb7   :  { %4431 = vmatprep.subr.bf16.mxu0 %v4430_v45 }
 0xbb8   :  { %v3551_v13 = vsel %vm3009_vm13, %v5106_v39, %v5170_v34  ;;  %v3553_v11 = vsel %vm3009_vm13, %v5171_v49, %v5175_v32  ;;  %v3552_v5 = vsel %vm3009_vm13, %v5170_v34, %v5171_v49 }
 0xbb9   :  { %v4416_v2 = vpack.c.bf16 %v3551_v13, %v3543_v27  ;;  %v4432_v23 = vpack.c.bf16 %v3553_v11, %v3545_v54  ;;  %v3484_v41 = vpop.permute.xlu1 %3483  ;;  %v4414_v12 = vpack.c.bf16 %v3552_v5, %v3544_v4  ;;  %v3490_v46 = vpop.permute.xlu0 %3489 }
 0xbba   :  { %v3560_v26 = vsel %vm3009_vm13, %v3484_v41, %v3486_v42  ;;  %v3559_v55 = vsel %vm3009_vm13, %v7363_v38, %v3484_v41 }
 0xbbb   :  { %4415 = vmatprep.subr.bf16.mxu1 %v4414_v12  ;;  %4433 = vmatpush1.bf16.msra.mxu0 %v4432_v23 }
 0xbbc   :  { %4417 = vmatpush1.bf16.msra.mxu1 %v4416_v2 }
 0xbbd   :  { %v3488_v0 = vpop.permute.xlu1 %3487  ;;  %3797 = vmatprep.subr.mxu1 %v3560_v26 }
 0xbbe   :  { %v3561_v6 = vsel %vm3009_vm13, %v3486_v42, %v3488_v0  ;;  %v3562_v39 = vsel %vm3009_vm13, %v3488_v0, %v3490_v46 }
 0xbbf   :  { %3868 = vmatprep.subr.mxu0 %v3562_v39 }
 0xbc0   :  { %3798 = vmatpush1.msra.mxu1 %v3559_v55  ;;  %3869 = vmatpush1.msra.mxu0 %v3561_v6 }
 0xbc1   :  { %3980 = vmatmul.mubr.msk.f32.vlgmr.msra.gmra.mrb[16].mxu1 %vm3635_vm8, %v7299_v59  ;;  %3981 = vmatmul.mubr.msk.f32.vlgmr.msra.gmra.mrb[12].mxu0 %vm3635_vm8, %v7299_v59 }
 0xbce   :  { %v3318_v9 = vpop.permute.xlu1 %3317 }
 0xc64   :  { %v3705_v22 = vpop.f32.mrb[14].mxu1 }
 0xc65   :  { %v3706_v1 = vadd.f32 %v3705_v22, %v3318_v9  ;;  %v3707_v56 = vpop.f32.mrb[15].mxu1 }
 0xc66   :  { %v3708_v3 = vadd.f32 %v3707_v56, %v3318_v9 }
 0xc67   :  { %3923 = vst [vmem:[#allocation29] sm:$0x3f] %v3706_v1 }
 0xc68   :  { %3924 = vst [vmem:[#allocation29 + $0x8] sm:$0x3f] %v3708_v3 }
 0xc78   :  { %v3776_v40 = vpop.f32.mrb[10].mxu0 }
 0xc79   :  { %v3777_v58 = vadd.f32 %v3776_v40, %v3318_v9  ;;  %v3778_v29 = vpop.f32.mrb[11].mxu0 }
 0xc7a   :  { %v3779_v38 = vadd.f32 %v3778_v29, %v3318_v9 }
 0xc7b   :  { %3925 = vst [vmem:[#allocation29 + $0x10] sm:$0x3f] %v3777_v58 }
 0xc7c   :  { %3926 = vst [vmem:[#allocation29 + $0x18] sm:$0x3f] %v3779_v38 }
 0xc94   :  { %v3847_v33 = vpop.f32.mrb[16].mxu1  ;;  %v3918_v17 = vpop.f32.mrb[12].mxu0 }
 0xc95   :  { %v3848_v31 = vadd.f32 %v3847_v33, %v3318_v9  ;;  %v3919_v14 = vadd.f32 %v3918_v17, %v3318_v9  ;;  %v3849_v59 = vpop.f32.mrb[17].mxu1  ;;  %v3920_v36 = vpop.f32.mrb[13].mxu0 }
 0xc96   :  { %v3850_v37 = vadd.f32 %v3849_v59, %v3318_v9  ;;  %v3921_v35 = vadd.f32 %v3920_v36, %v3318_v9 }
 0xc97   :  { %3927 = vst [vmem:[#allocation29 + $0x20] sm:$0x3f] %v3848_v31  ;;  %3929 = vst [vmem:[#allocation29 + $0x30] sm:$0x3f] %v3919_v14 }
 0xc98   :  { %3928 = vst [vmem:[#allocation29 + $0x28] sm:$0x3f] %v3850_v37  ;;  %3930 = vst [vmem:[#allocation29 + $0x38] sm:$0x3f] %v3921_v35 }
 0xc99   :  { %5502 = shalt.err (!%p5499_p4)
}
 0xc9a   :  { %s7598_s1 = sld [smem:[#allocation80_spill]] }
 0xca0   :  { %s5503_s18 = scalar_lea.hbm %s7598_s1, 1024 }
 0xca1   :  { %p5504_p5 = scmp.ne.s32.totalorder %s7598_s1, %s5503_s18  ;;  %p5507_p6 = scmp.lt.u32.totalorder %s5503_s18, %s7598_s1 }
 0xca3   :  { %p5509_p7 = pnand %p5507_p6, %p5504_p5 }
 0xca5   :  { %5512 = shalt.err (!%p5509_p7)
}
 0xca6   :  { %3940 = dma.vmem_to_hbm [thread:$0]  %s3938_s22, 1024, %s7598_s1, [#allocation8]  }
 0xca7   :  { %5529 = dma.done.wait [#allocation8], 1024  }
 0xca8   :  { %5530 = vsyncadd [#allocation8], 4294966272 }
 0xca9   :  { %3944 = vsyncpa [#allocation7], 1 }
 0xcaa   :  { %3945 = vsyncpa [#allocation10], 1 }
 0xcab   :  { %3946 = vsyncpa [#allocation13], 1 }
 0xcac   :  { %3947 = vsyncpa [#allocation16], 1 }
 0xcad   :  { %3948 = vsyncpa [#allocation19], 1 }
 0xcae   :  { %3949 = vsyncpa [#allocation22], 1 }
 0xcaf   :  { %3950 = vsyncpa [#allocation25], 1 }
 0xcb0   :  { %3951 = vsyncpa [#allocation28], 1 }
 0xcb1   :  { %3952 = vsyncpa [#allocation8], 1 }

</bundles_post_ra>
